<compile_context>
chip_gen: v5e
topology: v5e:2x2
jax: 0.10.0
libtpu: 0.0.40
codegen_flags: <defaults>
</compile_context>

<pallas_src>
import jax
import jax.numpy as jnp
import numpy as np
from jax.experimental import pallas as pl
from jax.experimental.pallas import tpu as pltpu

NUM_JOINTS = 21                      # MANO hand joints
NUM_VERTS_SUB = 195                  # downsampled mesh vertices
NUM_VERTS_FULL = 778                 # full MANO mesh vertices
SEQ = NUM_JOINTS + NUM_VERTS_SUB     # 216 tokens
IMG_FEAT_DIM = 2048                  # backbone output dim (fixed by .view(B,1,2048))
FEAT_DIM = 3 + IMG_FEAT_DIM          # 2051 transformer input dim
CAM_HID = 150


def metro_hand_kernel(pooled_ref, refvT_ref,
                      wbb_ref, bbb_ref,
                      wtr3_ref, wtrimg_ref, btr_ref,
                      wfc1_ref, bfc1_ref,
                      wfc2_ref, bfc2_ref,
                      wfc3_ref, bfc3_ref,
                      wup_ref, bup_ref,
                      cam_ref, f_ref, pv_ref):
    pooled = pooled_ref[...]                                   # (TB, C)
    tb, c_dim = pooled.shape

    # ---- backbone stand-in: linear C -> 2048 as C VPU FMAs (GAP already done in wrapper)
    # TODO(synk): real METRO uses a ResNet/HRNet backbone producing the 2048-d feature.
    image_feat = bbb_ref[...] + pooled[:, 0:1] * wbb_ref[0:1, :]
    for c in range(1, c_dim):
        image_feat = image_feat + pooled[:, c:c + 1] * wbb_ref[c:c + 1, :]   # (TB, 2048)

    # ---- trans_encoder stand-in, concat-free:  f = ref_v @ W_tr_ref + image_feat @ W_tr_img + b_tr
    # TODO(synk): real METRO runs a stack of BERT encoder blocks ending at hidden dim 3.
    img_term = jnp.dot(image_feat, wtrimg_ref[...],
                       preferred_element_type=jnp.float32)     # (TB, 3)  (MXU, K=2048)

    refvT = refvT_ref[...]                                     # (3, SEQ)
    f_rows = []
    for i in range(3):
        # ref-vertex contribution: 3 VPU FMAs on a (1, SEQ) lane-dense row
        ref_row = (wtr3_ref[0:1, i:i + 1] * refvT[0:1, :] +
                   wtr3_ref[1:2, i:i + 1] * refvT[1:2, :] +
                   wtr3_ref[2:3, i:i + 1] * refvT[2:3, :])     # (1, SEQ)
        f_i = ref_row + img_term[:, i:i + 1] + btr_ref[0:1, i:i + 1]          # (TB, SEQ)
        f_ref[i] = f_i                                         # lane-dense store
        f_rows.append(f_i)

    # ---- camera head: fc(3->1) as 3 scalar FMAs (no (216,1)->(1,216) transpose),
    #      then fc2(216->150) and fc3(150->3) on the MXU with M=TB.
    x1 = (f_rows[0] * wfc1_ref[0:1, 0:1] +
          f_rows[1] * wfc1_ref[1:2, 0:1] +
          f_rows[2] * wfc1_ref[2:3, 0:1] + bfc1_ref[0:1, 0:1])                # (TB, SEQ)
    cam = jnp.dot(x1, wfc2_ref[...], preferred_element_type=jnp.float32) + bfc2_ref[...]   # (TB, 150)
    cam = jnp.dot(cam, wfc3_ref[...], preferred_element_type=jnp.float32) + bfc3_ref[...]  # (TB, 3)
    cam_ref[...] = cam

    # ---- mesh upsampling 195 -> 778 per coordinate. W_up is zero-padded to (SEQ, 778)
    #      host-side, so f (which includes the 21 joint tokens) can be used directly.
    for i in range(3):
        pv_ref[i] = (jnp.dot(f_rows[i], wup_ref[...],
                             preferred_element_type=jnp.float32) + bup_ref[...])           # (TB, 778)


def metro_hand_forward(images, ref_vertices, p, *, batch_block=8):
    """images: (B, C, H, W) float32 NCHW. Returns (cam_param, pred_3d_joints,
    pred_vertices_sub, pred_vertices), mirroring the PyTorch forward (eval path)."""
    B, C, H, W = images.shape

    # Global average pool in XLA (memory-bound cross-lane reduction; keep it out of the kernel).
    pooled = images.reshape(B, C, H * W).mean(axis=-1).astype(jnp.float32)   # (B, C)

    # Batch several samples per grid step. Keep grid >= 2 when B allows so v7x's
    # two TensorCores both get work.
    TB = batch_block if B >= batch_block else B
    B_pad = pl.cdiv(B, TB) * TB
    if B_pad != B:
        pooled = jnp.pad(pooled, ((0, B_pad - B), (0, 0)))

    # Host-side weight preprocessing (exact reparameterizations, no semantics change).
    W_tr3 = p["W_tr"][:3, :]                                   # (3, 3)     ref-vertex part
    W_trimg = p["W_tr"][3:, :]                                 # (2048, 3)  image-feature part
    W_up_pad = jnp.zeros((SEQ, NUM_VERTS_FULL), jnp.float32).at[NUM_JOINTS:, :].set(p["W_up"])
    ref_vT = jnp.asarray(ref_vertices, jnp.float32).T          # (3, SEQ)

    shared2 = lambda b: (0, 0)
    grid = (B_pad // TB,)

    in_specs = [
        pl.BlockSpec((TB, C), lambda b: (b, 0)),                      # pooled
        pl.BlockSpec((3, SEQ), shared2),                              # ref_v^T
        pl.BlockSpec((C, IMG_FEAT_DIM), shared2),                     # W_bb
        pl.BlockSpec((1, IMG_FEAT_DIM), shared2),                     # b_bb
        pl.BlockSpec((3, 3), shared2),                                # W_tr (ref part)
        pl.BlockSpec((IMG_FEAT_DIM, 3), shared2),                     # W_tr (image part)
        pl.BlockSpec((1, 3), shared2),                                # b_tr
        pl.BlockSpec((3, 1), shared2),                                # W_fc1
        pl.BlockSpec((1, 1), shared2),                                # b_fc1
        pl.BlockSpec((SEQ, CAM_HID), shared2),                        # W_fc2
        pl.BlockSpec((1, CAM_HID), shared2),                          # b_fc2
        pl.BlockSpec((CAM_HID, 3), shared2),                          # W_fc3
        pl.BlockSpec((1, 3), shared2),                                # b_fc3
        pl.BlockSpec((SEQ, NUM_VERTS_FULL), shared2),                 # W_up (zero-padded rows 0..20)
        pl.BlockSpec((1, NUM_VERTS_FULL), shared2),                   # b_up
    ]
    out_shapes = (
        jax.ShapeDtypeStruct((B_pad, 3), jnp.float32),                       # cam (pre-squeeze)
        jax.ShapeDtypeStruct((3, B_pad, SEQ), jnp.float32),                  # f^T  (coord-major, lane-dense)
        jax.ShapeDtypeStruct((3, B_pad, NUM_VERTS_FULL), jnp.float32),       # pv^T (coord-major, lane-dense)
    )
    out_specs = (
        pl.BlockSpec((TB, 3), lambda b: (b, 0)),
        pl.BlockSpec((3, TB, SEQ), lambda b: (0, b, 0)),
        pl.BlockSpec((3, TB, NUM_VERTS_FULL), lambda b: (0, b, 0)),
    )

    cam, fT, pvT = pl.pallas_call(
        metro_hand_kernel,
        out_shape=out_shapes,
        grid=grid,
        in_specs=in_specs,
        out_specs=out_specs,
        compiler_params=pltpu.CompilerParams(
            dimension_semantics=("parallel",)),
    )(pooled, ref_vT,
      p["W_bb"], p["b_bb"], W_tr3, W_trimg, p["b_tr"],
      p["W_fc1"], p["b_fc1"], p["W_fc2"], p["b_fc2"],
      p["W_fc3"], p["b_fc3"], W_up_pad, p["b_up"])

    # Final lane-sparse (*, 3) transposes / token split done in XLA.
    f = jnp.transpose(fT[:, :B, :], (1, 2, 0))                 # (B, SEQ, 3)
    pred_3d_joints = f[:, :NUM_JOINTS, :]                      # (B, 21, 3)
    pred_vertices_sub = f[:, NUM_JOINTS:, :]                   # (B, 195, 3)
    pred_vertices = jnp.transpose(pvT[:, :B, :], (1, 2, 0))    # (B, 778, 3)

    cam_param = cam[:B]                                        # == torch transpose(1,2)+squeeze() for B > 1
    if B == 1:
        cam_param = cam_param[0]                               # torch .squeeze() also drops batch when B == 1
    return cam_param, pred_3d_joints, pred_vertices_sub, pred_vertices


def reference_forward(images, ref_vertices, p):
    """Plain-JAX reference mirroring the PyTorch forward (eval path), un-split weights."""
    B, C, H, W = images.shape
    pooled = images.reshape(B, C, -1).mean(-1)                                  # (B, C)
    feat = pooled @ p["W_bb"] + p["b_bb"]                                       # (B, 2048)
    image_feat = jnp.broadcast_to(feat[:, None, :], (B, SEQ, IMG_FEAT_DIM))
    ref = jnp.broadcast_to(ref_vertices[None], (B, SEQ, 3))
    features = jnp.concatenate([ref, image_feat], axis=2)                       # (B, 216, 2051)
    f = features @ p["W_tr"] + p["b_tr"]                                        # (B, 216, 3)
    joints = f[:, :NUM_JOINTS]
    vsub = f[:, NUM_JOINTS:]
    x = f @ p["W_fc1"] + p["b_fc1"]                                             # (B, 216, 1)
    x = jnp.swapaxes(x, 1, 2)                                                   # (B, 1, 216)
    x = x @ p["W_fc2"] + p["b_fc2"]                                             # (B, 1, 150)
    x = x @ p["W_fc3"] + p["b_fc3"]                                             # (B, 1, 3)
    cam = jnp.squeeze(jnp.swapaxes(x, 1, 2), axis=2)                            # (B, 3)
    if B == 1:
        cam = cam[0]
    pv = jnp.swapaxes(vsub, 1, 2) @ p["W_up"] + p["b_up"]                       # (B, 3, 778)
    pv = jnp.swapaxes(pv, 1, 2)                                                 # (B, 778, 3)
    return cam, joints, vsub, pv


def make_params():
    ks = jax.random.split(jax.random.PRNGKey(0), 16)
    f32 = jnp.float32
    return {
        # TODO(synk): with a real backbone the feature dim is not the image C; W_bb is a stand-in.
        "W_bb":  jax.random.normal(ks[0], (4, IMG_FEAT_DIM), f32) * 1.0,
        "b_bb":  jax.random.normal(ks[1], (1, IMG_FEAT_DIM), f32) * 0.01,
        "W_tr":  jax.random.normal(ks[2], (FEAT_DIM, 3), f32) * 0.02,
        "b_tr":  jax.random.normal(ks[3], (1, 3), f32) * 0.01,
        "W_fc1": jax.random.normal(ks[4], (3, 1), f32) * 0.02,
        "b_fc1": jax.random.normal(ks[5], (1, 1), f32) * 0.01,
        "W_fc2": jax.random.normal(ks[6], (SEQ, CAM_HID), f32) * 0.02,
        "b_fc2": jax.random.normal(ks[7], (1, CAM_HID), f32) * 0.01,
        "W_fc3": jax.random.normal(ks[8], (CAM_HID, 3), f32) * 0.02,
        "b_fc3": jax.random.normal(ks[9], (1, 3), f32) * 0.01,
        "W_up":  jax.random.normal(ks[10], (NUM_VERTS_SUB, NUM_VERTS_FULL), f32) * 0.02,
        "b_up":  jax.random.normal(ks[11], (1, NUM_VERTS_FULL), f32) * 0.01,
    }


def make_ref_vertices():
    """Synthetic template joints / sub-vertices (stand-in for MANO layer +
    mesh_sampler.downsample), with the same /1000 and root-centering math."""
    # TODO(synk): real code evaluates the MANO layer on zero pose/betas.
    k1, k2 = jax.random.split(jax.random.PRNGKey(42))
    template_3d_joints = jax.random.normal(k1, (1, NUM_JOINTS, 3), jnp.float32) * 100.0
    template_vertices_sub = jax.random.normal(k2, (1, NUM_VERTS_SUB, 3), jnp.float32) * 100.0
    template_3d_joints = template_3d_joints / 1000.0
    template_vertices_sub = template_vertices_sub / 1000.0
    template_root = template_3d_joints[:, 0, :]          # 'Wrist' is joint index 0 in MANO
    template_3d_joints = template_3d_joints - template_root[:, None, :]
    template_vertices_sub = template_vertices_sub - template_root[:, None, :]
    ref_vertices = jnp.concatenate([template_3d_joints, template_vertices_sub], axis=1)
    return ref_vertices[0]                               # (216, 3)


if __name__ == "__main__":
    B, C, H, W = 2, 4, 16, 16
    images = jax.random.normal(jax.random.PRNGKey(0), (B, C, H, W), jnp.float32)
    params = make_params()
    ref_vertices = make_ref_vertices()

    outs = metro_hand_forward(images, ref_vertices, params)
    outs = jax.block_until_ready(outs)
    cam_param, pred_3d_joints, pred_vertices_sub, pred_vertices = outs

    assert cam_param.shape == (B, 3)
    assert pred_3d_joints.shape == (B, NUM_JOINTS, 3)
    assert pred_vertices_sub.shape == (B, NUM_VERTS_SUB, 3)
    assert pred_vertices.shape == (B, NUM_VERTS_FULL, 3)

    # sanity check vs plain-JAX reference (un-split weights / concat formulation)
    ref_outs = jax.block_until_ready(reference_forward(images, ref_vertices, params))
    for got, want in zip(outs, ref_outs):
        np.testing.assert_allclose(np.asarray(got), np.asarray(want),
                                   rtol=2e-2, atol=2e-2)

    print("KERNEL_OK")
</pallas_src>

<mosaic_0001>
module attributes {stable_mosaic.version = 11 : i64} {
  func.func @metro_hand_kernel(%arg0: i32, %arg1: memref<2x4xf32, #tpu.memory_space<vmem>>, %arg2: memref<3x216xf32, #tpu.memory_space<vmem>>, %arg3: memref<4x2048xf32, #tpu.memory_space<vmem>>, %arg4: memref<1x2048xf32, #tpu.memory_space<vmem>>, %arg5: memref<3x3xf32, #tpu.memory_space<vmem>>, %arg6: memref<2048x3xf32, #tpu.memory_space<vmem>>, %arg7: memref<1x3xf32, #tpu.memory_space<vmem>>, %arg8: memref<3x1xf32, #tpu.memory_space<vmem>>, %arg9: memref<1x1xf32, #tpu.memory_space<vmem>>, %arg10: memref<216x150xf32, #tpu.memory_space<vmem>>, %arg11: memref<1x150xf32, #tpu.memory_space<vmem>>, %arg12: memref<150x3xf32, #tpu.memory_space<vmem>>, %arg13: memref<1x3xf32, #tpu.memory_space<vmem>>, %arg14: memref<216x778xf32, #tpu.memory_space<vmem>>, %arg15: memref<1x778xf32, #tpu.memory_space<vmem>>, %arg16: memref<2x3xf32, #tpu.memory_space<vmem>>, %arg17: memref<3x2x216xf32, #tpu.memory_space<vmem>>, %arg18: memref<3x2x778xf32, #tpu.memory_space<vmem>>) attributes {dimension_semantics = [#tpu.dimension_semantics<parallel>], iteration_bounds = array<i64: 1>, scalar_prefetch = 0 : i64, scratch_operands = 0 : i64, tpu.core_type = #tpu.core_type<tc>, window_params = [{transform_indices = @transform_0, window_bounds = array<i64: 2, 4>}, {pipeline_mode = #tpu.pipeline_mode<synchronous>, transform_indices = @transform_1, window_bounds = array<i64: 3, 216>}, {pipeline_mode = #tpu.pipeline_mode<synchronous>, transform_indices = @transform_2, window_bounds = array<i64: 4, 2048>}, {pipeline_mode = #tpu.pipeline_mode<synchronous>, transform_indices = @transform_3, window_bounds = array<i64: 1, 2048>}, {pipeline_mode = #tpu.pipeline_mode<synchronous>, transform_indices = @transform_4, window_bounds = array<i64: 3, 3>}, {pipeline_mode = #tpu.pipeline_mode<synchronous>, transform_indices = @transform_5, window_bounds = array<i64: 2048, 3>}, {pipeline_mode = #tpu.pipeline_mode<synchronous>, transform_indices = @transform_6, window_bounds = array<i64: 1, 3>}, {pipeline_mode = #tpu.pipeline_mode<synchronous>, transform_indices = @transform_7, window_bounds = array<i64: 3, 1>}, {pipeline_mode = #tpu.pipeline_mode<synchronous>, transform_indices = @transform_8, window_bounds = array<i64: 1, 1>}, {pipeline_mode = #tpu.pipeline_mode<synchronous>, transform_indices = @transform_9, window_bounds = array<i64: 216, 150>}, {pipeline_mode = #tpu.pipeline_mode<synchronous>, transform_indices = @transform_10, window_bounds = array<i64: 1, 150>}, {pipeline_mode = #tpu.pipeline_mode<synchronous>, transform_indices = @transform_11, window_bounds = array<i64: 150, 3>}, {pipeline_mode = #tpu.pipeline_mode<synchronous>, transform_indices = @transform_12, window_bounds = array<i64: 1, 3>}, {pipeline_mode = #tpu.pipeline_mode<synchronous>, transform_indices = @transform_13, window_bounds = array<i64: 216, 778>}, {pipeline_mode = #tpu.pipeline_mode<synchronous>, transform_indices = @transform_14, window_bounds = array<i64: 1, 778>}, {transform_indices = @transform_15, window_bounds = array<i64: 2, 3>}, {transform_indices = @transform_16, window_bounds = array<i64: 3, 2, 216>}, {transform_indices = @transform_17, window_bounds = array<i64: 3, 2, 778>}]} {
    %c0 = arith.constant 0 : index
    %c0_0 = arith.constant 0 : index
    %0 = vector.load %arg1[%c0, %c0_0] : memref<2x4xf32, #tpu.memory_space<vmem>>, vector<2x4xf32>
    %c0_1 = arith.constant 0 : index
    %c0_2 = arith.constant 0 : index
    %1 = vector.load %arg4[%c0_1, %c0_2] : memref<1x2048xf32, #tpu.memory_space<vmem>>, vector<1x2048xf32>
    %2 = vector.extract_strided_slice %0 {offsets = [0, 0], sizes = [2, 1], strides = [1, 1]} : vector<2x4xf32> to vector<2x1xf32>
    %c0_3 = arith.constant 0 : index
    %c0_4 = arith.constant 0 : index
    %3 = vector.load %arg3[%c0_3, %c0_4] : memref<4x2048xf32, #tpu.memory_space<vmem>>, vector<1x2048xf32>
    %4 = vector.broadcast %2 : vector<2x1xf32> to vector<2x2048xf32>
    %5 = vector.broadcast %3 : vector<1x2048xf32> to vector<2x2048xf32>
    %6 = arith.mulf %4, %5 : vector<2x2048xf32>
    %7 = vector.broadcast %1 : vector<1x2048xf32> to vector<2x2048xf32>
    %8 = arith.addf %7, %6 : vector<2x2048xf32>
    %9 = vector.extract_strided_slice %0 {offsets = [0, 1], sizes = [2, 1], strides = [1, 1]} : vector<2x4xf32> to vector<2x1xf32>
    %c1 = arith.constant 1 : index
    %c0_5 = arith.constant 0 : index
    %10 = vector.load %arg3[%c1, %c0_5] : memref<4x2048xf32, #tpu.memory_space<vmem>>, vector<1x2048xf32>
    %11 = vector.broadcast %9 : vector<2x1xf32> to vector<2x2048xf32>
    %12 = vector.broadcast %10 : vector<1x2048xf32> to vector<2x2048xf32>
    %13 = arith.mulf %11, %12 : vector<2x2048xf32>
    %14 = arith.addf %8, %13 : vector<2x2048xf32>
    %15 = vector.extract_strided_slice %0 {offsets = [0, 2], sizes = [2, 1], strides = [1, 1]} : vector<2x4xf32> to vector<2x1xf32>
    %c2 = arith.constant 2 : index
    %c0_6 = arith.constant 0 : index
    %16 = vector.load %arg3[%c2, %c0_6] : memref<4x2048xf32, #tpu.memory_space<vmem>>, vector<1x2048xf32>
    %17 = vector.broadcast %15 : vector<2x1xf32> to vector<2x2048xf32>
    %18 = vector.broadcast %16 : vector<1x2048xf32> to vector<2x2048xf32>
    %19 = arith.mulf %17, %18 : vector<2x2048xf32>
    %20 = arith.addf %14, %19 : vector<2x2048xf32>
    %21 = vector.extract_strided_slice %0 {offsets = [0, 3], sizes = [2, 1], strides = [1, 1]} : vector<2x4xf32> to vector<2x1xf32>
    %c3 = arith.constant 3 : index
    %c0_7 = arith.constant 0 : index
    %22 = vector.load %arg3[%c3, %c0_7] : memref<4x2048xf32, #tpu.memory_space<vmem>>, vector<1x2048xf32>
    %23 = vector.broadcast %21 : vector<2x1xf32> to vector<2x2048xf32>
    %24 = vector.broadcast %22 : vector<1x2048xf32> to vector<2x2048xf32>
    %25 = arith.mulf %23, %24 : vector<2x2048xf32>
    %26 = arith.addf %20, %25 : vector<2x2048xf32>
    %c0_8 = arith.constant 0 : index
    %c0_9 = arith.constant 0 : index
    %27 = vector.load %arg6[%c0_8, %c0_9] : memref<2048x3xf32, #tpu.memory_space<vmem>>, vector<2048x3xf32>
    %cst = arith.constant dense<0.000000e+00> : vector<2x3xf32>
    %28 = tpu.matmul %26, %27, %cst {dimension_numbers = #tpu.dot_dimension_numbers<[1], [0], [0], [1], [0, 0, 1, 1], [], []>} : vector<2x2048xf32>, vector<2048x3xf32>, vector<2x3xf32> -> vector<2x3xf32>
    %c0_10 = arith.constant 0 : index
    %c0_11 = arith.constant 0 : index
    %29 = vector.load %arg2[%c0_10, %c0_11] : memref<3x216xf32, #tpu.memory_space<vmem>>, vector<3x216xf32>
    %c0_12 = arith.constant 0 : index
    %c0_13 = arith.constant 0 : index
    %30 = vector.load %arg5[%c0_12, %c0_13] : memref<3x3xf32, #tpu.memory_space<vmem>>, vector<1x1xf32>
    %31 = vector.extract_strided_slice %29 {offsets = [0, 0], sizes = [1, 216], strides = [1, 1]} : vector<3x216xf32> to vector<1x216xf32>
    %32 = vector.broadcast %30 : vector<1x1xf32> to vector<1x216xf32>
    %33 = arith.mulf %32, %31 : vector<1x216xf32>
    %c1_14 = arith.constant 1 : index
    %c0_15 = arith.constant 0 : index
    %34 = vector.load %arg5[%c1_14, %c0_15] : memref<3x3xf32, #tpu.memory_space<vmem>>, vector<1x1xf32>
    %35 = vector.extract_strided_slice %29 {offsets = [1, 0], sizes = [1, 216], strides = [1, 1]} : vector<3x216xf32> to vector<1x216xf32>
    %36 = vector.broadcast %34 : vector<1x1xf32> to vector<1x216xf32>
    %37 = arith.mulf %36, %35 : vector<1x216xf32>
    %38 = arith.addf %33, %37 : vector<1x216xf32>
    %c2_16 = arith.constant 2 : index
    %c0_17 = arith.constant 0 : index
    %39 = vector.load %arg5[%c2_16, %c0_17] : memref<3x3xf32, #tpu.memory_space<vmem>>, vector<1x1xf32>
    %40 = vector.extract_strided_slice %29 {offsets = [2, 0], sizes = [1, 216], strides = [1, 1]} : vector<3x216xf32> to vector<1x216xf32>
    %41 = vector.broadcast %39 : vector<1x1xf32> to vector<1x216xf32>
    %42 = arith.mulf %41, %40 : vector<1x216xf32>
    %43 = arith.addf %38, %42 : vector<1x216xf32>
    %44 = vector.extract_strided_slice %28 {offsets = [0, 0], sizes = [2, 1], strides = [1, 1]} : vector<2x3xf32> to vector<2x1xf32>
    %45 = vector.broadcast %43 : vector<1x216xf32> to vector<2x216xf32>
    %46 = vector.broadcast %44 : vector<2x1xf32> to vector<2x216xf32>
    %47 = arith.addf %45, %46 : vector<2x216xf32>
    %c0_18 = arith.constant 0 : index
    %c0_19 = arith.constant 0 : index
    %48 = vector.load %arg7[%c0_18, %c0_19] : memref<1x3xf32, #tpu.memory_space<vmem>>, vector<1x1xf32>
    %49 = vector.broadcast %48 : vector<1x1xf32> to vector<2x216xf32>
    %50 = arith.addf %47, %49 : vector<2x216xf32>
    %c0_20 = arith.constant 0 : index
    %c0_21 = arith.constant 0 : index
    %c0_22 = arith.constant 0 : index
    %51 = vector.load %arg17[%c0_20, %c0_21, %c0_22] : memref<3x2x216xf32, #tpu.memory_space<vmem>>, vector<1x2x216xf32>
    %52 = vector.shape_cast %51 : vector<1x2x216xf32> to vector<2x216xf32>
    %53 = vector.shape_cast %50 : vector<2x216xf32> to vector<1x2x216xf32>
    tpu.vector_store %arg17[%c0_20, %c0_21, %c0_22], %53 {strides = array<i32>} : memref<3x2x216xf32, #tpu.memory_space<vmem>>, vector<1x2x216xf32>,
    %c0_23 = arith.constant 0 : index
    %c1_24 = arith.constant 1 : index
    %54 = vector.load %arg5[%c0_23, %c1_24] : memref<3x3xf32, #tpu.memory_space<vmem>>, vector<1x1xf32>
    %55 = vector.extract_strided_slice %29 {offsets = [0, 0], sizes = [1, 216], strides = [1, 1]} : vector<3x216xf32> to vector<1x216xf32>
    %56 = vector.broadcast %54 : vector<1x1xf32> to vector<1x216xf32>
    %57 = arith.mulf %56, %55 : vector<1x216xf32>
    %c1_25 = arith.constant 1 : index
    %c1_26 = arith.constant 1 : index
    %58 = vector.load %arg5[%c1_25, %c1_26] : memref<3x3xf32, #tpu.memory_space<vmem>>, vector<1x1xf32>
    %59 = vector.extract_strided_slice %29 {offsets = [1, 0], sizes = [1, 216], strides = [1, 1]} : vector<3x216xf32> to vector<1x216xf32>
    %60 = vector.broadcast %58 : vector<1x1xf32> to vector<1x216xf32>
    %61 = arith.mulf %60, %59 : vector<1x216xf32>
    %62 = arith.addf %57, %61 : vector<1x216xf32>
    %c2_27 = arith.constant 2 : index
    %c1_28 = arith.constant 1 : index
    %63 = vector.load %arg5[%c2_27, %c1_28] : memref<3x3xf32, #tpu.memory_space<vmem>>, vector<1x1xf32>
    %64 = vector.extract_strided_slice %29 {offsets = [2, 0], sizes = [1, 216], strides = [1, 1]} : vector<3x216xf32> to vector<1x216xf32>
    %65 = vector.broadcast %63 : vector<1x1xf32> to vector<1x216xf32>
    %66 = arith.mulf %65, %64 : vector<1x216xf32>
    %67 = arith.addf %62, %66 : vector<1x216xf32>
    %68 = vector.extract_strided_slice %28 {offsets = [0, 1], sizes = [2, 1], strides = [1, 1]} : vector<2x3xf32> to vector<2x1xf32>
    %69 = vector.broadcast %67 : vector<1x216xf32> to vector<2x216xf32>
    %70 = vector.broadcast %68 : vector<2x1xf32> to vector<2x216xf32>
    %71 = arith.addf %69, %70 : vector<2x216xf32>
    %c0_29 = arith.constant 0 : index
    %c1_30 = arith.constant 1 : index
    %72 = vector.load %arg7[%c0_29, %c1_30] : memref<1x3xf32, #tpu.memory_space<vmem>>, vector<1x1xf32>
    %73 = vector.broadcast %72 : vector<1x1xf32> to vector<2x216xf32>
    %74 = arith.addf %71, %73 : vector<2x216xf32>
    %c1_31 = arith.constant 1 : index
    %c0_32 = arith.constant 0 : index
    %c0_33 = arith.constant 0 : index
    %75 = vector.load %arg17[%c1_31, %c0_32, %c0_33] : memref<3x2x216xf32, #tpu.memory_space<vmem>>, vector<1x2x216xf32>
    %76 = vector.shape_cast %75 : vector<1x2x216xf32> to vector<2x216xf32>
    %77 = vector.shape_cast %74 : vector<2x216xf32> to vector<1x2x216xf32>
    tpu.vector_store %arg17[%c1_31, %c0_32, %c0_33], %77 {strides = array<i32>} : memref<3x2x216xf32, #tpu.memory_space<vmem>>, vector<1x2x216xf32>,
    %c0_34 = arith.constant 0 : index
    %c2_35 = arith.constant 2 : index
    %78 = vector.load %arg5[%c0_34, %c2_35] : memref<3x3xf32, #tpu.memory_space<vmem>>, vector<1x1xf32>
    %79 = vector.extract_strided_slice %29 {offsets = [0, 0], sizes = [1, 216], strides = [1, 1]} : vector<3x216xf32> to vector<1x216xf32>
    %80 = vector.broadcast %78 : vector<1x1xf32> to vector<1x216xf32>
    %81 = arith.mulf %80, %79 : vector<1x216xf32>
    %c1_36 = arith.constant 1 : index
    %c2_37 = arith.constant 2 : index
    %82 = vector.load %arg5[%c1_36, %c2_37] : memref<3x3xf32, #tpu.memory_space<vmem>>, vector<1x1xf32>
    %83 = vector.extract_strided_slice %29 {offsets = [1, 0], sizes = [1, 216], strides = [1, 1]} : vector<3x216xf32> to vector<1x216xf32>
    %84 = vector.broadcast %82 : vector<1x1xf32> to vector<1x216xf32>
    %85 = arith.mulf %84, %83 : vector<1x216xf32>
    %86 = arith.addf %81, %85 : vector<1x216xf32>
    %c2_38 = arith.constant 2 : index
    %c2_39 = arith.constant 2 : index
    %87 = vector.load %arg5[%c2_38, %c2_39] : memref<3x3xf32, #tpu.memory_space<vmem>>, vector<1x1xf32>
    %88 = vector.extract_strided_slice %29 {offsets = [2, 0], sizes = [1, 216], strides = [1, 1]} : vector<3x216xf32> to vector<1x216xf32>
    %89 = vector.broadcast %87 : vector<1x1xf32> to vector<1x216xf32>
    %90 = arith.mulf %89, %88 : vector<1x216xf32>
    %91 = arith.addf %86, %90 : vector<1x216xf32>
    %92 = vector.extract_strided_slice %28 {offsets = [0, 2], sizes = [2, 1], strides = [1, 1]} : vector<2x3xf32> to vector<2x1xf32>
    %93 = vector.broadcast %91 : vector<1x216xf32> to vector<2x216xf32>
    %94 = vector.broadcast %92 : vector<2x1xf32> to vector<2x216xf32>
    %95 = arith.addf %93, %94 : vector<2x216xf32>
    %c0_40 = arith.constant 0 : index
    %c2_41 = arith.constant 2 : index
    %96 = vector.load %arg7[%c0_40, %c2_41] : memref<1x3xf32, #tpu.memory_space<vmem>>, vector<1x1xf32>
    %97 = vector.broadcast %96 : vector<1x1xf32> to vector<2x216xf32>
    %98 = arith.addf %95, %97 : vector<2x216xf32>
    %c2_42 = arith.constant 2 : index
    %c0_43 = arith.constant 0 : index
    %c0_44 = arith.constant 0 : index
    %99 = vector.load %arg17[%c2_42, %c0_43, %c0_44] : memref<3x2x216xf32, #tpu.memory_space<vmem>>, vector<1x2x216xf32>
    %100 = vector.shape_cast %99 : vector<1x2x216xf32> to vector<2x216xf32>
    %101 = vector.shape_cast %98 : vector<2x216xf32> to vector<1x2x216xf32>
    tpu.vector_store %arg17[%c2_42, %c0_43, %c0_44], %101 {strides = array<i32>} : memref<3x2x216xf32, #tpu.memory_space<vmem>>, vector<1x2x216xf32>,
    %c0_45 = arith.constant 0 : index
    %c0_46 = arith.constant 0 : index
    %102 = vector.load %arg8[%c0_45, %c0_46] : memref<3x1xf32, #tpu.memory_space<vmem>>, vector<1x1xf32>
    %103 = vector.broadcast %102 : vector<1x1xf32> to vector<2x216xf32>
    %104 = arith.mulf %50, %103 : vector<2x216xf32>
    %c1_47 = arith.constant 1 : index
    %c0_48 = arith.constant 0 : index
    %105 = vector.load %arg8[%c1_47, %c0_48] : memref<3x1xf32, #tpu.memory_space<vmem>>, vector<1x1xf32>
    %106 = vector.broadcast %105 : vector<1x1xf32> to vector<2x216xf32>
    %107 = arith.mulf %74, %106 : vector<2x216xf32>
    %108 = arith.addf %104, %107 : vector<2x216xf32>
    %c2_49 = arith.constant 2 : index
    %c0_50 = arith.constant 0 : index
    %109 = vector.load %arg8[%c2_49, %c0_50] : memref<3x1xf32, #tpu.memory_space<vmem>>, vector<1x1xf32>
    %110 = vector.broadcast %109 : vector<1x1xf32> to vector<2x216xf32>
    %111 = arith.mulf %98, %110 : vector<2x216xf32>
    %112 = arith.addf %108, %111 : vector<2x216xf32>
    %c0_51 = arith.constant 0 : index
    %c0_52 = arith.constant 0 : index
    %113 = vector.load %arg9[%c0_51, %c0_52] : memref<1x1xf32, #tpu.memory_space<vmem>>, vector<1x1xf32>
    %114 = vector.broadcast %113 : vector<1x1xf32> to vector<2x216xf32>
    %115 = arith.addf %112, %114 : vector<2x216xf32>
    %c0_53 = arith.constant 0 : index
    %c0_54 = arith.constant 0 : index
    %116 = vector.load %arg10[%c0_53, %c0_54] : memref<216x150xf32, #tpu.memory_space<vmem>>, vector<216x150xf32>
    %cst_55 = arith.constant dense<0.000000e+00> : vector<2x150xf32>
    %117 = tpu.matmul %115, %116, %cst_55 {dimension_numbers = #tpu.dot_dimension_numbers<[1], [0], [0], [1], [0, 0, 1, 1], [], []>} : vector<2x216xf32>, vector<216x150xf32>, vector<2x150xf32> -> vector<2x150xf32>
    %c0_56 = arith.constant 0 : index
    %c0_57 = arith.constant 0 : index
    %118 = vector.load %arg11[%c0_56, %c0_57] : memref<1x150xf32, #tpu.memory_space<vmem>>, vector<1x150xf32>
    %119 = vector.broadcast %118 : vector<1x150xf32> to vector<2x150xf32>
    %120 = arith.addf %117, %119 : vector<2x150xf32>
    %c0_58 = arith.constant 0 : index
    %c0_59 = arith.constant 0 : index
    %121 = vector.load %arg12[%c0_58, %c0_59] : memref<150x3xf32, #tpu.memory_space<vmem>>, vector<150x3xf32>
    %cst_60 = arith.constant dense<0.000000e+00> : vector<2x3xf32>
    %122 = tpu.matmul %120, %121, %cst_60 {dimension_numbers = #tpu.dot_dimension_numbers<[1], [0], [0], [1], [0, 0, 1, 1], [], []>} : vector<2x150xf32>, vector<150x3xf32>, vector<2x3xf32> -> vector<2x3xf32>
    %c0_61 = arith.constant 0 : index
    %c0_62 = arith.constant 0 : index
    %123 = vector.load %arg13[%c0_61, %c0_62] : memref<1x3xf32, #tpu.memory_space<vmem>>, vector<1x3xf32>
    %124 = vector.broadcast %123 : vector<1x3xf32> to vector<2x3xf32>
    %125 = arith.addf %122, %124 : vector<2x3xf32>
    %c0_63 = arith.constant 0 : index
    %c0_64 = arith.constant 0 : index
    %126 = vector.load %arg16[%c0_63, %c0_64] : memref<2x3xf32, #tpu.memory_space<vmem>>, vector<2x3xf32>
    tpu.vector_store %arg16[%c0_63, %c0_64], %125 {strides = array<i32>} : memref<2x3xf32, #tpu.memory_space<vmem>>, vector<2x3xf32>,
    %c0_65 = arith.constant 0 : index
    %c0_66 = arith.constant 0 : index
    %127 = vector.load %arg14[%c0_65, %c0_66] : memref<216x778xf32, #tpu.memory_space<vmem>>, vector<216x778xf32>
    %cst_67 = arith.constant dense<0.000000e+00> : vector<2x778xf32>
    %128 = tpu.matmul %50, %127, %cst_67 {dimension_numbers = #tpu.dot_dimension_numbers<[1], [0], [0], [1], [0, 0, 1, 1], [], []>} : vector<2x216xf32>, vector<216x778xf32>, vector<2x778xf32> -> vector<2x778xf32>
    %c0_68 = arith.constant 0 : index
    %c0_69 = arith.constant 0 : index
    %129 = vector.load %arg15[%c0_68, %c0_69] : memref<1x778xf32, #tpu.memory_space<vmem>>, vector<1x778xf32>
    %130 = vector.broadcast %129 : vector<1x778xf32> to vector<2x778xf32>
    %131 = arith.addf %128, %130 : vector<2x778xf32>
    %c0_70 = arith.constant 0 : index
    %c0_71 = arith.constant 0 : index
    %c0_72 = arith.constant 0 : index
    %132 = vector.load %arg18[%c0_70, %c0_71, %c0_72] : memref<3x2x778xf32, #tpu.memory_space<vmem>>, vector<1x2x778xf32>
    %133 = vector.shape_cast %132 : vector<1x2x778xf32> to vector<2x778xf32>
    %134 = vector.shape_cast %131 : vector<2x778xf32> to vector<1x2x778xf32>
    tpu.vector_store %arg18[%c0_70, %c0_71, %c0_72], %134 {strides = array<i32>} : memref<3x2x778xf32, #tpu.memory_space<vmem>>, vector<1x2x778xf32>,
    %c0_73 = arith.constant 0 : index
    %c0_74 = arith.constant 0 : index
    %135 = vector.load %arg14[%c0_73, %c0_74] : memref<216x778xf32, #tpu.memory_space<vmem>>, vector<216x778xf32>
    %cst_75 = arith.constant dense<0.000000e+00> : vector<2x778xf32>
    %136 = tpu.matmul %74, %135, %cst_75 {dimension_numbers = #tpu.dot_dimension_numbers<[1], [0], [0], [1], [0, 0, 1, 1], [], []>} : vector<2x216xf32>, vector<216x778xf32>, vector<2x778xf32> -> vector<2x778xf32>
    %c0_76 = arith.constant 0 : index
    %c0_77 = arith.constant 0 : index
    %137 = vector.load %arg15[%c0_76, %c0_77] : memref<1x778xf32, #tpu.memory_space<vmem>>, vector<1x778xf32>
    %138 = vector.broadcast %137 : vector<1x778xf32> to vector<2x778xf32>
    %139 = arith.addf %136, %138 : vector<2x778xf32>
    %c1_78 = arith.constant 1 : index
    %c0_79 = arith.constant 0 : index
    %c0_80 = arith.constant 0 : index
    %140 = vector.load %arg18[%c1_78, %c0_79, %c0_80] : memref<3x2x778xf32, #tpu.memory_space<vmem>>, vector<1x2x778xf32>
    %141 = vector.shape_cast %140 : vector<1x2x778xf32> to vector<2x778xf32>
    %142 = vector.shape_cast %139 : vector<2x778xf32> to vector<1x2x778xf32>
    tpu.vector_store %arg18[%c1_78, %c0_79, %c0_80], %142 {strides = array<i32>} : memref<3x2x778xf32, #tpu.memory_space<vmem>>, vector<1x2x778xf32>,
    %c0_81 = arith.constant 0 : index
    %c0_82 = arith.constant 0 : index
    %143 = vector.load %arg14[%c0_81, %c0_82] : memref<216x778xf32, #tpu.memory_space<vmem>>, vector<216x778xf32>
    %cst_83 = arith.constant dense<0.000000e+00> : vector<2x778xf32>
    %144 = tpu.matmul %98, %143, %cst_83 {dimension_numbers = #tpu.dot_dimension_numbers<[1], [0], [0], [1], [0, 0, 1, 1], [], []>} : vector<2x216xf32>, vector<216x778xf32>, vector<2x778xf32> -> vector<2x778xf32>
    %c0_84 = arith.constant 0 : index
    %c0_85 = arith.constant 0 : index
    %145 = vector.load %arg15[%c0_84, %c0_85] : memref<1x778xf32, #tpu.memory_space<vmem>>, vector<1x778xf32>
    %146 = vector.broadcast %145 : vector<1x778xf32> to vector<2x778xf32>
    %147 = arith.addf %144, %146 : vector<2x778xf32>
    %c2_86 = arith.constant 2 : index
    %c0_87 = arith.constant 0 : index
    %c0_88 = arith.constant 0 : index
    %148 = vector.load %arg18[%c2_86, %c0_87, %c0_88] : memref<3x2x778xf32, #tpu.memory_space<vmem>>, vector<1x2x778xf32>
    %149 = vector.shape_cast %148 : vector<1x2x778xf32> to vector<2x778xf32>
    %150 = vector.shape_cast %147 : vector<2x778xf32> to vector<1x2x778xf32>
    tpu.vector_store %arg18[%c2_86, %c0_87, %c0_88], %150 {strides = array<i32>} : memref<3x2x778xf32, #tpu.memory_space<vmem>>, vector<1x2x778xf32>,
    return
  }
  func.func @transform_0(%arg0: i32) -> (i32, i32) {
    %c0_i32 = arith.constant 0 : i32
    %c0_i32_0 = arith.constant 0 : i32
    return %arg0, %c0_i32 : i32, i32
  }
  func.func @transform_1(%arg0: i32) -> (i32, i32) {
    %c0_i32 = arith.constant 0 : i32
    %c0_i32_0 = arith.constant 0 : i32
    %c0_i32_1 = arith.constant 0 : i32
    return %c0_i32, %c0_i32_0 : i32, i32
  }
  func.func @transform_2(%arg0: i32) -> (i32, i32) {
    %c0_i32 = arith.constant 0 : i32
    %c0_i32_0 = arith.constant 0 : i32
    %c0_i32_1 = arith.constant 0 : i32
    return %c0_i32, %c0_i32_0 : i32, i32
  }
  func.func @transform_3(%arg0: i32) -> (i32, i32) {
    %c0_i32 = arith.constant 0 : i32
    %c0_i32_0 = arith.constant 0 : i32
    %c0_i32_1 = arith.constant 0 : i32
    return %c0_i32, %c0_i32_0 : i32, i32
  }
  func.func @transform_4(%arg0: i32) -> (i32, i32) {
    %c0_i32 = arith.constant 0 : i32
    %c0_i32_0 = arith.constant 0 : i32
    %c0_i32_1 = arith.constant 0 : i32
    return %c0_i32, %c0_i32_0 : i32, i32
  }
  func.func @transform_5(%arg0: i32) -> (i32, i32) {
    %c0_i32 = arith.constant 0 : i32
    %c0_i32_0 = arith.constant 0 : i32
    %c0_i32_1 = arith.constant 0 : i32
    return %c0_i32, %c0_i32_0 : i32, i32
  }
  func.func @transform_6(%arg0: i32) -> (i32, i32) {
    %c0_i32 = arith.constant 0 : i32
    %c0_i32_0 = arith.constant 0 : i32
    %c0_i32_1 = arith.constant 0 : i32
    return %c0_i32, %c0_i32_0 : i32, i32
  }
  func.func @transform_7(%arg0: i32) -> (i32, i32) {
    %c0_i32 = arith.constant 0 : i32
    %c0_i32_0 = arith.constant 0 : i32
    %c0_i32_1 = arith.constant 0 : i32
    return %c0_i32, %c0_i32_0 : i32, i32
  }
  func.func @transform_8(%arg0: i32) -> (i32, i32) {
    %c0_i32 = arith.constant 0 : i32
    %c0_i32_0 = arith.constant 0 : i32
    %c0_i32_1 = arith.constant 0 : i32
    return %c0_i32, %c0_i32_0 : i32, i32
  }
  func.func @transform_9(%arg0: i32) -> (i32, i32) {
    %c0_i32 = arith.constant 0 : i32
    %c0_i32_0 = arith.constant 0 : i32
    %c0_i32_1 = arith.constant 0 : i32
    return %c0_i32, %c0_i32_0 : i32, i32
  }
  func.func @transform_10(%arg0: i32) -> (i32, i32) {
    %c0_i32 = arith.constant 0 : i32
    %c0_i32_0 = arith.constant 0 : i32
    %c0_i32_1 = arith.constant 0 : i32
    return %c0_i32, %c0_i32_0 : i32, i32
  }
  func.func @transform_11(%arg0: i32) -> (i32, i32) {
    %c0_i32 = arith.constant 0 : i32
    %c0_i32_0 = arith.constant 0 : i32
    %c0_i32_1 = arith.constant 0 : i32
    return %c0_i32, %c0_i32_0 : i32, i32
  }
  func.func @transform_12(%arg0: i32) -> (i32, i32) {
    %c0_i32 = arith.constant 0 : i32
    %c0_i32_0 = arith.constant 0 : i32
    %c0_i32_1 = arith.constant 0 : i32
    return %c0_i32, %c0_i32_0 : i32, i32
  }
  func.func @transform_13(%arg0: i32) -> (i32, i32) {
    %c0_i32 = arith.constant 0 : i32
    %c0_i32_0 = arith.constant 0 : i32
    %c0_i32_1 = arith.constant 0 : i32
    return %c0_i32, %c0_i32_0 : i32, i32
  }
  func.func @transform_14(%arg0: i32) -> (i32, i32) {
    %c0_i32 = arith.constant 0 : i32
    %c0_i32_0 = arith.constant 0 : i32
    %c0_i32_1 = arith.constant 0 : i32
    return %c0_i32, %c0_i32_0 : i32, i32
  }
  func.func @transform_15(%arg0: i32) -> (i32, i32) {
    %c0_i32 = arith.constant 0 : i32
    %c0_i32_0 = arith.constant 0 : i32
    return %arg0, %c0_i32 : i32, i32
  }
  func.func @transform_16(%arg0: i32) -> (i32, i32, i32) {
    %c0_i32 = arith.constant 0 : i32
    %c0_i32_0 = arith.constant 0 : i32
    %c0_i32_1 = arith.constant 0 : i32
    return %c0_i32, %arg0, %c0_i32_0 : i32, i32, i32
  }
  func.func @transform_17(%arg0: i32) -> (i32, i32, i32) {
    %c0_i32 = arith.constant 0 : i32
    %c0_i32_0 = arith.constant 0 : i32
    %c0_i32_1 = arith.constant 0 : i32
    return %c0_i32, %arg0, %c0_i32_0 : i32, i32, i32
  }
}

</mosaic_0001>

<bundles_post_ra>
// kernel: tpu_custom_call.1
= control target key start
LH: loop header
LB: loop body
LE: loop exit
PB: predicated region body
PF: predicated region fallthrough
CT: control target
= control target key end

     0   :  { %s6502_s0 = inlined_call_operand.vmem [shape: f32[2,4], index: 0, kind: input, shape index: {}]   ;;  %s6503_s1 = inlined_call_operand.vmem [shape: f32[3,216], index: 1, kind: input, shape index: {}]   ;;  %s6504_s2 = inlined_call_operand.vmem [shape: f32[4,2048], index: 2, kind: input, shape index: {}]   ;;  %s6505_s3 = inlined_call_operand.vmem [shape: f32[1,2048], index: 3, kind: input, shape index: {}]   ;;  %s6506_s4 = inlined_call_operand.vmem [shape: f32[3,3], index: 4, kind: input, shape index: {}]   ;;  %s6507_s5 = inlined_call_operand.vmem [shape: f32[2048,3], index: 5, kind: input, shape index: {}]   ;;  %s6508_s6 = inlined_call_operand.vmem [shape: f32[1,3], index: 6, kind: input, shape index: {}]   ;;  %s6509_s7 = inlined_call_operand.vmem [shape: f32[3,1], index: 7, kind: input, shape index: {}]   ;;  %s6510_s8 = inlined_call_operand.<no memory space> [shape: f32[1,1], index: 8, kind: input, shape index: {}]   ;;  %s6511_s9 = inlined_call_operand.vmem [shape: f32[216,150], index: 9, kind: input, shape index: {}]   ;;  %s6512_s10 = inlined_call_operand.vmem [shape: f32[1,150], index: 10, kind: input, shape index: {}]   ;;  %s6513_s11 = inlined_call_operand.vmem [shape: f32[150,3], index: 11, kind: input, shape index: {}]   ;;  %s6514_s12 = inlined_call_operand.vmem [shape: f32[1,3], index: 12, kind: input, shape index: {}]   ;;  %s6515_s13 = inlined_call_operand.vmem [shape: f32[216,778], index: 13, kind: input, shape index: {}]   ;;  %s6516_s14 = inlined_call_operand.vmem [shape: f32[1,778], index: 14, kind: input, shape index: {}]   ;;  %s6517_s15 = inlined_call_operand.hbm [shape: f32[2,3], index: 15, kind: output, shape index: {0}]   ;;  %s6518_s16 = inlined_call_operand.hbm [shape: f32[3,2,216], index: 16, kind: output, shape index: {1}]   ;;  %s6519_s17 = inlined_call_operand.hbm [shape: f32[3,2,778], index: 17, kind: output, shape index: {2}]  }
   0x1   :  { %6584 = sst [smem:[#allocation50_spill]] %s6502_s0  ;;  %v23_v0 = vstv %s6510_s8 }
   0x2   :  { %6585 = sst [smem:[#allocation51_spill]] %s6503_s1  ;;  %24 = vst [vmem:[#allocation2] sm:$0x1] %v23_v0 }
   0x3   :  { %25 = vsyncpa [#allocation4], 0  ;;  %s6586_s28 = sld [smem:[#allocation50_spill]]  ;;  %v3120_v2 = vmov 0   ;;  %v3121_v3 = vmov 2   ;;  %v405_v4 = vld [vmem:[%s6507_s5 + $0x78] sm:$0xff] }
   0x4   :  { %3022 = vset.pattern.permute.xlu0 %v3120_v2  ;;  %3024 = vset.pattern.permute.xlu1 %v3121_v3  ;;  %v421_v5 = vld [vmem:[%s6507_s5 + $0xf8] sm:$0xff]  ;;  %v404_v8 = vld [vmem:[%s6507_s5 + $0x70] sm:$0xff]  ;;  %v403_v12 = vld [vmem:[%s6507_s5 + $0x68] sm:$0xff]  ;;  %v3122_v20 = vmov 1   ;;  %v3123_v21 = vmov 3  }
   0x5   :  { %v437_v6 = vld [vmem:[%s6507_s5 + $0x178] sm:$0xff]  ;;  %v420_v9 = vld [vmem:[%s6507_s5 + $0xf0] sm:$0xff]  ;;  %646 = vmatpush.msra.mxu0 %v405_v4  ;;  %666 = vmatpush.msra.mxu1 %v421_v5  ;;  %v419_v13 = vld [vmem:[%s6507_s5 + $0xe8] sm:$0xff] }
   0x6   :  { %v453_v7 = vld [vmem:[%s6507_s5 + $0x1f8] sm:$0xff]  ;;  %v436_v10 = vld [vmem:[%s6507_s5 + $0x170] sm:$0xff]  ;;  %686 = vmatpush.msra.mxu2 %v437_v6  ;;  %v435_v14 = vld [vmem:[%s6507_s5 + $0x168] sm:$0xff] }
   0x7   :  { %v452_v11 = vld [vmem:[%s6507_s5 + $0x1f0] sm:$0xff]  ;;  %706 = vmatpush.msra.mxu3 %v453_v7  ;;  %647 = vmatpush.msra.mxu0 %v404_v8  ;;  %v451_v15 = vld [vmem:[%s6507_s5 + $0x1e8] sm:$0xff]  ;;  %v402_v16 = vld [vmem:[%s6507_s5 + $0x60] sm:$0xff] }
   0x8   :  { %667 = vmatpush.msra.mxu1 %v420_v9  ;;  %687 = vmatpush.msra.mxu2 %v436_v10  ;;  %v418_v17 = vld [vmem:[%s6507_s5 + $0xe0] sm:$0xff]  ;;  %v401_v22 = vld [vmem:[%s6507_s5 + $0x58] sm:$0xff]  ;;  %v400_v26 = vld [vmem:[%s6507_s5 + $0x50] sm:$0xff] }
   0x9   :  { %v57_v1 = vld [vmem:[%s6586_s28] sm:$0x3]  ;;  %707 = vmatpush.msra.mxu3 %v452_v11  ;;  %648 = vmatpush.msra.mxu0 %v403_v12  ;;  %v417_v23 = vld [vmem:[%s6507_s5 + $0xd8] sm:$0xff]  ;;  %v416_v27 = vld [vmem:[%s6507_s5 + $0xd0] sm:$0xff] }
   0xa   :  { %65 = vperm.xlu0 %3022, %v57_v1   ;;  %247 = vperm.xlu1 %3024, %v57_v1   ;;  %v434_v18 = vld [vmem:[%s6507_s5 + $0x160] sm:$0xff]  ;;  %v433_v24 = vld [vmem:[%s6507_s5 + $0x158] sm:$0xff]  ;;  %v432_v28 = vld [vmem:[%s6507_s5 + $0x150] sm:$0xff] }
   0xb   :  { %668 = vmatpush.msra.mxu1 %v419_v13  ;;  %688 = vmatpush.msra.mxu2 %v435_v14  ;;  %v450_v19 = vld [vmem:[%s6507_s5 + $0x1e0] sm:$0xff]  ;;  %v449_v25 = vld [vmem:[%s6507_s5 + $0x1d8] sm:$0xff]  ;;  %v448_v29 = vld [vmem:[%s6507_s5 + $0x1d0] sm:$0xff] }
   0xc   :  { %708 = vmatpush.msra.mxu3 %v451_v15  ;;  %649 = vmatpush.msra.mxu0 %v402_v16  ;;  %v399_v30 = vld [vmem:[%s6507_s5 + $0x48] sm:$0xff]  ;;  %v398_v34 = vld [vmem:[%s6507_s5 + $0x40] sm:$0xff]  ;;  %v397_v38 = vld [vmem:[%s6507_s5 + $0x38] sm:$0xff] }
   0xd   :  { %669 = vmatpush.msra.mxu1 %v418_v17  ;;  %689 = vmatpush.msra.mxu2 %v434_v18  ;;  %v415_v31 = vld [vmem:[%s6507_s5 + $0xc8] sm:$0xff]  ;;  %v414_v35 = vld [vmem:[%s6507_s5 + $0xc0] sm:$0xff]  ;;  %v413_v39 = vld [vmem:[%s6507_s5 + $0xb8] sm:$0xff] }
   0xe   :  { %709 = vmatpush.msra.mxu3 %v450_v19  ;;  %650 = vmatpush.msra.mxu0 %v401_v22  ;;  %v431_v32 = vld [vmem:[%s6507_s5 + $0x148] sm:$0xff]  ;;  %v430_v36 = vld [vmem:[%s6507_s5 + $0x140] sm:$0xff]  ;;  %v429_v40 = vld [vmem:[%s6507_s5 + $0x138] sm:$0xff] }
   0xf   :  { %670 = vmatpush.msra.mxu1 %v417_v23  ;;  %690 = vmatpush.msra.mxu2 %v433_v24  ;;  %v447_v33 = vld [vmem:[%s6507_s5 + $0x1c8] sm:$0xff]  ;;  %v446_v37 = vld [vmem:[%s6507_s5 + $0x1c0] sm:$0xff]  ;;  %v445_v41 = vld [vmem:[%s6507_s5 + $0x1b8] sm:$0xff] }
  0x10   :  { %710 = vmatpush.msra.mxu3 %v449_v25  ;;  %651 = vmatpush.msra.mxu0 %v400_v26  ;;  %v396_v42 = vld [vmem:[%s6507_s5 + $0x30] sm:$0xff]  ;;  %v395_v46 = vld [vmem:[%s6507_s5 + $0x28] sm:$0xff]  ;;  %v394_v50 = vld [vmem:[%s6507_s5 + $0x20] sm:$0xff] }
  0x11   :  { %671 = vmatpush.msra.mxu1 %v416_v27  ;;  %691 = vmatpush.msra.mxu2 %v432_v28  ;;  %v412_v43 = vld [vmem:[%s6507_s5 + $0xb0] sm:$0xff]  ;;  %v411_v47 = vld [vmem:[%s6507_s5 + $0xa8] sm:$0xff]  ;;  %v410_v51 = vld [vmem:[%s6507_s5 + $0xa0] sm:$0xff] }
  0x12   :  { %3023 = vset.pattern.permute.xlu0 %v3122_v20  ;;  %3025 = vset.pattern.permute.xlu1 %v3123_v21  ;;  %v428_v44 = vld [vmem:[%s6507_s5 + $0x130] sm:$0xff]  ;;  %v427_v48 = vld [vmem:[%s6507_s5 + $0x128] sm:$0xff]  ;;  %v426_v52 = vld [vmem:[%s6507_s5 + $0x120] sm:$0xff] }
  0x13   :  { %173 = vperm.xlu0 %3023, %v57_v1   ;;  %321 = vperm.xlu1 %3025, %v57_v1   ;;  %v444_v45 = vld [vmem:[%s6507_s5 + $0x1b0] sm:$0xff]  ;;  %v443_v49 = vld [vmem:[%s6507_s5 + $0x1a8] sm:$0xff]  ;;  %v442_v53 = vld [vmem:[%s6507_s5 + $0x1a0] sm:$0xff] }
  0x14   :  { %711 = vmatpush.msra.mxu3 %v448_v29  ;;  %652 = vmatpush.msra.mxu0 %v399_v30  ;;  %v393_v54 = vld [vmem:[%s6507_s5 + $0x18] sm:$0xff]  ;;  %v392_v58 = vld [vmem:[%s6507_s5 + $0x10] sm:$0xff]  ;;  %v391_v62 = vld [vmem:[%s6507_s5 + $0x8] sm:$0xff] }
  0x15   :  { %672 = vmatpush.msra.mxu1 %v415_v31  ;;  %692 = vmatpush.msra.mxu2 %v431_v32  ;;  %v409_v55 = vld [vmem:[%s6507_s5 + $0x98] sm:$0xff]  ;;  %v408_v59 = vld [vmem:[%s6507_s5 + $0x90] sm:$0xff]  ;;  %v407_v63 = vld [vmem:[%s6507_s5 + $0x88] sm:$0xff] }
  0x16   :  { %712 = vmatpush.msra.mxu3 %v447_v33  ;;  %653 = vmatpush.msra.mxu0 %v398_v34  ;;  %v425_v56 = vld [vmem:[%s6507_s5 + $0x118] sm:$0xff]  ;;  %v424_v60 = vld [vmem:[%s6507_s5 + $0x110] sm:$0xff]  ;;  %v423_v0 = vld [vmem:[%s6507_s5 + $0x108] sm:$0xff] }
  0x17   :  { %673 = vmatpush.msra.mxu1 %v414_v35  ;;  %693 = vmatpush.msra.mxu2 %v430_v36  ;;  %v441_v57 = vld [vmem:[%s6507_s5 + $0x198] sm:$0xff]  ;;  %v440_v61 = vld [vmem:[%s6507_s5 + $0x190] sm:$0xff]  ;;  %v439_v1 = vld [vmem:[%s6507_s5 + $0x188] sm:$0xff] }
  0x18   :  { %713 = vmatpush.msra.mxu3 %v446_v37  ;;  %654 = vmatpush.msra.mxu0 %v397_v38  ;;  %v390_v4 = vld [vmem:[%s6507_s5] sm:$0xff] }
  0x19   :  { %674 = vmatpush.msra.mxu1 %v413_v39  ;;  %694 = vmatpush.msra.mxu2 %v429_v40  ;;  %v406_v5 = vld [vmem:[%s6507_s5 + $0x80] sm:$0xff] }
  0x1a   :  { %714 = vmatpush.msra.mxu3 %v445_v41  ;;  %655 = vmatpush.msra.mxu0 %v396_v42  ;;  %v422_v6 = vld [vmem:[%s6507_s5 + $0x100] sm:$0xff] }
  0x1b   :  { %675 = vmatpush.msra.mxu1 %v412_v43  ;;  %695 = vmatpush.msra.mxu2 %v428_v44  ;;  %v438_v7 = vld [vmem:[%s6507_s5 + $0x180] sm:$0xff] }
  0x1c   :  { %715 = vmatpush.msra.mxu3 %v444_v45  ;;  %656 = vmatpush.msra.mxu0 %v395_v46 }
  0x1d   :  { %676 = vmatpush.msra.mxu1 %v411_v47  ;;  %696 = vmatpush.msra.mxu2 %v427_v48 }
  0x1e   :  { %716 = vmatpush.msra.mxu3 %v443_v49  ;;  %657 = vmatpush.msra.mxu0 %v394_v50 }
  0x1f   :  { %677 = vmatpush.msra.mxu1 %v410_v51  ;;  %697 = vmatpush.msra.mxu2 %v426_v52 }
  0x20   :  { %717 = vmatpush.msra.mxu3 %v442_v53  ;;  %658 = vmatpush.msra.mxu0 %v393_v54 }
  0x21   :  { %678 = vmatpush.msra.mxu1 %v409_v55  ;;  %698 = vmatpush.msra.mxu2 %v425_v56 }
  0x22   :  { %718 = vmatpush.msra.mxu3 %v441_v57  ;;  %659 = vmatpush.msra.mxu0 %v392_v58 }
  0x23   :  { %679 = vmatpush.msra.mxu1 %v408_v59  ;;  %699 = vmatpush.msra.mxu2 %v424_v60 }
  0x24   :  { %719 = vmatpush.msra.mxu3 %v440_v61  ;;  %660 = vmatpush.msra.mxu0 %v391_v62 }
  0x25   :  { %680 = vmatpush.msra.mxu1 %v407_v63 }
  0x26   :  { %26 = vsyncpa [#allocation6], 0  ;;  %700 = vmatpush.msra.mxu2 %v423_v0  ;;  %720 = vmatpush.msra.mxu3 %v439_v1  ;;  %v469_v8 = vld [vmem:[%s6507_s5 + $0x278] sm:$0xff]  ;;  %v468_v12 = vld [vmem:[%s6507_s5 + $0x270] sm:$0xff]  ;;  %vm1029_vm0 = vcmask 1041408   ;;  %vm1032_vm1 = vcmask 715778  }
  0x27   :  { %v485_v9 = vld [vmem:[%s6507_s5 + $0x2f8] sm:$0xff]  ;;  %661 = vmatpush.msra.mxu0 %v390_v4  ;;  %681 = vmatpush.msra.mxu1 %v406_v5  ;;  %v484_v13 = vld [vmem:[%s6507_s5 + $0x2f0] sm:$0xff]  ;;  %v467_v16 = vld [vmem:[%s6507_s5 + $0x268] sm:$0xff]  ;;  %vm1233_vm3 = vcmask 719872   ;;  %vm1344_vm4 = vcmask 1045504   ;;  %vm1340_vm5 = vcmask 179200  }
  0x28   :  { %v501_v10 = vld [vmem:[%s6507_s5 + $0x378] sm:$0xff]  ;;  %701 = vmatpush.msra.mxu2 %v422_v6  ;;  %721 = vmatpush.msra.mxu3 %v438_v7  ;;  %v500_v14 = vld [vmem:[%s6507_s5 + $0x370] sm:$0xff]  ;;  %v483_v17 = vld [vmem:[%s6507_s5 + $0x2e8] sm:$0xff]  ;;  %vm1388_vm6 = vcmask 17408   ;;  %vm1890_vm7 = vcmask 1045508   ;;  %vm1892_vm8 = vcmask 1043456  }
  0x29   :  { %v517_v11 = vld [vmem:[%s6507_s5 + $0x3f8] sm:$0xff]  ;;  %726 = vmatpush.msrb.mxu0 %v469_v8  ;;  %746 = vmatpush.msrb.mxu1 %v485_v9  ;;  %v516_v15 = vld [vmem:[%s6507_s5 + $0x3f0] sm:$0xff]  ;;  %v499_v18 = vld [vmem:[%s6507_s5 + $0x368] sm:$0xff]  ;;  %vm1899_vm9 = vcmask 1043458   ;;  %vm1901_vm11 = vcmask 78852   ;;  %s3124_s8 = smov [#allocation5]  }
  0x2a   :  { %766 = vmatpush.msrb.mxu2 %v501_v10  ;;  %786 = vmatpush.msrb.mxu3 %v517_v11  ;;  %v515_v19 = vld [vmem:[%s6507_s5 + $0x3e8] sm:$0xff]  ;;  %v466_v21 = vld [vmem:[%s6507_s5 + $0x260] sm:$0xff]  ;;  %v465_v25 = vld [vmem:[%s6507_s5 + $0x258] sm:$0xff]  ;;  %s2937_s19 = sshll.u32 %s3124_s8, 4  ;;  %s3126_s20 = smov 4   ;;  %s2938_s19 = int_to_ptr.vmem [resolvable:$true] %s2937_s19 }
  0x2b   :  { %727 = vmatpush.msrb.mxu0 %v468_v12  ;;  %747 = vmatpush.msrb.mxu1 %v484_v13  ;;  %v482_v22 = vld [vmem:[%s6507_s5 + $0x2e0] sm:$0xff]  ;;  %v481_v26 = vld [vmem:[%s6507_s5 + $0x2d8] sm:$0xff]  ;;  %v464_v29 = vld [vmem:[%s6507_s5 + $0x250] sm:$0xff]  ;;  %s2929_s22 = sshll.u32 %s6517_s15, 4  ;;  %s3127_s23 = smov [#allocation3]   ;;  %s2930_s22 = int_to_ptr.hbm [resolvable:$true] %s2929_s22 }
  0x2c   :  { %767 = vmatpush.msrb.mxu2 %v500_v14  ;;  %787 = vmatpush.msrb.mxu3 %v516_v15  ;;  %v498_v23 = vld [vmem:[%s6507_s5 + $0x360] sm:$0xff]  ;;  %v497_v27 = vld [vmem:[%s6507_s5 + $0x358] sm:$0xff]  ;;  %v480_v30 = vld [vmem:[%s6507_s5 + $0x2d0] sm:$0xff]  ;;  %s2927_s24 = sshll.u32 %s3127_s23, 4  ;;  %s2952_s26 = sshll.u32 %s6519_s17, 4  ;;  %s2928_s24 = int_to_ptr.vmem [resolvable:$true] %s2927_s24  ;;  %s2953_s26 = int_to_ptr.hbm [resolvable:$true] %s2952_s26 }
  0x2d   :  { %728 = vmatpush.msrb.mxu0 %v467_v16  ;;  %748 = vmatpush.msrb.mxu1 %v483_v17  ;;  %v514_v24 = vld [vmem:[%s6507_s5 + $0x3e0] sm:$0xff]  ;;  %v513_v28 = vld [vmem:[%s6507_s5 + $0x3d8] sm:$0xff]  ;;  %v496_v31 = vld [vmem:[%s6507_s5 + $0x350] sm:$0xff] }
  0x2e   :  { %768 = vmatpush.msrb.mxu2 %v499_v18  ;;  %788 = vmatpush.msrb.mxu3 %v515_v19  ;;  %v512_v32 = vld [vmem:[%s6507_s5 + $0x3d0] sm:$0xff]  ;;  %v463_v33 = vld [vmem:[%s6507_s5 + $0x248] sm:$0xff]  ;;  %v462_v37 = vld [vmem:[%s6507_s5 + $0x240] sm:$0xff] }
  0x2f   :  { %729 = vmatpush.msrb.mxu0 %v466_v21  ;;  %749 = vmatpush.msrb.mxu1 %v482_v22  ;;  %v479_v34 = vld [vmem:[%s6507_s5 + $0x2c8] sm:$0xff]  ;;  %v478_v38 = vld [vmem:[%s6507_s5 + $0x2c0] sm:$0xff]  ;;  %v461_v41 = vld [vmem:[%s6507_s5 + $0x238] sm:$0xff] }
  0x30   :  { %769 = vmatpush.msrb.mxu2 %v498_v23  ;;  %789 = vmatpush.msrb.mxu3 %v514_v24  ;;  %v495_v35 = vld [vmem:[%s6507_s5 + $0x348] sm:$0xff]  ;;  %v494_v39 = vld [vmem:[%s6507_s5 + $0x340] sm:$0xff]  ;;  %v477_v42 = vld [vmem:[%s6507_s5 + $0x2b8] sm:$0xff] }
  0x31   :  { %730 = vmatpush.msrb.mxu0 %v465_v25  ;;  %750 = vmatpush.msrb.mxu1 %v481_v26  ;;  %v511_v36 = vld [vmem:[%s6507_s5 + $0x3c8] sm:$0xff]  ;;  %v510_v40 = vld [vmem:[%s6507_s5 + $0x3c0] sm:$0xff]  ;;  %v493_v43 = vld [vmem:[%s6507_s5 + $0x338] sm:$0xff] }
  0x32   :  { %770 = vmatpush.msrb.mxu2 %v497_v27  ;;  %790 = vmatpush.msrb.mxu3 %v513_v28  ;;  %v509_v44 = vld [vmem:[%s6507_s5 + $0x3b8] sm:$0xff]  ;;  %v460_v45 = vld [vmem:[%s6507_s5 + $0x230] sm:$0xff]  ;;  %v459_v49 = vld [vmem:[%s6507_s5 + $0x228] sm:$0xff] }
  0x33   :  { %731 = vmatpush.msrb.mxu0 %v464_v29  ;;  %751 = vmatpush.msrb.mxu1 %v480_v30  ;;  %v476_v46 = vld [vmem:[%s6507_s5 + $0x2b0] sm:$0xff]  ;;  %v475_v50 = vld [vmem:[%s6507_s5 + $0x2a8] sm:$0xff]  ;;  %v458_v53 = vld [vmem:[%s6507_s5 + $0x220] sm:$0xff] }
  0x34   :  { %771 = vmatpush.msrb.mxu2 %v496_v31  ;;  %791 = vmatpush.msrb.mxu3 %v512_v32  ;;  %v492_v47 = vld [vmem:[%s6507_s5 + $0x330] sm:$0xff]  ;;  %v491_v51 = vld [vmem:[%s6507_s5 + $0x328] sm:$0xff]  ;;  %v474_v54 = vld [vmem:[%s6507_s5 + $0x2a0] sm:$0xff] }
  0x35   :  { %732 = vmatpush.msrb.mxu0 %v463_v33  ;;  %752 = vmatpush.msrb.mxu1 %v479_v34  ;;  %v508_v48 = vld [vmem:[%s6507_s5 + $0x3b0] sm:$0xff]  ;;  %v507_v52 = vld [vmem:[%s6507_s5 + $0x3a8] sm:$0xff]  ;;  %v490_v55 = vld [vmem:[%s6507_s5 + $0x320] sm:$0xff] }
  0x36   :  { %772 = vmatpush.msrb.mxu2 %v495_v35  ;;  %792 = vmatpush.msrb.mxu3 %v511_v36  ;;  %v506_v56 = vld [vmem:[%s6507_s5 + $0x3a0] sm:$0xff]  ;;  %v457_v57 = vld [vmem:[%s6507_s5 + $0x218] sm:$0xff]  ;;  %v456_v61 = vld [vmem:[%s6507_s5 + $0x210] sm:$0xff] }
  0x37   :  { %3029 = vset.pattern.permute.xlu0 %v3120_v2  ;;  %3027 = vset.pattern.permute.xlu1 %v3122_v20  ;;  %v473_v58 = vld [vmem:[%s6507_s5 + $0x298] sm:$0xff]  ;;  %v472_v62 = vld [vmem:[%s6507_s5 + $0x290] sm:$0xff]  ;;  %v455_v1 = vld [vmem:[%s6507_s5 + $0x208] sm:$0xff] }
  0x38   :  { %3026 = vset.pattern.permute.xlu2 %v3120_v2  ;;  %733 = vmatpush.msrb.mxu0 %v462_v37  ;;  %v489_v59 = vld [vmem:[%s6507_s5 + $0x318] sm:$0xff]  ;;  %v488_v63 = vld [vmem:[%s6507_s5 + $0x310] sm:$0xff]  ;;  %v471_v4 = vld [vmem:[%s6507_s5 + $0x288] sm:$0xff] }
  0x39   :  { %753 = vmatpush.msrb.mxu1 %v478_v38  ;;  %773 = vmatpush.msrb.mxu2 %v494_v39  ;;  %v505_v60 = vld [vmem:[%s6507_s5 + $0x398] sm:$0xff]  ;;  %v504_v0 = vld [vmem:[%s6507_s5 + $0x390] sm:$0xff]  ;;  %v487_v5 = vld [vmem:[%s6507_s5 + $0x308] sm:$0xff] }
  0x3a   :  { %793 = vmatpush.msrb.mxu3 %v510_v40  ;;  %734 = vmatpush.msrb.mxu0 %v461_v41  ;;  %v503_v6 = vld [vmem:[%s6507_s5 + $0x388] sm:$0xff]  ;;  %v454_v7 = vld [vmem:[%s6507_s5 + $0x200] sm:$0xff]  ;;  %vm4626_vm2 = vmor %vm1032_vm1, %vm1029_vm0 }
  0x3b   :  { %754 = vmatpush.msrb.mxu1 %v477_v42  ;;  %774 = vmatpush.msrb.mxu2 %v493_v43  ;;  %v470_v8 = vld [vmem:[%s6507_s5 + $0x280] sm:$0xff]  ;;  %vm1900_vm10 = vmor %vm1899_vm9, %vm1029_vm0 }
  0x3c   :  { %794 = vmatpush.msrb.mxu3 %v509_v44  ;;  %735 = vmatpush.msrb.mxu0 %v460_v45  ;;  %v486_v9 = vld [vmem:[%s6507_s5 + $0x300] sm:$0xff]  ;;  %vm6361_vm12 = vmor %vm1901_vm11, %vm1900_vm10 }
  0x3d   :  { %755 = vmatpush.msrb.mxu1 %v476_v46  ;;  %775 = vmatpush.msrb.mxu2 %v492_v47  ;;  %v502_v10 = vld [vmem:[%s6507_s5 + $0x380] sm:$0xff] }
  0x3e   :  { %795 = vmatpush.msrb.mxu3 %v508_v48  ;;  %736 = vmatpush.msrb.mxu0 %v459_v49  ;;  %v3620_v11 = vld [vmem:[%s6504_s2] ss:$4 sm:$0xff]  ;;  %v3630_v13 = vld [vmem:[%s6504_s2 + $0x1] ss:$4 sm:$0xff]  ;;  %v3636_v15 = vld [vmem:[%s6504_s2 + $0x2] ss:$4 sm:$0xff] }
  0x3f   :  { %756 = vmatpush.msrb.mxu1 %v475_v50  ;;  %776 = vmatpush.msrb.mxu2 %v491_v51  ;;  %v3625_v12 = vld [vmem:[%s6505_s3] sm:$0xff]  ;;  %v70_v14 = vperm.slane %v3620_v11, 0  ;;  %v71_v16 = vperm.slane %v3620_v11, 1  ;;  %v72_v17 = vperm.slane %v3620_v11, 2  ;;  %v73_v18 = vperm.slane %v3620_v11, 3 }
  0x40   :  { %796 = vmatpush.msrb.mxu3 %v507_v52  ;;  %737 = vmatpush.msrb.mxu0 %v458_v53  ;;  %v74_v19 = vperm.slane %v3620_v11, 4  ;;  %v75_v21 = vperm.slane %v3620_v11, 5  ;;  %v76_v22 = vperm.slane %v3620_v11, 6  ;;  %v120_v23 = vperm.slane %v3625_v12, 0  ;;  %v3667_v41 = vld [vmem:[%s6504_s2 + $0x3] ss:$4 sm:$0xff] }
  0x41   :  { %757 = vmatpush.msrb.mxu1 %v474_v54  ;;  %777 = vmatpush.msrb.mxu2 %v490_v55  ;;  %v178_v24 = vperm.slane %v3630_v13, 0  ;;  %v121_v25 = vperm.slane %v3625_v12, 1  ;;  %v77_v26 = vperm.slane %v3620_v11, 7  ;;  %v252_v29 = vperm.slane %v3636_v15, 0 }
  0x42   :  { %797 = vmatpush.msrb.mxu3 %v506_v56  ;;  %738 = vmatpush.msrb.mxu0 %v457_v57  ;;  %v179_v30 = vperm.slane %v3630_v13, 1  ;;  %v253_v31 = vperm.slane %v3636_v15, 1  ;;  %v122_v32 = vperm.slane %v3625_v12, 2  ;;  %v180_v33 = vperm.slane %v3630_v13, 2 }
  0x43   :  { %758 = vmatpush.msrb.mxu1 %v473_v58  ;;  %778 = vmatpush.msrb.mxu2 %v489_v59  ;;  %v254_v34 = vperm.slane %v3636_v15, 2  ;;  %v123_v35 = vperm.slane %v3625_v12, 3  ;;  %v181_v36 = vperm.slane %v3630_v13, 3  ;;  %v255_v37 = vperm.slane %v3636_v15, 3 }
  0x44   :  { %798 = vmatpush.msrb.mxu3 %v505_v60  ;;  %739 = vmatpush.msrb.mxu0 %v456_v61  ;;  %v124_v38 = vperm.slane %v3625_v12, 4  ;;  %v182_v39 = vperm.slane %v3630_v13, 4  ;;  %v256_v40 = vperm.slane %v3636_v15, 4  ;;  %v125_v42 = vperm.slane %v3625_v12, 5 }
  0x45   :  { %759 = vmatpush.msrb.mxu1 %v472_v62  ;;  %779 = vmatpush.msrb.mxu2 %v488_v63  ;;  %v183_v43 = vperm.slane %v3630_v13, 5  ;;  %v257_v44 = vperm.slane %v3636_v15, 5  ;;  %v126_v45 = vperm.slane %v3625_v12, 6  ;;  %v184_v47 = vperm.slane %v3630_v13, 6 }
  0x46   :  { %799 = vmatpush.msrb.mxu3 %v504_v0  ;;  %740 = vmatpush.msrb.mxu0 %v455_v1  ;;  %v258_v48 = vperm.slane %v3636_v15, 6  ;;  %v127_v49 = vperm.slane %v3625_v12, 7  ;;  %v185_v53 = vperm.slane %v3630_v13, 7  ;;  %v326_v54 = vperm.slane %v3667_v41, 0 }
  0x47   :  { %760 = vmatpush.msrb.mxu1 %v471_v4  ;;  %780 = vmatpush.msrb.mxu2 %v487_v5  ;;  %v327_v55 = vperm.slane %v3667_v41, 1  ;;  %v328_v56 = vperm.slane %v3667_v41, 2  ;;  %v259_v57 = vperm.slane %v3636_v15, 7  ;;  %v329_v59 = vperm.slane %v3667_v41, 3 }
  0x48   :  { %800 = vmatpush.msrb.mxu3 %v503_v6  ;;  %741 = vmatpush.msrb.mxu0 %v454_v7  ;;  %v330_v60 = vperm.slane %v3667_v41, 4  ;;  %v331_v61 = vperm.slane %v3667_v41, 5 }
  0x49   :  { %761 = vmatpush.msrb.mxu1 %v470_v8  ;;  %781 = vmatpush.msrb.mxu2 %v486_v9 }
  0x4a   :  { %801 = vmatpush.msrb.mxu3 %v502_v10 }
  0x7c   :  { %v3648_v27 = vpop.permute.xlu0 %65  ;;  %v3650_v28 = vpop.permute.xlu1 %247 }
  0x7d   :  { %v102_v46 = vmul.f32 %v70_v14, %v3648_v27  ;;  %v103_v50 = vmul.f32 %v71_v16, %v3648_v27  ;;  %v104_v51 = vmul.f32 %v72_v17, %v3648_v27  ;;  %v105_v52 = vmul.f32 %v73_v18, %v3648_v27 }
  0x7e   :  { %v284_v58 = vmul.f32 %v252_v29, %v3650_v28  ;;  %v285_v63 = vmul.f32 %v253_v31, %v3650_v28  ;;  %v286_v0 = vmul.f32 %v254_v34, %v3650_v28  ;;  %v287_v1 = vmul.f32 %v255_v37, %v3650_v28 }
  0x7f   :  { %v152_v62 = vadd.f32 %v120_v23, %v102_v46  ;;  %v153_v6 = vadd.f32 %v121_v25, %v103_v50  ;;  %v154_v7 = vadd.f32 %v122_v32, %v104_v51  ;;  %v155_v8 = vadd.f32 %v123_v35, %v105_v52 }
  0x80   :  { %v106_v9 = vmul.f32 %v74_v19, %v3648_v27  ;;  %v107_v12 = vmul.f32 %v75_v21, %v3648_v27  ;;  %v108_v13 = vmul.f32 %v76_v22, %v3648_v27  ;;  %v109_v18 = vmul.f32 %v77_v26, %v3648_v27 }
  0x81   :  { %v332_v37 = vperm.slane %v3667_v41, 6 }
  0x82   :  { %v157_v51 = vadd.f32 %v125_v42, %v107_v12  ;;  %v158_v52 = vadd.f32 %v126_v45, %v108_v13  ;;  %v565_v42 = vld [vmem:[%s6507_s5 + $0x578] sm:$0xff]  ;;  %v531_v13 = vld [vmem:[%s6507_s5 + $0x468] sm:$0xff] }
  0x83   :  { %v581_v45 = vld [vmem:[%s6507_s5 + $0x5f8] sm:$0xff] }
  0x84   :  { %v3764_v12 = vld [vmem:[%s6504_s2 + $0x21] ss:$4 sm:$0xff] }
  0x85   :  { %v3692_v4 = vpop.permute.xlu0 %173  ;;  %v3694_v5 = vpop.permute.xlu1 %321 }
  0x86   :  { %v210_v10 = vmul.f32 %v178_v24, %v3692_v4  ;;  %v211_v11 = vmul.f32 %v179_v30, %v3692_v4  ;;  %v358_v14 = vmul.f32 %v326_v54, %v3694_v5  ;;  %v212_v16 = vmul.f32 %v180_v33, %v3692_v4  ;;  %v3715_v54 = vld [vmem:[%s6504_s2 + $0x20] ss:$4 sm:$0xff] }
  0x87   :  { %v213_v17 = vmul.f32 %v181_v36, %v3692_v4  ;;  %v359_v19 = vmul.f32 %v327_v55, %v3694_v5  ;;  %v360_v24 = vmul.f32 %v328_v56, %v3694_v5  ;;  %v361_v21 = vmul.f32 %v329_v59, %v3694_v5 }
  0x88   :  { %v226_v23 = vadd.f32 %v210_v10, %v152_v62  ;;  %v227_v25 = vadd.f32 %v211_v11, %v153_v6  ;;  %v228_v29 = vadd.f32 %v212_v16, %v154_v7  ;;  %v214_v22 = vmul.f32 %v182_v39, %v3692_v4  ;;  %v3743_v6 = vld [vmem:[%s6505_s3 + $0x8] sm:$0xff] }
  0x89   :  { %v229_v30 = vadd.f32 %v213_v17, %v155_v8  ;;  %v215_v33 = vmul.f32 %v183_v43, %v3692_v4  ;;  %v216_v34 = vmul.f32 %v184_v47, %v3692_v4  ;;  %v156_v36 = vadd.f32 %v124_v38, %v106_v9  ;;  %v533_v43 = vld [vmem:[%s6507_s5 + $0x478] sm:$0xff]  ;;  %v564_v8 = vld [vmem:[%s6507_s5 + $0x570] sm:$0xff]  ;;  %v579_v16 = vld [vmem:[%s6507_s5 + $0x5e8] sm:$0xff] }
  0x8a   :  { %v300_v31 = vadd.f32 %v284_v58, %v226_v23  ;;  %v301_v32 = vadd.f32 %v285_v63, %v227_v25  ;;  %v302_v35 = vadd.f32 %v286_v0, %v228_v29  ;;  %v549_v38 = vld [vmem:[%s6507_s5 + $0x4f8] sm:$0xff]  ;;  %v159_v47 = vadd.f32 %v127_v49, %v109_v18  ;;  %v532_v49 = vld [vmem:[%s6507_s5 + $0x470] sm:$0xff]  ;;  %v546_v25 = vld [vmem:[%s6507_s5 + $0x4e0] sm:$0xff] }
  0x8b   :  { %v303_v26 = vadd.f32 %v287_v1, %v229_v30  ;;  %v217_v56 = vmul.f32 %v185_v53, %v3692_v4  ;;  %v230_v58 = vadd.f32 %v214_v22, %v156_v36  ;;  %v231_v59 = vadd.f32 %v215_v33, %v157_v51  ;;  %v548_v53 = vld [vmem:[%s6507_s5 + $0x4f0] sm:$0xff]  ;;  %v578_v22 = vld [vmem:[%s6507_s5 + $0x5e0] sm:$0xff] }
  0x8c   :  { %v374_v46 = vadd.f32 %v358_v14, %v300_v31  ;;  %v375_v50 = vadd.f32 %v359_v19, %v301_v32  ;;  %v376_v39 = vadd.f32 %v360_v24, %v302_v35  ;;  %v232_v62 = vadd.f32 %v216_v34, %v158_v52  ;;  %v563_v14 = vld [vmem:[%s6507_s5 + $0x568] sm:$0xff] }
  0x8d   :  { %v377_v55 = vadd.f32 %v361_v21, %v303_v26  ;;  %v288_v63 = vmul.f32 %v256_v40, %v3650_v28  ;;  %v233_v0 = vadd.f32 %v217_v56, %v159_v47  ;;  %v333_v1 = vperm.slane %v3667_v41, 7  ;;  %v580_v40 = vld [vmem:[%s6507_s5 + $0x5f0] sm:$0xff]  ;;  %v562_v21 = vld [vmem:[%s6507_s5 + $0x560] sm:$0xff] }
  0x8e   :  { %662 = vmatmul.f32.vlgmr.msra.gmra.mxu0 %v374_v46  ;;  %682 = vmatmul.f32.vlgmr.msra.gmra.mxu1 %v375_v50  ;;  %v82_v7 = vperm.slane %v3715_v54, 4  ;;  %v289_v9 = vmul.f32 %v257_v44, %v3650_v28  ;;  %v290_v10 = vmul.f32 %v258_v48, %v3650_v28  ;;  %v291_v11 = vmul.f32 %v259_v57, %v3650_v28  ;;  %v547_v44 = vld [vmem:[%s6507_s5 + $0x4e8] sm:$0xff]  ;;  %v529_v46 = vld [vmem:[%s6507_s5 + $0x458] sm:$0xff] }
  0x8f   :  { %702 = vmatmul.f32.vlgmr.msra.gmra.mxu2 %v376_v39  ;;  %722 = vmatmul.f32.vlgmr.msra.gmra.mxu3 %v377_v55  ;;  %v362_v15 = vmul.f32 %v330_v60, %v3694_v5  ;;  %v363_v48 = vmul.f32 %v331_v61, %v3694_v5  ;;  %v364_v57 = vmul.f32 %v332_v37, %v3694_v5  ;;  %v3788_v41 = vld [vmem:[%s6504_s2 + $0x22] ss:$4 sm:$0xff]  ;;  %v132_v60 = vperm.slane %v3743_v6, 4 }
  0x90   :  { %806 = vmatpush.msra.mxu0 %v533_v43  ;;  %826 = vmatpush.msra.mxu1 %v549_v38  ;;  %v304_v17 = vadd.f32 %v288_v63, %v230_v58  ;;  %v305_v18 = vadd.f32 %v289_v9, %v231_v59  ;;  %v306_v23 = vadd.f32 %v290_v10, %v232_v62  ;;  %v530_v61 = vld [vmem:[%s6507_s5 + $0x460] sm:$0xff]  ;;  %v190_v30 = vperm.slane %v3764_v12, 4  ;;  %v545_v50 = vld [vmem:[%s6507_s5 + $0x4d8] sm:$0xff]  ;;  %v576_v63 = vld [vmem:[%s6507_s5 + $0x5d0] sm:$0xff] }
  0x91   :  { %846 = vmatpush.msra.mxu2 %v565_v42  ;;  %866 = vmatpush.msra.mxu3 %v581_v45  ;;  %v307_v19 = vadd.f32 %v291_v11, %v233_v0  ;;  %v365_v24 = vmul.f32 %v333_v1, %v3694_v5  ;;  %v114_v29 = vmul.f32 %v82_v7, %v3648_v27  ;;  %v83_v31 = vperm.slane %v3715_v54, 5  ;;  %v561_v55 = vld [vmem:[%s6507_s5 + $0x558] sm:$0xff]  ;;  %v528_v42 = vld [vmem:[%s6507_s5 + $0x450] sm:$0xff] }
  0x92   :  { %807 = vmatpush.msra.mxu0 %v532_v49  ;;  %827 = vmatpush.msra.mxu1 %v548_v53  ;;  %v264_v32 = vperm.slane %v3788_v41, 4  ;;  %v191_v33 = vperm.slane %v3764_v12, 5  ;;  %v378_v34 = vadd.f32 %v362_v15, %v304_v17  ;;  %v379_v35 = vadd.f32 %v363_v48, %v305_v18  ;;  %v577_v43 = vld [vmem:[%s6507_s5 + $0x5d8] sm:$0xff]  ;;  %v544_v45 = vld [vmem:[%s6507_s5 + $0x4d0] sm:$0xff]  ;;  %v542_v17 = vld [vmem:[%s6507_s5 + $0x4c0] sm:$0xff] }
  0x93   :  { %847 = vmatpush.msra.mxu2 %v564_v8  ;;  %867 = vmatpush.msra.mxu3 %v580_v40  ;;  %v380_v26 = vadd.f32 %v364_v57, %v306_v23  ;;  %v133_v36 = vperm.slane %v3743_v6, 5  ;;  %v381_v37 = vadd.f32 %v365_v24, %v307_v19  ;;  %v164_v51 = vadd.f32 %v132_v60, %v114_v29  ;;  %v560_v53 = vld [vmem:[%s6507_s5 + $0x550] sm:$0xff]  ;;  %v527_v8 = vld [vmem:[%s6507_s5 + $0x448] sm:$0xff] }
  0x94   :  { %808 = vmatpush.msra.mxu0 %v531_v13  ;;  %828 = vmatpush.msra.mxu1 %v547_v44  ;;  %v222_v52 = vmul.f32 %v190_v30, %v3692_v4  ;;  %v84_v39 = vperm.slane %v3715_v54, 6  ;;  %v115_v38 = vmul.f32 %v83_v31, %v3648_v27  ;;  %v265_v47 = vperm.slane %v3788_v41, 5  ;;  %v543_v40 = vld [vmem:[%s6507_s5 + $0x4c8] sm:$0xff] }
  0x95   :  { %848 = vmatpush.msra.mxu2 %v563_v14  ;;  %868 = vmatpush.msra.mxu3 %v579_v16  ;;  %v192_v56 = vperm.slane %v3764_v12, 6  ;;  %v296_v59 = vmul.f32 %v264_v32, %v3650_v28  ;;  %v223_v62 = vmul.f32 %v191_v33, %v3692_v4  ;;  %v134_v49 = vperm.slane %v3743_v6, 6  ;;  %v559_v13 = vld [vmem:[%s6507_s5 + $0x548] sm:$0xff]  ;;  %v526_v16 = vld [vmem:[%s6507_s5 + $0x440] sm:$0xff] }
  0x96   :  { %809 = vmatpush.msra.mxu0 %v530_v61  ;;  %829 = vmatpush.msra.mxu1 %v546_v25  ;;  %v238_v58 = vadd.f32 %v222_v52, %v164_v51  ;;  %v165_v0 = vadd.f32 %v133_v36, %v115_v38  ;;  %v85_v1 = vperm.slane %v3715_v54, 7  ;;  %v193_v7 = vperm.slane %v3764_v12, 7  ;;  %v575_v44 = vld [vmem:[%s6507_s5 + $0x5c8] sm:$0xff]  ;;  %v558_v61 = vld [vmem:[%s6507_s5 + $0x540] sm:$0xff]  ;;  %v540_v51 = vld [vmem:[%s6507_s5 + $0x4b0] sm:$0xff] }
  0x97   :  { %849 = vmatpush.msra.mxu2 %v562_v21  ;;  %869 = vmatpush.msra.mxu3 %v578_v22  ;;  %v116_v10 = vmul.f32 %v84_v39, %v3648_v27  ;;  %v266_v11 = vperm.slane %v3788_v41, 6  ;;  %v297_v48 = vmul.f32 %v265_v47, %v3650_v28  ;;  %v224_v57 = vmul.f32 %v192_v56, %v3692_v4  ;;  %v574_v25 = vld [vmem:[%s6507_s5 + $0x5c0] sm:$0xff]  ;;  %v525_v21 = vld [vmem:[%s6507_s5 + $0x438] sm:$0xff]  ;;  %v556_v38 = vld [vmem:[%s6507_s5 + $0x530] sm:$0xff] }
  0x98   :  { %742 = vmatmul.f32.vlgmr.msrb.gmra.mxu0 %v378_v34  ;;  %762 = vmatmul.f32.vlgmr.msrb.gmra.mxu1 %v379_v35  ;;  %v3850_v9 = vadd.f32 %v296_v59, %v238_v58  ;;  %v239_v15 = vadd.f32 %v223_v62, %v165_v0  ;;  %v135_v14 = vperm.slane %v3743_v6, 7  ;;  %v78_v18 = vperm.slane %v3715_v54, 0  ;;  %v541_v22 = vld [vmem:[%s6507_s5 + $0x4b8] sm:$0xff]  ;;  %v572_v47 = vld [vmem:[%s6507_s5 + $0x5b0] sm:$0xff]  ;;  %v539_v59 = vld [vmem:[%s6507_s5 + $0x4a8] sm:$0xff] }
  0x99   :  { %782 = vmatmul.f32.vlgmr.msrb.gmra.mxu2 %v380_v26  ;;  %802 = vmatmul.f32.vlgmr.msrb.gmra.mxu3 %v381_v37  ;;  %v79_v23 = vperm.slane %v3715_v54, 1  ;;  %v166_v60 = vadd.f32 %v134_v49, %v116_v10  ;;  %v117_v24 = vmul.f32 %v85_v1, %v3648_v27  ;;  %v225_v29 = vmul.f32 %v193_v7, %v3692_v4  ;;  %v557_v35 = vld [vmem:[%s6507_s5 + $0x538] sm:$0xff]  ;;  %v555_v1 = vld [vmem:[%s6507_s5 + $0x528] sm:$0xff] }
  0x9a   :  { %810 = vmatpush.msra.mxu0 %v529_v46  ;;  %830 = vmatpush.msra.mxu1 %v545_v50  ;;  %v3877_v19 = vadd.f32 %v297_v48, %v239_v15  ;;  %v267_v30 = vperm.slane %v3788_v41, 7  ;;  %v80_v31 = vperm.slane %v3715_v54, 2  ;;  %v81_v32 = vperm.slane %v3715_v54, 3  ;;  %v573_v26 = vld [vmem:[%s6507_s5 + $0x5b8] sm:$0xff]  ;;  %v524_v50 = vld [vmem:[%s6507_s5 + $0x430] sm:$0xff]  ;;  %v571_v7 = vld [vmem:[%s6507_s5 + $0x5a8] sm:$0xff] }
  0x9b   :  { %850 = vmatpush.msra.mxu2 %v561_v55  ;;  %870 = vmatpush.msra.mxu3 %v577_v43  ;;  %v240_v33 = vadd.f32 %v224_v57, %v166_v60  ;;  %v298_v34 = vmul.f32 %v266_v11, %v3650_v28  ;;  %v128_v36 = vperm.slane %v3743_v6, 0  ;;  %v186_v37 = vperm.slane %v3764_v12, 0  ;;  %v3929_v62 = vld [vmem:[%s6504_s2 + $0x23] ss:$4 sm:$0xff] }
  0x9c   :  { %811 = vmatpush.msra.mxu0 %v528_v42  ;;  %831 = vmatpush.msra.mxu1 %v544_v45  ;;  %v187_v46 = vperm.slane %v3764_v12, 1  ;;  %v167_v54 = vadd.f32 %v135_v14, %v117_v24  ;;  %v110_v52 = vmul.f32 %v78_v18, %v3648_v27  ;;  %v188_v39 = vperm.slane %v3764_v12, 2  ;;  %v554_v48 = vld [vmem:[%s6507_s5 + $0x520] sm:$0xff] }
  0x9d   :  { %851 = vmatpush.msra.mxu2 %v560_v53  ;;  %871 = vmatpush.msra.mxu3 %v576_v63  ;;  %v189_v55 = vperm.slane %v3764_v12, 3  ;;  %v3909_v43 = vadd.f32 %v298_v34, %v240_v33  ;;  %v111_v56 = vmul.f32 %v79_v23, %v3648_v27  ;;  %v129_v42 = vperm.slane %v3743_v6, 1  ;;  %v523_v12 = vld [vmem:[%s6507_s5 + $0x428] sm:$0xff]  ;;  %v570_v57 = vld [vmem:[%s6507_s5 + $0x5a0] sm:$0xff]  ;;  %v537_v23 = vld [vmem:[%s6507_s5 + $0x498] sm:$0xff] }
  0x9e   :  { %812 = vmatpush.msra.mxu0 %v527_v8  ;;  %832 = vmatpush.msra.mxu1 %v543_v40  ;;  %v241_v45 = vadd.f32 %v225_v29, %v167_v54  ;;  %v299_v58 = vmul.f32 %v267_v30, %v3650_v28  ;;  %v112_v49 = vmul.f32 %v80_v31, %v3648_v27  ;;  %v130_v53 = vperm.slane %v3743_v6, 2  ;;  %v553_v29 = vld [vmem:[%s6507_s5 + $0x518] sm:$0xff] }
  0x9f   :  { %852 = vmatpush.msra.mxu2 %v559_v13  ;;  %872 = vmatpush.msra.mxu3 %v575_v44  ;;  %v113_v63 = vmul.f32 %v81_v32, %v3648_v27  ;;  %v131_v0 = vperm.slane %v3743_v6, 3  ;;  %v218_v8 = vmul.f32 %v186_v37, %v3692_v4  ;;  %v219_v40 = vmul.f32 %v187_v46, %v3692_v4  ;;  %v522_v27 = vld [vmem:[%s6507_s5 + $0x420] sm:$0xff]  ;;  %v569_v30 = vld [vmem:[%s6507_s5 + $0x598] sm:$0xff]  ;;  %v536_v32 = vld [vmem:[%s6507_s5 + $0x490] sm:$0xff] }
  0xa0   :  { %813 = vmatpush.msra.mxu0 %v526_v16  ;;  %833 = vmatpush.msra.mxu1 %v542_v17  ;;  %v3943_v10 = vadd.f32 %v299_v58, %v241_v45  ;;  %v538_v6 = vld [vmem:[%s6507_s5 + $0x4a0] sm:$0xff]  ;;  %v260_v11 = vperm.slane %v3788_v41, 0  ;;  %v261_v13 = vperm.slane %v3788_v41, 1  ;;  %v220_v44 = vmul.f32 %v188_v39, %v3692_v4 }
  0xa1   :  { %853 = vmatpush.msra.mxu2 %v558_v61  ;;  %873 = vmatpush.msra.mxu3 %v574_v25  ;;  %v221_v15 = vmul.f32 %v189_v55, %v3692_v4  ;;  %v160_v14 = vadd.f32 %v128_v36, %v110_v52  ;;  %v334_v16 = vperm.slane %v3929_v62, 0  ;;  %v161_v17 = vadd.f32 %v129_v42, %v111_v56  ;;  %v521_v4 = vld [vmem:[%s6507_s5 + $0x418] sm:$0xff]  ;;  %v568_v36 = vld [vmem:[%s6507_s5 + $0x590] sm:$0xff]  ;;  %v534_v58 = vld [vmem:[%s6507_s5 + $0x480] sm:$0xff] }
  0xa2   :  { %814 = vmatpush.msra.mxu0 %v525_v21  ;;  %834 = vmatpush.msra.mxu1 %v541_v22  ;;  %v262_v18 = vperm.slane %v3788_v41, 2  ;;  %v335_v60 = vperm.slane %v3929_v62, 1  ;;  %v162_v61 = vadd.f32 %v130_v53, %v112_v49  ;;  %v163_v25 = vadd.f32 %v131_v0, %v113_v63  ;;  %v550_v53 = vld [vmem:[%s6507_s5 + $0x500] sm:$0xff] }
  0xa3   :  { %854 = vmatpush.msra.mxu2 %v557_v35  ;;  %874 = vmatpush.msra.mxu3 %v573_v26  ;;  %v263_v24 = vperm.slane %v3788_v41, 3  ;;  %v234_v21 = vadd.f32 %v218_v8, %v160_v14  ;;  %v235_v22 = vadd.f32 %v219_v40, %v161_v17  ;;  %v336_v31 = vperm.slane %v3929_v62, 2  ;;  %v520_v41 = vld [vmem:[%s6507_s5 + $0x410] sm:$0xff]  ;;  %v566_v63 = vld [vmem:[%s6507_s5 + $0x580] sm:$0xff]  ;;  %v597_v40 = vld [vmem:[%s6507_s5 + $0x678] sm:$0xff] }
  0xa4   :  { %815 = vmatpush.msra.mxu0 %v524_v50  ;;  %835 = vmatpush.msra.mxu1 %v540_v51  ;;  %v236_v33 = vadd.f32 %v220_v44, %v162_v61  ;;  %v237_v34 = vadd.f32 %v221_v15, %v163_v25  ;;  %v337_v35 = vperm.slane %v3929_v62, 3  ;;  %v552_v26 = vld [vmem:[%s6507_s5 + $0x510] sm:$0xff]  ;;  %v292_v37 = vmul.f32 %v260_v11, %v3650_v28  ;;  %v519_v50 = vld [vmem:[%s6507_s5 + $0x408] sm:$0xff]  ;;  %v645_v11 = vld [vmem:[%s6507_s5 + $0x7f8] sm:$0xff] }
  0xa5   :  { %855 = vmatpush.msra.mxu2 %v556_v38  ;;  %875 = vmatpush.msra.mxu3 %v572_v47  ;;  %v293_v46 = vmul.f32 %v261_v13, %v3650_v28  ;;  %v294_v54 = vmul.f32 %v262_v18, %v3650_v28  ;;  %v535_v51 = vld [vmem:[%s6507_s5 + $0x488] sm:$0xff]  ;;  %v366_v52 = vmul.f32 %v334_v16, %v3694_v5  ;;  %v596_v13 = vld [vmem:[%s6507_s5 + $0x670] sm:$0xff]  ;;  %v594_v18 = vld [vmem:[%s6507_s5 + $0x660] sm:$0xff] }
  0xa6   :  { %816 = vmatpush.msra.mxu0 %v523_v12  ;;  %836 = vmatpush.msra.mxu1 %v539_v59  ;;  %v367_v39 = vmul.f32 %v335_v60, %v3694_v5  ;;  %v295_v55 = vmul.f32 %v263_v24, %v3650_v28  ;;  %v551_v38 = vld [vmem:[%s6507_s5 + $0x508] sm:$0xff]  ;;  %v308_v56 = vadd.f32 %v292_v37, %v234_v21  ;;  %v518_v28 = vld [vmem:[%s6507_s5 + $0x400] sm:$0xff]  ;;  %v612_v44 = vld [vmem:[%s6507_s5 + $0x6f0] sm:$0xff] }
  0xa7   :  { %856 = vmatpush.msra.mxu2 %v555_v1  ;;  %876 = vmatpush.msra.mxu3 %v571_v7  ;;  %v567_v47 = vld [vmem:[%s6507_s5 + $0x588] sm:$0xff]  ;;  %v309_v42 = vadd.f32 %v293_v46, %v235_v22  ;;  %v368_v45 = vmul.f32 %v336_v31, %v3694_v5  ;;  %v310_v12 = vadd.f32 %v294_v54, %v236_v33  ;;  %v628_v15 = vld [vmem:[%s6507_s5 + $0x770] sm:$0xff]  ;;  %v642_v60 = vld [vmem:[%s6507_s5 + $0x7e0] sm:$0xff] }
  0xa8   :  { %817 = vmatpush.msra.mxu0 %v522_v27  ;;  %837 = vmatpush.msra.mxu1 %v538_v6  ;;  %v311_v59 = vadd.f32 %v295_v55, %v237_v34  ;;  %v369_v49 = vmul.f32 %v337_v35, %v3694_v5  ;;  %v382_v0 = vadd.f32 %v366_v52, %v308_v56  ;;  %v613_v27 = vld [vmem:[%s6507_s5 + $0x6f8] sm:$0xff]  ;;  %v611_v14 = vld [vmem:[%s6507_s5 + $0x6e8] sm:$0xff]  ;;  %v608_v21 = vld [vmem:[%s6507_s5 + $0x6d0] sm:$0xff] }
  0xa9   :  { %857 = vmatpush.msra.mxu2 %v554_v48  ;;  %877 = vmatpush.msra.mxu3 %v570_v57  ;;  %v383_v1 = vadd.f32 %v367_v39, %v309_v42  ;;  %v384_v7 = vadd.f32 %v368_v45, %v310_v12  ;;  %v629_v6 = vld [vmem:[%s6507_s5 + $0x778] sm:$0xff]  ;;  %v644_v48 = vld [vmem:[%s6507_s5 + $0x7f0] sm:$0xff]  ;;  %v595_v57 = vld [vmem:[%s6507_s5 + $0x668] sm:$0xff] }
  0xaa   :  { %818 = vmatpush.msra.mxu0 %v521_v4  ;;  %838 = vmatpush.msra.mxu1 %v537_v23  ;;  %v385_v8 = vadd.f32 %v369_v49, %v311_v59  ;;  %v627_v16 = vld [vmem:[%s6507_s5 + $0x768] sm:$0xff]  ;;  %v610_v4 = vld [vmem:[%s6507_s5 + $0x6e0] sm:$0xff]  ;;  %v593_v61 = vld [vmem:[%s6507_s5 + $0x658] sm:$0xff] }
  0xab   :  { %858 = vmatpush.msra.mxu2 %v553_v29  ;;  %878 = vmatpush.msra.mxu3 %v569_v30  ;;  %v643_v17 = vld [vmem:[%s6507_s5 + $0x7e8] sm:$0xff]  ;;  %v626_v23 = vld [vmem:[%s6507_s5 + $0x760] sm:$0xff]  ;;  %v609_v25 = vld [vmem:[%s6507_s5 + $0x6d8] sm:$0xff] }
  0xac   :  { %819 = vmatpush.msra.mxu0 %v520_v41  ;;  %839 = vmatpush.msra.mxu1 %v536_v32  ;;  %v625_v24 = vld [vmem:[%s6507_s5 + $0x758] sm:$0xff]  ;;  %v592_v30 = vld [vmem:[%s6507_s5 + $0x650] sm:$0xff]  ;;  %v591_v41 = vld [vmem:[%s6507_s5 + $0x648] sm:$0xff] }
  0xad   :  { %859 = vmatpush.msra.mxu2 %v552_v26  ;;  %879 = vmatpush.msra.mxu3 %v568_v36  ;;  %v641_v29 = vld [vmem:[%s6507_s5 + $0x7d8] sm:$0xff]  ;;  %v624_v22 = vld [vmem:[%s6507_s5 + $0x750] sm:$0xff]  ;;  %v607_v32 = vld [vmem:[%s6507_s5 + $0x6c8] sm:$0xff] }
  0xae   :  { %820 = vmatpush.msra.mxu0 %v519_v50  ;;  %840 = vmatpush.msra.mxu1 %v535_v51  ;;  %v640_v31 = vld [vmem:[%s6507_s5 + $0x7d0] sm:$0xff]  ;;  %v623_v33 = vld [vmem:[%s6507_s5 + $0x748] sm:$0xff]  ;;  %v590_v35 = vld [vmem:[%s6507_s5 + $0x640] sm:$0xff] }
  0xaf   :  { %860 = vmatpush.msra.mxu2 %v551_v38  ;;  %880 = vmatpush.msra.mxu3 %v567_v47  ;;  %v639_v34 = vld [vmem:[%s6507_s5 + $0x7c8] sm:$0xff]  ;;  %v606_v26 = vld [vmem:[%s6507_s5 + $0x6c0] sm:$0xff]  ;;  %v589_v46 = vld [vmem:[%s6507_s5 + $0x638] sm:$0xff] }
  0xb0   :  { %821 = vmatpush.msra.mxu0 %v518_v28  ;;  %841 = vmatpush.msra.mxu1 %v534_v58  ;;  %v622_v36 = vld [vmem:[%s6507_s5 + $0x740] sm:$0xff]  ;;  %v605_v54 = vld [vmem:[%s6507_s5 + $0x6b8] sm:$0xff]  ;;  %v588_v52 = vld [vmem:[%s6507_s5 + $0x630] sm:$0xff] }
  0xb1   :  { %861 = vmatpush.msra.mxu2 %v550_v53  ;;  %881 = vmatpush.msra.mxu3 %v566_v63  ;;  %v638_v37 = vld [vmem:[%s6507_s5 + $0x7c0] sm:$0xff]  ;;  %v621_v50 = vld [vmem:[%s6507_s5 + $0x738] sm:$0xff]  ;;  %v604_v39 = vld [vmem:[%s6507_s5 + $0x6b0] sm:$0xff] }
  0xb2   :  { %822 = vmatmul.f32.vlgmr.msra.gmra.mxu0 %v382_v0  ;;  %842 = vmatmul.f32.vlgmr.msra.gmra.mxu1 %v383_v1  ;;  %v637_v51 = vld [vmem:[%s6507_s5 + $0x7b8] sm:$0xff]  ;;  %v620_v55 = vld [vmem:[%s6507_s5 + $0x730] sm:$0xff]  ;;  %v587_v47 = vld [vmem:[%s6507_s5 + $0x628] sm:$0xff]  ;;  %v338_v1 = vperm.slane %v3929_v62, 4 }
  0xb3   :  { %862 = vmatmul.f32.vlgmr.msra.gmra.mxu2 %v384_v7  ;;  %882 = vmatmul.f32.vlgmr.msra.gmra.mxu3 %v385_v8  ;;  %v636_v38 = vld [vmem:[%s6507_s5 + $0x7b0] sm:$0xff]  ;;  %v603_v56 = vld [vmem:[%s6507_s5 + $0x6a8] sm:$0xff]  ;;  %v586_v28 = vld [vmem:[%s6507_s5 + $0x620] sm:$0xff]  ;;  %v339_v7 = vperm.slane %v3929_v62, 5 }
  0xb4   :  { %886 = vmatpush.msrb.mxu0 %v597_v40  ;;  %906 = vmatpush.msrb.mxu1 %v613_v27  ;;  %v619_v42 = vld [vmem:[%s6507_s5 + $0x728] sm:$0xff]  ;;  %v602_v58 = vld [vmem:[%s6507_s5 + $0x6a0] sm:$0xff]  ;;  %v585_v49 = vld [vmem:[%s6507_s5 + $0x618] sm:$0xff]  ;;  %v340_v27 = vperm.slane %v3929_v62, 6 }
  0xb5   :  { %926 = vmatpush.msrb.mxu2 %v629_v6  ;;  %946 = vmatpush.msrb.mxu3 %v645_v11  ;;  %v635_v45 = vld [vmem:[%s6507_s5 + $0x7a8] sm:$0xff]  ;;  %v618_v12 = vld [vmem:[%s6507_s5 + $0x720] sm:$0xff]  ;;  %v601_v53 = vld [vmem:[%s6507_s5 + $0x698] sm:$0xff]  ;;  %v341_v6 = vperm.slane %v3929_v62, 7 }
  0xb6   :  { %887 = vmatpush.msrb.mxu0 %v596_v13  ;;  %907 = vmatpush.msrb.mxu1 %v612_v44  ;;  %v634_v59 = vld [vmem:[%s6507_s5 + $0x7a0] sm:$0xff]  ;;  %v617_v63 = vld [vmem:[%s6507_s5 + $0x718] sm:$0xff]  ;;  %v584_v8 = vld [vmem:[%s6507_s5 + $0x610] sm:$0xff] }
  0xb7   :  { %927 = vmatpush.msrb.mxu2 %v628_v15  ;;  %947 = vmatpush.msrb.mxu3 %v644_v48  ;;  %v633_v0 = vld [vmem:[%s6507_s5 + $0x798] sm:$0xff]  ;;  %v600_v40 = vld [vmem:[%s6507_s5 + $0x690] sm:$0xff]  ;;  %v583_v44 = vld [vmem:[%s6507_s5 + $0x608] sm:$0xff] }
  0xb8   :  { %888 = vmatpush.msrb.mxu0 %v595_v57  ;;  %908 = vmatpush.msrb.mxu1 %v611_v14  ;;  %v616_v11 = vld [vmem:[%s6507_s5 + $0x710] sm:$0xff]  ;;  %v599_v62 = vld [vmem:[%s6507_s5 + $0x688] sm:$0xff]  ;;  %v370_v57 = vmul.f32 %v338_v1, %v3694_v5  ;;  %v371_v14 = vmul.f32 %v339_v7, %v3694_v5  ;;  %v3042_v1 = vld [vmem:[%s6508_s6] ss:$0 sm:$0xff] }
  0xb9   :  { %928 = vmatpush.msrb.mxu2 %v627_v16  ;;  %948 = vmatpush.msrb.mxu3 %v643_v17  ;;  %v632_v13 = vld [vmem:[%s6507_s5 + $0x790] sm:$0xff]  ;;  %v615_v15 = vld [vmem:[%s6507_s5 + $0x708] sm:$0xff]  ;;  %v582_v16 = vld [vmem:[%s6507_s5 + $0x600] sm:$0xff] }
  0xba   :  { %889 = vmatpush.msrb.mxu0 %v594_v18  ;;  %909 = vmatpush.msrb.mxu1 %v610_v4  ;;  %v631_v48 = vld [vmem:[%s6507_s5 + $0x788] sm:$0xff]  ;;  %v598_v17 = vld [vmem:[%s6507_s5 + $0x680] sm:$0xff]  ;;  %v372_v18 = vmul.f32 %v340_v27, %v3694_v5  ;;  %v373_v4 = vmul.f32 %v341_v6, %v3694_v5 }
  0xbb   :  { %929 = vmatpush.msrb.mxu2 %v626_v23  ;;  %949 = vmatpush.msrb.mxu3 %v642_v60  ;;  %v614_v23 = vld [vmem:[%s6507_s5 + $0x700] sm:$0xff] }
  0xbc   :  { %890 = vmatpush.msrb.mxu0 %v593_v61  ;;  %910 = vmatpush.msrb.mxu1 %v609_v25  ;;  %v630_v60 = vld [vmem:[%s6507_s5 + $0x780] sm:$0xff]  ;;  %v386_v61 = vadd.f32 %v370_v57, %v3850_v9  ;;  %v387_v25 = vadd.f32 %v371_v14, %v3877_v19  ;;  %v388_v5 = vadd.f32 %v372_v18, %v3909_v43  ;;  %v1199_v57 = vld [vmem:[%s6511_s9 + $0xd0] sm:$0xff]  ;;  %v1222_v14 = vld [vmem:[%s6511_s9 + $0x188] sm:$0xff] }
  0xbd   :  { %930 = vmatpush.msrb.mxu2 %v625_v24  ;;  %950 = vmatpush.msrb.mxu3 %v641_v29  ;;  %v389_v24 = vadd.f32 %v373_v4, %v3943_v10  ;;  %v994_v29 = vld [vmem:[%s6506_s4 + $0x2] sm:$0x1]  ;;  %v1035_v9 = vld [vmem:[%s6506_s4] sm:$0x1]  ;;  %v980_v10 = vld [vmem:[%s6506_s4 + $0x1] sm:$0x1] }
  0xbe   :  { %891 = vmatpush.msrb.mxu0 %v592_v30  ;;  %911 = vmatpush.msrb.mxu1 %v608_v21  ;;  %v967_v19 = vld [vmem:[%s6506_s4] sm:$0x1]  ;;  %v1053_v43 = vld [vmem:[%s6506_s4 + $0x2] sm:$0x1]  ;;  %v1095_v30 = vld [vmem:[%s6506_s4 + $0x1] sm:$0x1] }
  0xbf   :  { %931 = vmatpush.msrb.mxu2 %v624_v22  ;;  %951 = vmatpush.msrb.mxu3 %v640_v31  ;;  %v1218_v18 = vld [vmem:[%s6511_s9 + $0x168] sm:$0xff]  ;;  %v1193_v4 = vld [vmem:[%s6511_s9 + $0xa0] sm:$0xff] }
  0xc0   :  { %892 = vmatpush.msrb.mxu0 %v591_v41  ;;  %912 = vmatpush.msrb.mxu1 %v607_v32 }
  0xc1   :  { %932 = vmatpush.msrb.mxu2 %v623_v33  ;;  %952 = vmatpush.msrb.mxu3 %v639_v34  ;;  %v1043_v34 = vld [vmem:[%s6506_s4 + $0x1] sm:$0x1] }
  0xc2   :  { %893 = vmatpush.msrb.mxu0 %v590_v35  ;;  %913 = vmatpush.msrb.mxu1 %v606_v26 }
  0xc3   :  { %933 = vmatpush.msrb.mxu2 %v622_v36  ;;  %953 = vmatpush.msrb.mxu3 %v638_v37 }
  0xc4   :  { %894 = vmatpush.msrb.mxu0 %v589_v46  ;;  %914 = vmatpush.msrb.mxu1 %v605_v54  ;;  %v1087_v54 = vld [vmem:[%s6506_s4] sm:$0x1] }
  0xc5   :  { %934 = vmatpush.msrb.mxu2 %v621_v50  ;;  %954 = vmatpush.msrb.mxu3 %v637_v51 }
  0xc6   :  { %895 = vmatpush.msrb.mxu0 %v588_v52  ;;  %915 = vmatpush.msrb.mxu1 %v604_v39 }
  0xc7   :  { %935 = vmatpush.msrb.mxu2 %v620_v55  ;;  %955 = vmatpush.msrb.mxu3 %v636_v38  ;;  %v1105_v38 = vld [vmem:[%s6506_s4 + $0x2] sm:$0x1]  ;;  %s3129_s4 = smov 224  }
  0xc8   :  { %896 = vmatpush.msrb.mxu0 %v587_v47  ;;  %916 = vmatpush.msrb.mxu1 %v603_v56 }
  0xc9   :  { %936 = vmatpush.msrb.mxu2 %v619_v42  ;;  %956 = vmatpush.msrb.mxu3 %v635_v45 }
  0xca   :  { %897 = vmatpush.msrb.mxu0 %v586_v28  ;;  %917 = vmatpush.msrb.mxu1 %v602_v58  ;;  %v3041_v58 = vld [vmem:[%s6508_s6] ss:$0 sm:$0xff] }
  0xcb   :  { %937 = vmatpush.msrb.mxu2 %v618_v12  ;;  %957 = vmatpush.msrb.mxu3 %v634_v59 }
  0xcc   :  { %898 = vmatpush.msrb.mxu0 %v585_v49  ;;  %918 = vmatpush.msrb.mxu1 %v601_v53 }
  0xcd   :  { %938 = vmatpush.msrb.mxu2 %v617_v63  ;;  %958 = vmatpush.msrb.mxu3 %v633_v0  ;;  %v1139_v63 = vld [vmem:[%s6509_s7] sm:$0x1] }
  0xce   :  { %899 = vmatpush.msrb.mxu0 %v584_v8  ;;  %919 = vmatpush.msrb.mxu1 %v600_v40  ;;  %3005 = vpush %v1139_v63  ;;  %v1558_v63 = vld [vmem:[%s6515_s13 + $0x540] sm:$0xff] }
  0xcf   :  { %939 = vmatpush.msrb.mxu2 %v616_v11  ;;  %959 = vmatpush.msrb.mxu3 %v632_v13  ;;  %v1146_v11 = vld [vmem:[%s6509_s7 + $0x1] sm:$0x1]  ;;  %v3039_v13 = vld [vmem:[%s6508_s6] ss:$0 sm:$0xff]  ;;  %s3125_s6 = smov 64  }
  0xd0   :  { %900 = vmatpush.msrb.mxu0 %v583_v44  ;;  %920 = vmatpush.msrb.mxu1 %v599_v62  ;;  %3007 = vpush %v1146_v11  ;;  %v1155_v44 = vld [vmem:[%s6509_s7 + $0x2] sm:$0x1]  ;;  %v3040_v62 = vld [vmem:[#allocation2] ss:$0 sm:$0xff]  ;;  %v1544_v11 = vld [vmem:[%s6515_s13 + $0x4d0] sm:$0xff]  ;;  %s6587_s7 = sld [smem:[#allocation51_spill]] }
  0xd1   :  { %940 = vmatpush.msrb.mxu2 %v615_v15  ;;  %960 = vmatpush.msrb.mxu3 %v631_v48  ;;  %3009 = vpush %v1155_v44  ;;  %v1203_v15 = vld [vmem:[%s6511_s9 + $0xf0] sm:$0xff]  ;;  %v1226_v48 = vld [vmem:[%s6511_s9 + $0x1a8] sm:$0xff] }
  0xd2   :  { %901 = vmatpush.msrb.mxu0 %v582_v16  ;;  %921 = vmatpush.msrb.mxu1 %v598_v17  ;;  %v1220_v16 = vld [vmem:[%s6511_s9 + $0x178] sm:$0xff]  ;;  %v1195_v17 = vld [vmem:[%s6511_s9 + $0xb0] sm:$0xff] }
  0xd3   :  { %941 = vmatpush.msrb.mxu2 %v614_v23  ;;  %961 = vmatpush.msrb.mxu3 %v630_v60  ;;  %v1216_v23 = vld [vmem:[%s6511_s9 + $0x158] sm:$0xff]  ;;  %v1191_v60 = vld [vmem:[%s6511_s9 + $0x90] sm:$0xff] }
  0xd4   :  { %902 = vmatmul.f32.vlgmr.msrb.gmra.mxu0 %v386_v61  ;;  %922 = vmatmul.f32.vlgmr.msrb.gmra.mxu1 %v387_v25  ;;  %v1214_v61 = vld [vmem:[%s6511_s9 + $0x148] sm:$0xff]  ;;  %v1189_v25 = vld [vmem:[%s6511_s9 + $0x80] sm:$0xff] }
  0xd5   :  { %942 = vmatmul.f32.vlgmr.msrb.gmra.mxu2 %v388_v5  ;;  %962 = vmatmul.f32.vlgmr.msrb.gmra.mxu3 %v389_v24  ;;  %v1212_v5 = vld [vmem:[%s6511_s9 + $0x138] sm:$0xff]  ;;  %v1187_v24 = vld [vmem:[%s6511_s9 + $0x70] sm:$0xff] }
  0xd6   :  { %997 = vperm.xlu0 %3029, %v994_v29   ;;  %1038 = vperm.xlu1 %3027, %v1035_v9   ;;  %v1210_v29 = vld [vmem:[%s6511_s9 + $0x128] sm:$0xff]  ;;  %v1185_v9 = vld [vmem:[%s6511_s9 + $0x60] sm:$0xff] }
  0xd7   :  { %970 = vperm.xlu2 %3026, %v967_v19   ;;  %1237 = vmatpush.msra.mxu0 %v1203_v15  ;;  %v1208_v19 = vld [vmem:[%s6511_s9 + $0x118] sm:$0xff] }
  0xd8   :  { %1302 = vmatpush.msra.mxu3 %v1226_v48  ;;  %v1215_v48 = vld [vmem:[%s6511_s9 + $0x150] sm:$0xff] }
  0xde   :  { %1056 = vperm.xlu1 %3027, %v1053_v43   ;;  %v1183_v43 = vld [vmem:[%s6511_s9 + $0x50] sm:$0xff] }
  0xdf   :  { %983 = vperm.xlu2 %3026, %v980_v10   ;;  %v1206_v10 = vld [vmem:[%s6511_s9 + $0x108] sm:$0xff] }
  0xe6   :  { %3031 = vset.pattern.permute.xlu1 %v3121_v3 }
  0xe7   :  { %3028 = vset.pattern.permute.xlu2 %v3122_v20  ;;  %1098 = vperm.xlu1 %3031, %v1095_v30   ;;  %v1204_v30 = vld [vmem:[%s6511_s9 + $0xf8] sm:$0xff] }
  0xe8   :  { %1046 = vperm.xlu2 %3028, %v1043_v34   ;;  %1277 = vmatpush.msra.mxu2 %v1204_v30  ;;  %v4377_v34 = vld [vmem:[%s6515_s13 + $0x2d8] sm:$0xff] }
  0xef   :  { %3033 = vset.pattern.permute.xlu1 %v3122_v20 }
  0xf0   :  { %3030 = vset.pattern.permute.xlu2 %v3121_v3 }
  0xf1   :  { %1090 = vperm.xlu2 %3030, %v1087_v54   ;;  %v1175_v54 = vld [vmem:[%s6511_s9 + $0x10] sm:$0xff] }
  0xf9   :  { %1108 = vperm.xlu2 %3030, %v1105_v38  }
 0x101   :  { %3032 = vset.pattern.permute.xlu2 %v3120_v2 }
 0x102   :  { %1021 = vperm.xlu2 %3032, %v3041_v58   ;;  %v1565_v58 = vld [vmem:[%s6515_s13 + $0x578] sm:$0xff] }
 0x10a   :  { %3036 = vset.pattern.permute.xlu2 %v3121_v3 }
 0x10b   :  { %v663_v21 = vpop.f32.mrf.mxu0  ;;  %v683_v22 = vpop.f32.mrf.mxu1  ;;  %1127 = vperm.xlu2 %3036, %v3042_v1   ;;  %v1188_v1 = vld [vmem:[%s6511_s9 + $0x78] sm:$0xff] }
 0x10c   :  { %v684_v41 = vadd.f32 %v683_v22, %v663_v21  ;;  %v4354_v21 = vld [vmem:[%s6515_s13 + $0x348] sm:$0xff]  ;;  %v1181_v22 = vld [vmem:[%s6511_s9 + $0x40] sm:$0xff] }
 0x112   :  { %v703_v31 = vpop.f32.mrf.mxu2  ;;  %v723_v33 = vpop.f32.mrf.mxu3 }
 0x113   :  { %v704_v32 = vadd.f32 %v703_v31, %v684_v41  ;;  %v1202_v31 = vld [vmem:[%s6511_s9 + $0xe8] sm:$0xff]  ;;  %v4365_v41 = vld [vmem:[%s6515_s13 + $0x310] sm:$0xff] }
 0x114   :  { %1278 = vmatpush.msra.mxu2 %v1202_v31  ;;  %v4567_v31 = vld [vmem:[%s6515_s13 + $0x70] sm:$0xff] }
 0x115   :  { %v724_v35 = vadd.f32 %v723_v33, %v704_v32  ;;  %v743_v26 = vpop.f32.mrf.mxu0  ;;  %v763_v37 = vpop.f32.mrf.mxu1  ;;  %v1200_v32 = vld [vmem:[%s6511_s9 + $0xd8] sm:$0xff]  ;;  %v1179_v33 = vld [vmem:[%s6511_s9 + $0x30] sm:$0xff] }
 0x116   :  { %1279 = vmatpush.msra.mxu2 %v1200_v32  ;;  %v1516_v32 = vld [vmem:[%s6515_s13 + $0x3f0] sm:$0xff] }
 0x117   :  { %v744_v36 = vadd.f32 %v743_v26, %v724_v35  ;;  %v1198_v35 = vld [vmem:[%s6511_s9 + $0xc8] sm:$0xff]  ;;  %v1177_v26 = vld [vmem:[%s6511_s9 + $0x20] sm:$0xff] }
 0x118   :  { %1280 = vmatpush.msra.mxu2 %v1198_v35  ;;  %v1207_v35 = vld [vmem:[%s6511_s9 + $0x110] sm:$0xff] }
 0x119   :  { %v764_v46 = vadd.f32 %v763_v37, %v744_v36  ;;  %v1225_v36 = vld [vmem:[%s6511_s9 + $0x1a0] sm:$0xff] }
 0x11a   :  { %v4392_v37 = vld [vmem:[%s6515_s13 + $0x2a0] sm:$0xff]  ;;  %1262 = vmatpush.msra.mxu1 %v1225_v36  ;;  %v4582_v36 = vld [vmem:[%s6515_s13 + $0x38] sm:$0xff] }
 0x11c   :  { %v783_v50 = vpop.f32.mrf.mxu2  ;;  %v803_v52 = vpop.f32.mrf.mxu3 }
 0x11d   :  { %v784_v51 = vadd.f32 %v783_v50, %v764_v46  ;;  %v1196_v46 = vld [vmem:[%s6511_s9 + $0xb8] sm:$0xff]  ;;  %v4404_v50 = vld [vmem:[%s6515_s13 + $0x268] sm:$0xff] }
 0x11e   :  { %1281 = vmatpush.msra.mxu2 %v1196_v46  ;;  %v1509_v46 = vld [vmem:[%s6515_s13 + $0x3b8] sm:$0xff] }
 0x11f   :  { %v804_v55 = vadd.f32 %v803_v52, %v784_v51  ;;  %v1194_v51 = vld [vmem:[%s6511_s9 + $0xa8] sm:$0xff]  ;;  %v1173_v52 = vld [vmem:[%s6511_s9] sm:$0xff] }
 0x120   :  { %1282 = vmatpush.msra.mxu2 %v1194_v51 }
 0x12f   :  { %v823_v39 = vpop.f32.mrf.mxu0  ;;  %v843_v56 = vpop.f32.mrf.mxu1 }
 0x130   :  { %v824_v47 = vadd.f32 %v823_v39, %v804_v55  ;;  %v4416_v39 = vld [vmem:[%s6515_s13 + $0x230] sm:$0xff] }
 0x131   :  { %v1572_v55 = vld [vmem:[%s6515_s13 + $0x5b0] sm:$0xff]  ;;  %v4423_v38 = vpop.permute.xlu2 %970 }
 0x132   :  { %v844_v45 = vadd.f32 %v843_v56, %v824_v47 }
 0x136   :  { %v863_v42 = vpop.f32.mrf.mxu2  ;;  %v883_v12 = vpop.f32.mrf.mxu3 }
 0x137   :  { %v864_v28 = vadd.f32 %v863_v42, %v844_v45  ;;  %v1223_v42 = vld [vmem:[%s6511_s9 + $0x190] sm:$0xff]  ;;  %v1192_v45 = vld [vmem:[%s6511_s9 + $0x98] sm:$0xff] }
 0x138   :  { %1263 = vmatpush.msra.mxu1 %v1223_v42  ;;  %1283 = vmatpush.msra.mxu2 %v1192_v45  ;;  %v4597_v45 = vld [vmem:[%s6515_s13] sm:$0xff] }
 0x139   :  { %v884_v59 = vadd.f32 %v883_v12, %v864_v28  ;;  %v4425_v47 = vpop.permute.xlu2 %983  ;;  %v4438_v28 = vld [vmem:[%s6515_s13 + $0x1f8] sm:$0xff]  ;;  %v1221_v12 = vld [vmem:[%s6511_s9 + $0x180] sm:$0xff] }
 0x13a   :  { %1264 = vmatpush.msra.mxu1 %v1221_v12 }
 0x142   :  { %v4427_v56 = vpop.permute.xlu2 %1046 }
 0x14b   :  { %v4494_v44 = vpop.permute.xlu2 %1090 }
 0x151   :  { %v903_v49 = vpop.f32.mrf.mxu0  ;;  %v923_v0 = vpop.f32.mrf.mxu1 }
 0x152   :  { %v904_v53 = vadd.f32 %v903_v49, %v884_v59  ;;  %v1190_v59 = vld [vmem:[%s6511_s9 + $0x88] sm:$0xff]  ;;  %v4453_v49 = vld [vmem:[%s6515_s13 + $0x1c0] sm:$0xff] }
 0x153   :  { %1284 = vmatpush.msra.mxu2 %v1190_v59  ;;  %v1109_v51 = vpop.permute.xlu2 %1108 }
 0x154   :  { %v924_v7 = vadd.f32 %v923_v0, %v904_v53  ;;  %v4455_v53 = vpop.permute.xlu1 %1038  ;;  %v1219_v0 = vld [vmem:[%s6511_s9 + $0x170] sm:$0xff] }
 0x155   :  { %1265 = vmatpush.msra.mxu1 %v1219_v0  ;;  %1285 = vmatpush.msra.mxu2 %v1188_v1 }
 0x158   :  { %v943_v8 = vpop.f32.mrf.mxu2  ;;  %v963_v27 = vpop.f32.mrf.mxu3 }
 0x159   :  { %v944_v40 = vadd.f32 %v943_v8, %v924_v7  ;;  %v4470_v7 = vld [vmem:[%s6515_s13 + $0x188] sm:$0xff] }
 0x15a   :  { %v1551_v8 = vld [vmem:[%s6515_s13 + $0x508] sm:$0xff] }
 0x15b   :  { %v964_v6 = vadd.f32 %v963_v27, %v944_v40  ;;  %v1217_v40 = vld [vmem:[%s6511_s9 + $0x160] sm:$0xff]  ;;  %v1186_v27 = vld [vmem:[%s6511_s9 + $0x68] sm:$0xff] }
 0x15c   :  { %1266 = vmatpush.msra.mxu1 %v1217_v40  ;;  %1286 = vmatpush.msra.mxu2 %v1186_v27 }
 0x15d   :  { %1066 = vperm.xlu1 %3033, %v964_v6   ;;  %1012 = vperm.xlu0 %3029, %v964_v6  }
 0x15e   :  { %1267 = vmatpush.msra.mxu1 %v1215_v48 }
 0x165   :  { %3035 = vset.pattern.permute.xlu1 %v3121_v3  ;;  %3034 = vset.pattern.permute.xlu0 %v3122_v20  ;;  %v1201_v3 = vld [vmem:[%s6511_s9 + $0xe0] sm:$0xff]  ;;  %v1224_v20 = vld [vmem:[%s6511_s9 + $0x198] sm:$0xff] }
 0x166   :  { %1118 = vperm.xlu1 %3035, %v964_v6   ;;  %1075 = vperm.xlu0 %3034, %v3039_v13   ;;  %v4484_v6 = vld [vmem:[%s6515_s13 + $0x150] sm:$0xff]  ;;  %v966_v13 = vld [vmem:[%s6587_s7] sm:$0x77] }
 0x167   :  { %1238 = vmatpush.msra.mxu0 %v1201_v3  ;;  %1303 = vmatpush.msra.mxu3 %v1224_v20  ;;  %v4498_v15 = vperm.slane %v966_v13, 1  ;;  %v1184_v3 = vld [vmem:[%s6511_s9 + $0x58] sm:$0xff]  ;;  %v1000_v30 = vperm.slane %v966_v13, 2 }
 0x168   :  { %v4509_v20 = vld [vmem:[%s6515_s13 + $0x118] sm:$0xff]  ;;  %1287 = vmatpush.msra.mxu2 %v1184_v3 }
 0x169   :  { %1239 = vmatpush.msra.mxu0 %v1199_v57  ;;  %1304 = vmatpush.msra.mxu3 %v1222_v14  ;;  %v4511_v57 = vperm.slane %v966_v13, 4  ;;  %v4513_v14 = vperm.slane %v966_v13, 5  ;;  %v1049_v0 = vmul.f32 %v4427_v56, %v4498_v15 }
 0x16b   :  { %1305 = vmatpush.msra.mxu3 %v1220_v16  ;;  %v1213_v16 = vld [vmem:[%s6511_s9 + $0x140] sm:$0xff]  ;;  %v1050_v1 = vmul.f32 %v4427_v56, %v4513_v14 }
 0x16c   :  { %1268 = vmatpush.msra.mxu1 %v1213_v16  ;;  %v1022_v16 = vpop.permute.xlu2 %1021 }
 0x16d   :  { %1306 = vmatpush.msra.mxu3 %v1218_v18  ;;  %v4524_v18 = vpop.permute.xlu1 %1056 }
 0x16e   :  { %3037 = vset.pattern.permute.xlu1 %v3120_v2  ;;  %3038 = vset.pattern.permute.xlu0 %v3120_v2  ;;  %v1197_v2 = vld [vmem:[%s6511_s9 + $0xc0] sm:$0xff] }
 0x16f   :  { %1168 = vperm.xlu1 %3037, %v3040_v62   ;;  %1240 = vmatpush.msra.mxu0 %v1197_v2  ;;  %v4496_v62 = vperm.slane %v966_v13, 0  ;;  %v1537_v2 = vld [vmem:[%s6515_s13 + $0x498] sm:$0xff] }
 0x170   :  { %1307 = vmatpush.msra.mxu3 %v1216_v23  ;;  %v1530_v23 = vld [vmem:[%s6515_s13 + $0x460] sm:$0xff] }
 0x171   :  { %1241 = vmatpush.msra.mxu0 %v1195_v17  ;;  %v1182_v17 = vld [vmem:[%s6511_s9 + $0x48] sm:$0xff]  ;;  %v1041_v59 = vmul.f32 %v4455_v53, %v4496_v62  ;;  %v1093_v27 = vmul.f32 %v4494_v44, %v4496_v62 }
 0x172   :  { %1308 = vmatpush.msra.mxu3 %v1214_v61  ;;  %1288 = vmatpush.msra.mxu2 %v1182_v17  ;;  %v1180_v61 = vld [vmem:[%s6511_s9 + $0x38] sm:$0xff] }
 0x173   :  { %1242 = vmatpush.msra.mxu0 %v1193_v4  ;;  %v4530_v4 = vld [vmem:[%s6515_s13 + $0xe0] sm:$0xff]  ;;  %v1051_v48 = vadd.f32 %v1049_v0, %v1041_v59 }
 0x174   :  { %1309 = vmatpush.msra.mxu3 %v1212_v5  ;;  %v1523_v5 = vld [vmem:[%s6515_s13 + $0x428] sm:$0xff]  ;;  %1289 = vmatpush.msra.mxu2 %v1180_v61 }
 0x175   :  { %1243 = vmatpush.msra.mxu0 %v1191_v60  ;;  %v1211_v60 = vld [vmem:[%s6511_s9 + $0x130] sm:$0xff]  ;;  %v1099_v12 = vpop.permute.xlu1 %1098 }
 0x176   :  { %1310 = vmatpush.msra.mxu3 %v1210_v29  ;;  %v990_v29 = vmul.f32 %v4498_v15, %v4425_v47  ;;  %1269 = vmatpush.msra.mxu1 %v1211_v60 }
 0x177   :  { %1244 = vmatpush.msra.mxu0 %v1189_v25  ;;  %v4544_v25 = vld [vmem:[%s6515_s13 + $0xa8] sm:$0xff] }
 0x178   :  { %1311 = vmatpush.msra.mxu3 %v1208_v19  ;;  %v1178_v19 = vld [vmem:[%s6511_s9 + $0x28] sm:$0xff] }
 0x179   :  { %1245 = vmatpush.msra.mxu0 %v1187_v24  ;;  %v978_v24 = vmul.f32 %v4496_v62, %v4423_v38  ;;  %1290 = vmatpush.msra.mxu2 %v1178_v19 }
 0x17a   :  { %1312 = vmatpush.msra.mxu3 %v1206_v10  ;;  %v991_v10 = vmul.f32 %v4513_v14, %v4425_v47 }
 0x17b   :  { %1246 = vmatpush.msra.mxu0 %v1185_v9  ;;  %v1209_v9 = vld [vmem:[%s6511_s9 + $0x120] sm:$0xff] }
 0x17c   :  { %1597 = vmatpush.msrb.mxu3 %v4354_v21  ;;  %1270 = vmatpush.msra.mxu1 %v1209_v9 }
 0x17d   :  { %1247 = vmatpush.msra.mxu0 %v1183_v43  ;;  %v979_v43 = vmul.f32 %v4511_v57, %v4423_v38 }
 0x17e   :  { %1598 = vmatpush.msrb.mxu3 %v4365_v41  ;;  %1271 = vmatpush.msra.mxu1 %v1207_v35 }
 0x17f   :  { %1248 = vmatpush.msra.mxu0 %v1181_v22  ;;  %v1001_v22 = vperm.slane %v966_v13, 6  ;;  %v993_v38 = vadd.f32 %v991_v10, %v979_v43  ;;  %v1101_v13 = vmul.f32 %v1099_v12, %v4498_v15 }
 0x180   :  { %1599 = vmatpush.msrb.mxu3 %v4377_v34 }
 0x181   :  { %1249 = vmatpush.msra.mxu0 %v1179_v33  ;;  %v998_v33 = vpop.permute.xlu0 %997  ;;  %v1060_v56 = vmul.f32 %v4524_v18, %v1001_v22  ;;  %v1103_v60 = vadd.f32 %v1101_v13, %v1093_v27  ;;  %v1112_v62 = vmul.f32 %v1109_v51, %v1001_v22 }
 0x182   :  { %1600 = vmatpush.msrb.mxu3 %v4392_v37  ;;  %v1004_v47 = vmul.f32 %v1000_v30, %v998_v33  ;;  %v1005_v42 = vmul.f32 %v1001_v22, %v998_v33 }
 0x183   :  { %1250 = vmatpush.msra.mxu0 %v1177_v26  ;;  %v1176_v26 = vld [vmem:[%s6511_s9 + $0x18] sm:$0xff] }
 0x184   :  { %1601 = vmatpush.msrb.mxu3 %v4404_v50  ;;  %1291 = vmatpush.msra.mxu2 %v1176_v26  ;;  %v1007_v40 = vadd.f32 %v1005_v42, %v993_v38 }
 0x185   :  { %1251 = vmatpush.msra.mxu0 %v1175_v54  ;;  %v992_v54 = vadd.f32 %v990_v29, %v978_v24 }
 0x186   :  { %1602 = vmatpush.msrb.mxu3 %v4416_v39 }
 0x187   :  { %1252 = vmatpush.msra.mxu0 %v1173_v52  ;;  %v1205_v52 = vld [vmem:[%s6511_s9 + $0x100] sm:$0xff] }
 0x188   :  { %1603 = vmatpush.msrb.mxu3 %v4438_v28  ;;  %1272 = vmatpush.msra.mxu1 %v1205_v52  ;;  %v1128_v52 = vpop.permute.xlu2 %1127 }
 0x189   :  { %1622 = vmatpush.msrb.mxu0 %v1572_v55  ;;  %v1174_v55 = vld [vmem:[%s6511_s9 + $0x8] sm:$0xff]  ;;  %s3006_s9 = spop %3005 }
 0x18a   :  { %1604 = vmatpush.msrb.mxu3 %v4453_v49  ;;  %1292 = vmatpush.msra.mxu2 %v1174_v55  ;;  %s3008_s25 = spop %3007  ;;  %v1142_v33 = vstv %s3006_s9 }
 0x18b   :  { %1623 = vmatpush.msrb.mxu0 %v1565_v58  ;;  %v1502_v58 = vld [vmem:[%s6515_s13 + $0x380] sm:$0xff]  ;;  %s3010_s5 = spop %3009 }
 0x18c   :  { %1605 = vmatpush.msrb.mxu3 %v4470_v7 }
 0x18d   :  { %1624 = vmatpush.msrb.mxu0 %v1558_v63  ;;  %v1042_v63 = vmul.f32 %v4455_v53, %v4511_v57  ;;  %v1102_v53 = vmul.f32 %v1099_v12, %v4513_v14 }
 0x18e   :  { %1606 = vmatpush.msrb.mxu3 %v4484_v6 }
 0x18f   :  { %1625 = vmatpush.msrb.mxu0 %v1551_v8  ;;  %v1006_v8 = vadd.f32 %v1004_v47, %v992_v54  ;;  %v1052_v3 = vadd.f32 %v1050_v1, %v1042_v63  ;;  %v1149_v47 = vstv %s3008_s25  ;;  %v1158_v1 = vstv %s3010_s5 }
 0x190   :  { %1607 = vmatpush.msrb.mxu3 %v4509_v20 }
 0x191   :  { %1626 = vmatpush.msrb.mxu0 %v1544_v11  ;;  %v1094_v11 = vmul.f32 %v4494_v44, %v4511_v57  ;;  %v1008_v17 = vperm.slane %v1006_v8, 0  ;;  %v1062_v9 = vadd.f32 %v1060_v56, %v1052_v3 }
 0x192   :  { %1608 = vmatpush.msrb.mxu3 %v4530_v4 }
 0x193   :  { %1627 = vmatpush.msrb.mxu0 %v1537_v2  ;;  %v1059_v2 = vmul.f32 %v4524_v18, %v1000_v30  ;;  %v1104_v61 = vadd.f32 %v1102_v53, %v1094_v11 }
 0x194   :  { %1609 = vmatpush.msrb.mxu3 %v4544_v25 }
 0x195   :  { %1628 = vmatpush.msrb.mxu0 %v1530_v23  ;;  %v1009_v23 = vperm.slane %v1007_v40, 0  ;;  %v1061_v15 = vadd.f32 %v1059_v2, %v1051_v48  ;;  %v1114_v43 = vadd.f32 %v1112_v62, %v1104_v61 }
 0x196   :  { %1610 = vmatpush.msrb.mxu3 %v4567_v31 }
 0x197   :  { %1629 = vmatpush.msrb.mxu0 %v1523_v5  ;;  %v1111_v5 = vmul.f32 %v1109_v51, %v1000_v30  ;;  %v1063_v22 = vperm.slane %v1061_v15, 0  ;;  %v1116_v51 = vperm.slane %v1114_v43, 0  ;;  %v1559_v15 = vld [vmem:[%s6515_s13 + $0x548] sm:$0xff]  ;;  %v4692_v43 = vld [vmem:[%s6515_s13 + $0x518] sm:$0xff]  ;;  %v4701_v30 = vld [vmem:[%s6515_s13 + $0x4e0] sm:$0xff] }
 0x198   :  { %1611 = vmatpush.msrb.mxu3 %v4582_v36 }
 0x199   :  { %1630 = vmatpush.msrb.mxu0 %v1516_v32  ;;  %v1113_v19 = vadd.f32 %v1111_v5, %v1103_v60  ;;  %v1064_v32 = vperm.slane %v1062_v9, 0  ;;  %v4683_v9 = vld [vmem:[%s6515_s13 + $0x550] sm:$0xff] }
 0x19a   :  { %1612 = vmatpush.msrb.mxu3 %v4597_v45 }
 0x19b   :  { %1631 = vmatpush.msrb.mxu0 %v1509_v46  ;;  %v1115_v54 = vperm.slane %v1113_v19, 0  ;;  %v1552_v19 = vld [vmem:[%s6515_s13 + $0x510] sm:$0xff] }
 0x19d   :  { %1632 = vmatpush.msrb.mxu0 %v1502_v58 }
 0x1cf   :  { %v1067_v24 = vpop.permute.xlu1 %1066  ;;  %v1013_v29 = vpop.permute.xlu0 %1012 }
 0x1d0   :  { %v1015_v44 = vadd.f32 %v1013_v29, %v1008_v17  ;;  %v1016_v57 = vadd.f32 %v1013_v29, %v1009_v23  ;;  %v1069_v26 = vadd.f32 %v1067_v24, %v1063_v22  ;;  %v1070_v46 = vadd.f32 %v1067_v24, %v1064_v32  ;;  %v1573_v24 = vld [vmem:[%s6515_s13 + $0x5b8] sm:$0xff]  ;;  %v4664_v29 = vld [vmem:[%s6515_s13 + $0x5c0] sm:$0xff]  ;;  %v4713_v32 = vld [vmem:[%s6515_s13 + $0x4a8] sm:$0xff] }
 0x1d1   :  { %v1538_v22 = vld [vmem:[%s6515_s13 + $0x4a0] sm:$0xff] }
 0x1d2   :  { %v4620_v14 = vadd.f32 %v1022_v16, %v1016_v57  ;;  %v4622_v18 = vadd.f32 %v1022_v16, %v1015_v44  ;;  %v1566_v44 = vld [vmem:[%s6515_s13 + $0x580] sm:$0xff]  ;;  %v4674_v57 = vld [vmem:[%s6515_s13 + $0x588] sm:$0xff] }
 0x1d4   :  { %v1028_v10 = vrot.slane %v4620_v14, 6  ;;  %v1144_v63 = vmul.f32 %v1142_v33, %v4622_v18  ;;  %v1145_v0 = vmul.f32 %v1142_v33, %v4620_v14  ;;  %v1531_v33 = vld [vmem:[%s6515_s13 + $0x468] sm:$0xff] }
 0x1d6   :  { %v1030_v35 = vsel %vm1029_vm0, %v4622_v18, %v1028_v10  ;;  %v1545_v10 = vld [vmem:[%s6515_s13 + $0x4d8] sm:$0xff] }
 0x1d7   :  { %1034 = vst.msk [vmem:[#allocation5] sm:$0xf] %vm4626_vm2, %v1030_v35  ;;  %v4722_v35 = vld [vmem:[%s6515_s13 + $0x470] sm:$0xff] }
 0x1d8   :  { %v1119_v55 = vpop.permute.xlu1 %1118  ;;  %v1076_v38 = vpop.permute.xlu0 %1075 }
 0x1d9   :  { %v1121_v42 = vadd.f32 %v1119_v55, %v1115_v54  ;;  %v1122_v58 = vadd.f32 %v1119_v55, %v1116_v51  ;;  %v4634_v12 = vadd.f32 %v1076_v38, %v1069_v26  ;;  %v4636_v59 = vadd.f32 %v1076_v38, %v1070_v46  ;;  %v1524_v26 = vld [vmem:[%s6515_s13 + $0x430] sm:$0xff]  ;;  %v4731_v46 = vld [vmem:[%s6515_s13 + $0x438] sm:$0xff]  ;;  %v4740_v51 = vld [vmem:[%s6515_s13 + $0x400] sm:$0xff] }
 0x1da   :  { %v1517_v54 = vld [vmem:[%s6515_s13 + $0x3f8] sm:$0xff]  ;;  %v4749_v55 = vld [vmem:[%s6515_s13 + $0x3c8] sm:$0xff] }
 0x1db   :  { %6590 = vst [vmem:[#allocation10_spill] sm:$0xff] %v4634_v12  ;;  %v1151_v8 = vmul.f32 %v1149_v47, %v4634_v12  ;;  %v1152_v40 = vmul.f32 %v1149_v47, %v4636_v59  ;;  %v4642_v27 = vadd.f32 %v1128_v52, %v1121_v42  ;;  %v4644_v11 = vadd.f32 %v1128_v52, %v1122_v58  ;;  %v1510_v52 = vld [vmem:[%s6515_s13 + $0x3c0] sm:$0xff]  ;;  %v1503_v38 = vld [vmem:[%s6515_s13 + $0x388] sm:$0xff]  ;;  %v4758_v47 = vld [vmem:[%s6515_s13 + $0x390] sm:$0xff] }
 0x1dc   :  { %v1082_v13 = vrot.slane %v4636_v59, 6  ;;  %v4764_v42 = vld [vmem:[%s6515_s13 + $0x5c8] sm:$0xff] }
 0x1dd   :  { %6591 = vst [vmem:[#allocation11_spill] sm:$0xff] %v4642_v27  ;;  %v1153_v53 = vadd.f32 %v1151_v8, %v1144_v63  ;;  %v1154_v48 = vadd.f32 %v1152_v40, %v1145_v0  ;;  %v1160_v3 = vmul.f32 %v1158_v1, %v4642_v27  ;;  %v1161_v2 = vmul.f32 %v1158_v1, %v4644_v11  ;;  %v4769_v58 = vld [vmem:[%s6515_s13 + $0x368] sm:$0xff]  ;;  %v4779_v63 = vld [vmem:[%s6515_s13 + $0x590] sm:$0xff]  ;;  %v4791_v1 = vld [vmem:[%s6515_s13 + $0x558] sm:$0xff] }
 0x1de   :  { %6592 = vst [vmem:[#allocation12_spill] sm:$0xff] %v4644_v11  ;;  %v1083_v56 = vsel %vm1029_vm0, %v4634_v12, %v1082_v13  ;;  %v1134_v16 = vrot.slane %v4644_v11, 6  ;;  %v4784_v0 = vld [vmem:[%s6515_s13 + $0x330] sm:$0xff]  ;;  %v4796_v8 = vld [vmem:[%s6515_s13 + $0x2f8] sm:$0xff]  ;;  %v4803_v40 = vld [vmem:[%s6515_s13 + $0x520] sm:$0xff] }
 0x1df   :  { %v1162_v17 = vadd.f32 %v1160_v3, %v1153_v53  ;;  %v1163_v23 = vadd.f32 %v1161_v2, %v1154_v48  ;;  %1086 = vst.msk [vmem:[#allocation5 + $0x4] sm:$0xf] %vm4626_vm2, %v1083_v56  ;;  %v4808_v13 = vld [vmem:[%s6515_s13 + $0x2c0] sm:$0xff]  ;;  %v4815_v53 = vld [vmem:[%s6515_s13 + $0x4e8] sm:$0xff]  ;;  %v4827_v3 = vld [vmem:[%s6515_s13 + $0x4b0] sm:$0xff] }
 0x1e0   :  { %v1135_v60 = vsel %vm1029_vm0, %v4642_v27, %v1134_v16  ;;  %v4820_v48 = vld [vmem:[%s6515_s13 + $0x288] sm:$0xff]  ;;  %v4832_v2 = vld [vmem:[%s6515_s13 + $0x250] sm:$0xff]  ;;  %v4839_v56 = vld [vmem:[%s6515_s13 + $0x478] sm:$0xff] }
 0x1e1   :  { %v1169_v61 = vpop.permute.xlu1 %1168  ;;  %1138 = vst.msk [vmem:[#allocation5 + $0x8] sm:$0xf] %vm4626_vm2, %v1135_v60  ;;  %v4844_v16 = vld [vmem:[%s6515_s13 + $0x218] sm:$0xff]  ;;  %v4863_v60 = vld [vmem:[%s6515_s13 + $0x408] sm:$0xff]  ;;  %v4959_v27 = vld [vmem:[%s6515_s13 + $0x20] sm:$0xff] }
 0x1e2   :  { %v1171_v5 = vadd.f32 %v1169_v61, %v1162_v17  ;;  %v1172_v62 = vadd.f32 %v1169_v61, %v1163_v23  ;;  %v4851_v17 = vld [vmem:[%s6515_s13 + $0x440] sm:$0xff]  ;;  %v4868_v61 = vld [vmem:[%s6515_s13 + $0x1a8] sm:$0xff]  ;;  %6594 = vst [vmem:[#allocation14_spill] sm:$0xff] %v4959_v27 }
 0x1e3   :  { %v4856_v23 = vld [vmem:[%s6515_s13 + $0x1e0] sm:$0xff] }
 0x1e4   :  { %1253 = vmatmul.f32.vlgmr.msra.gmra.mxu0 %v1171_v5  ;;  %2980 = vmatmul.msk.f32.vlgmr.msra.gmra.mxu1 %vm1233_vm3, %v1172_v62  ;;  %v4971_v11 = vld [vmem:[%s6515_s13 + $0x5e0] sm:$0xff] }
 0x1e5   :  { %1293 = vmatmul.f32.vlgmr.msra.gmra.mxu2 %v1171_v5  ;;  %2981 = vmatmul.msk.f32.vlgmr.msra.gmra.mxu3 %vm1233_vm3, %v1172_v62  ;;  %v4875_v5 = vld [vmem:[%s6515_s13 + $0x3d0] sm:$0xff]  ;;  %6595 = vst [vmem:[#allocation15_spill] sm:$0xff] %v4971_v11 }
 0x1e6   :  { %1662 = vmatpush.msra.mxu0 %v1573_v24  ;;  %1702 = vmatpush.msra.mxu3 %v4664_v29  ;;  %v4880_v62 = vld [vmem:[%s6515_s13 + $0x170] sm:$0xff]  ;;  %v1332_v24 = vld [vmem:[%s6513_s11 + $0x78] sm:$0xff] }
 0x1e7   :  { %1348 = vmatpush.msrb.mxu1 %v1332_v24  ;;  %v4935_v24 = vld [vmem:[%s6515_s13 + $0x90] sm:$0xff] }
 0x1e8   :  { %1663 = vmatpush.msra.mxu0 %v1566_v44  ;;  %1703 = vmatpush.msra.mxu3 %v4674_v57  ;;  %v4890_v44 = vld [vmem:[%s6515_s13 + $0x398] sm:$0xff] }
 0x1ea   :  { %1664 = vmatpush.msra.mxu0 %v1559_v15  ;;  %1704 = vmatpush.msra.mxu3 %v4683_v9  ;;  %v4895_v15 = vld [vmem:[%s6515_s13 + $0x138] sm:$0xff] }
 0x1ec   :  { %1665 = vmatpush.msra.mxu0 %v1552_v19  ;;  %1705 = vmatpush.msra.mxu3 %v4692_v43  ;;  %v1331_v19 = vld [vmem:[%s6513_s11 + $0x70] sm:$0xff] }
 0x1ed   :  { %1613 = vmatmul.f32.vlgmr.msrb.gmra.mxu3 %v4622_v18  ;;  %2984 = vmatmul.msk.f32.vlgmr.msrb.gmra.mxu0 %vm1233_vm3, %v4620_v14 }
 0x1ee   :  { %1666 = vmatpush.msra.mxu0 %v1545_v10  ;;  %1706 = vmatpush.msra.mxu3 %v4701_v30  ;;  %v1577_v10 = vld [vmem:[%s6515_s13 + $0x5d8] sm:$0xff] }
 0x1ef   :  { %1349 = vmatpush.msrb.mxu1 %v1331_v19  ;;  %v1328_v19 = vld [vmem:[%s6513_s11 + $0x58] sm:$0xff] }
 0x1f0   :  { %1667 = vmatpush.msra.mxu0 %v1538_v22  ;;  %1707 = vmatpush.msra.mxu3 %v4713_v32  ;;  %v4908_v22 = vld [vmem:[%s6515_s13 + $0x100] sm:$0xff] }
 0x1f2   :  { %1668 = vmatpush.msra.mxu0 %v1531_v33  ;;  %1708 = vmatpush.msra.mxu3 %v4722_v35  ;;  %v1330_v33 = vld [vmem:[%s6513_s11 + $0x68] sm:$0xff] }
 0x1f3   :  { %1350 = vmatpush.msrb.mxu1 %v1330_v33  ;;  %v4947_v33 = vld [vmem:[%s6515_s13 + $0x58] sm:$0xff] }
 0x1f4   :  { %1669 = vmatpush.msra.mxu0 %v1524_v26  ;;  %1709 = vmatpush.msra.mxu3 %v4731_v46  ;;  %v1570_v26 = vld [vmem:[%s6515_s13 + $0x5a0] sm:$0xff]  ;;  %6593 = vst [vmem:[#allocation13_spill] sm:$0xff] %v4947_v33 }
 0x1f6   :  { %1670 = vmatpush.msra.mxu0 %v1517_v54  ;;  %1710 = vmatpush.msra.mxu3 %v4740_v51  ;;  %v4923_v54 = vld [vmem:[%s6515_s13 + $0xc8] sm:$0xff] }
 0x1f8   :  { %1671 = vmatpush.msra.mxu0 %v1510_v52  ;;  %1711 = vmatpush.msra.mxu3 %v4749_v55  ;;  %v1329_v52 = vld [vmem:[%s6513_s11 + $0x60] sm:$0xff] }
 0x1f9   :  { %1351 = vmatpush.msrb.mxu1 %v1329_v52  ;;  %v1549_v52 = vld [vmem:[%s6515_s13 + $0x4f8] sm:$0xff] }
 0x1fa   :  { %1672 = vmatpush.msra.mxu0 %v1503_v38  ;;  %1712 = vmatpush.msra.mxu3 %v4758_v47  ;;  %v1563_v38 = vld [vmem:[%s6515_s13 + $0x568] sm:$0xff] }
 0x1fb   :  { %2985 = vmatmul.msk.f32.vlgmr.msra.gmra.mxu0 %vm1233_vm3, %v4620_v14  ;;  %2986 = vmatmul.msk.f32.vlgmr.msra.gmra.mxu3 %vm1233_vm3, %v4620_v14 }
 0x1fc   :  { %1742 = vmatpush.msrb.mxu0 %v4764_v42  ;;  %1757 = vmatpush.msrb.mxu3 %v4769_v58 }
 0x1fd   :  { %1352 = vmatpush.msrb.mxu1 %v1328_v19  ;;  %v1542_v19 = vld [vmem:[%s6515_s13 + $0x4c0] sm:$0xff] }
 0x1fe   :  { %1743 = vmatpush.msrb.mxu0 %v4779_v63  ;;  %1758 = vmatpush.msrb.mxu3 %v4784_v0 }
 0x200   :  { %1744 = vmatpush.msrb.mxu0 %v4791_v1  ;;  %1759 = vmatpush.msrb.mxu3 %v4796_v8 }
 0x202   :  { %1745 = vmatpush.msrb.mxu0 %v4803_v40  ;;  %1760 = vmatpush.msrb.mxu3 %v4808_v13 }
 0x204   :  { %1746 = vmatpush.msrb.mxu0 %v4815_v53  ;;  %1761 = vmatpush.msrb.mxu3 %v4820_v48 }
 0x206   :  { %1747 = vmatpush.msrb.mxu0 %v4827_v3  ;;  %1762 = vmatpush.msrb.mxu3 %v4832_v2 }
 0x208   :  { %1748 = vmatpush.msrb.mxu0 %v4839_v56  ;;  %1763 = vmatpush.msrb.mxu3 %v4844_v16 }
 0x20a   :  { %1749 = vmatpush.msrb.mxu0 %v4851_v17  ;;  %1764 = vmatpush.msrb.mxu3 %v4856_v23 }
 0x20c   :  { %1750 = vmatpush.msrb.mxu0 %v4863_v60  ;;  %1765 = vmatpush.msrb.mxu3 %v4868_v61 }
 0x20e   :  { %1751 = vmatpush.msrb.mxu0 %v4875_v5  ;;  %1766 = vmatpush.msrb.mxu3 %v4880_v62 }
 0x210   :  { %1752 = vmatpush.msrb.mxu0 %v4890_v44  ;;  %1767 = vmatpush.msrb.mxu3 %v4895_v15 }
 0x211   :  { %2987 = vmatmul.msk.f32.vlgmr.msrb.gmra.mxu0 %vm1233_vm3, %v4620_v14 }
 0x212   :  { %1822 = vmatpush.msra.mxu0 %v1577_v10  ;;  %1768 = vmatpush.msrb.mxu3 %v4908_v22  ;;  %v1556_v10 = vld [vmem:[%s6515_s13 + $0x530] sm:$0xff] }
 0x214   :  { %1823 = vmatpush.msra.mxu0 %v1570_v26  ;;  %1769 = vmatpush.msrb.mxu3 %v4923_v54  ;;  %v1327_v26 = vld [vmem:[%s6513_s11 + $0x50] sm:$0xff] }
 0x215   :  { %1353 = vmatpush.msrb.mxu1 %v1327_v26  ;;  %v1535_v26 = vld [vmem:[%s6515_s13 + $0x488] sm:$0xff] }
 0x216   :  { %1824 = vmatpush.msra.mxu0 %v1563_v38  ;;  %1770 = vmatpush.msrb.mxu3 %v4935_v24  ;;  %v1326_v38 = vld [vmem:[%s6513_s11 + $0x48] sm:$0xff] }
 0x217   :  { %1354 = vmatpush.msrb.mxu1 %v1326_v38  ;;  %v1528_v38 = vld [vmem:[%s6515_s13 + $0x450] sm:$0xff] }
 0x218   :  { %1825 = vmatpush.msra.mxu0 %v1556_v10  ;;  %1771 = vmatpush.msrb.mxu3 %v4947_v33  ;;  %v1325_v10 = vld [vmem:[%s6513_s11 + $0x40] sm:$0xff]  ;;  %v4984_v33 = vld [vmem:[%s6515_s13 + $0x5a8] sm:$0xff] }
 0x219   :  { %6596 = vst [vmem:[#allocation16_spill] sm:$0xff] %v4984_v33  ;;  %1355 = vmatpush.msrb.mxu1 %v1325_v10  ;;  %v1521_v10 = vld [vmem:[%s6515_s13 + $0x418] sm:$0xff] }
 0x21a   :  { %1826 = vmatpush.msra.mxu0 %v1549_v52  ;;  %1772 = vmatpush.msrb.mxu3 %v4959_v27  ;;  %v1324_v52 = vld [vmem:[%s6513_s11 + $0x38] sm:$0xff]  ;;  %v4996_v27 = vld [vmem:[%s6515_s13 + $0x570] sm:$0xff] }
 0x21b   :  { %1773 = vmatmul.f32.vlgmr.msrb.gmra.mxu3 %v4622_v18  ;;  %6597 = vst [vmem:[#allocation17_spill] sm:$0xff] %v4996_v27  ;;  %1356 = vmatpush.msrb.mxu1 %v1324_v52  ;;  %v1514_v52 = vld [vmem:[%s6515_s13 + $0x3e0] sm:$0xff] }
 0x21c   :  { %1827 = vmatpush.msra.mxu0 %v1542_v19  ;;  %1862 = vmatpush.msra.mxu3 %v4971_v11  ;;  %v1323_v19 = vld [vmem:[%s6513_s11 + $0x30] sm:$0xff]  ;;  %v5008_v11 = vld [vmem:[%s6515_s13 + $0x538] sm:$0xff] }
 0x21d   :  { %1357 = vmatpush.msrb.mxu1 %v1323_v19  ;;  %v1507_v19 = vld [vmem:[%s6515_s13 + $0x3a8] sm:$0xff] }
 0x21e   :  { %1828 = vmatpush.msra.mxu0 %v1535_v26  ;;  %1863 = vmatpush.msra.mxu3 %v4984_v33  ;;  %v1322_v26 = vld [vmem:[%s6513_s11 + $0x28] sm:$0xff]  ;;  %v5020_v33 = vld [vmem:[%s6515_s13 + $0x500] sm:$0xff] }
 0x21f   :  { %1358 = vmatpush.msrb.mxu1 %v1322_v26  ;;  %v5041_v26 = vld [vmem:[%s6515_s13 + $0x490] sm:$0xff] }
 0x220   :  { %1829 = vmatpush.msra.mxu0 %v1528_v38  ;;  %1864 = vmatpush.msra.mxu3 %v4996_v27  ;;  %v1321_v38 = vld [vmem:[%s6513_s11 + $0x20] sm:$0xff]  ;;  %v5032_v27 = vld [vmem:[%s6515_s13 + $0x4c8] sm:$0xff] }
 0x221   :  { %1359 = vmatpush.msrb.mxu1 %v1321_v38  ;;  %v1319_v38 = vld [vmem:[%s6513_s11 + $0x10] sm:$0xff] }
 0x222   :  { %1830 = vmatpush.msra.mxu0 %v1521_v10  ;;  %1865 = vmatpush.msra.mxu3 %v5008_v11  ;;  %v1320_v10 = vld [vmem:[%s6513_s11 + $0x18] sm:$0xff] }
 0x223   :  { %1360 = vmatpush.msrb.mxu1 %v1320_v10  ;;  %v5062_v10 = vld [vmem:[%s6515_s13 + $0x420] sm:$0xff] }
 0x224   :  { %1831 = vmatpush.msra.mxu0 %v1514_v52  ;;  %1866 = vmatpush.msra.mxu3 %v5020_v33  ;;  %v5052_v52 = vld [vmem:[%s6515_s13 + $0x458] sm:$0xff]  ;;  %6599 = vst [vmem:[#allocation19_spill] sm:$0xff] %v5062_v10 }
 0x225   :  { %6598 = vst [vmem:[#allocation18_spill] sm:$0xff] %v5052_v52  ;;  %1361 = vmatpush.msrb.mxu1 %v1319_v38  ;;  %v5072_v38 = vld [vmem:[%s6515_s13 + $0x3e8] sm:$0xff] }
 0x226   :  { %1832 = vmatpush.msra.mxu0 %v1507_v19  ;;  %1867 = vmatpush.msra.mxu3 %v5032_v27  ;;  %v1318_v19 = vld [vmem:[%s6513_s11 + $0x8] sm:$0xff] }
 0x227   :  { %2989 = vmatmul.msk.f32.vlgmr.msra.gmra.mxu0 %vm1233_vm3, %v4620_v14  ;;  %1362 = vmatpush.msrb.mxu1 %v1318_v19  ;;  %v1335_v19 = vld [vmem:[%s6513_s11 + $0x90] sm:$0x3f] }
 0x228   :  { %2111 = vmatpush.msrb.mxu0 %v4354_v21  ;;  %1868 = vmatpush.msra.mxu3 %v5041_v26  ;;  %v1317_v21 = vld [vmem:[%s6513_s11] sm:$0xff] }
 0x229   :  { %1363 = vmatpush.msrb.mxu1 %v1317_v21  ;;  %2982 = vmatpush.msk.msrb.mxu2 %vm1344_vm4, %v1335_v19  ;;  %v1334_v21 = vld [vmem:[%s6513_s11 + $0x88] sm:$0xff]  ;;  %v1333_v19 = vld [vmem:[%s6513_s11 + $0x80] sm:$0xff] }
 0x22a   :  { %2112 = vmatpush.msrb.mxu0 %v4365_v41  ;;  %1869 = vmatpush.msra.mxu3 %v5052_v52  ;;  %v5079_v41 = vld [vmem:[%s6515_s13 + $0x358] sm:$0xff]  ;;  %v5087_v52 = vld [vmem:[%s6515_s13 + $0x3b0] sm:$0xff] }
 0x22b   :  { %1677 = vmatpush.msra.mxu1 %v5079_v41  ;;  %1382 = vmatpush.msrb.mxu2 %v1334_v21  ;;  %v5121_v21 = vld [vmem:[%s6515_s13 + $0x318] sm:$0xff] }
 0x22c   :  { %2113 = vmatpush.msrb.mxu0 %v4377_v34  ;;  %1870 = vmatpush.msra.mxu3 %v5062_v10  ;;  %v5095_v34 = vld [vmem:[%s6515_s13 + $0x320] sm:$0xff]  ;;  %v5103_v10 = vld [vmem:[%s6515_s13 + $0x350] sm:$0xff] }
 0x22d   :  { %6600 = vst [vmem:[#allocation20_spill] sm:$0xff] %v5095_v34  ;;  %1678 = vmatpush.msra.mxu1 %v5095_v34  ;;  %v5134_v34 = vld [vmem:[%s6515_s13 + $0x2e0] sm:$0xff]  ;;  %1383 = vmatpush.msrb.mxu2 %v1333_v19  ;;  %v5161_v19 = vld [vmem:[%s6515_s13 + $0x270] sm:$0xff] }
 0x22e   :  { %2114 = vmatpush.msrb.mxu0 %v4392_v37  ;;  %1871 = vmatpush.msra.mxu3 %v5072_v38  ;;  %v5111_v37 = vld [vmem:[%s6515_s13 + $0x2e8] sm:$0xff] }
 0x22f   :  { %6601 = vst [vmem:[#allocation21_spill] sm:$0xff] %v5111_v37  ;;  %1679 = vmatpush.msra.mxu1 %v5111_v37  ;;  %v5147_v37 = vld [vmem:[%s6515_s13 + $0x2a8] sm:$0xff]  ;;  %1637 = vmatpush.msra.mxu2 %v5103_v10 }
 0x230   :  { %2115 = vmatpush.msrb.mxu0 %v4404_v50  ;;  %1872 = vmatpush.msra.mxu3 %v5087_v52  ;;  %v5129_v50 = vld [vmem:[%s6515_s13 + $0x2b0] sm:$0xff] }
 0x231   :  { %2990 = vmatmul.msk.f32.vlgmr.msra.gmra.mxu3 %vm1233_vm3, %v4620_v14  ;;  %1680 = vmatpush.msra.mxu1 %v5129_v50 }
 0x232   :  { %2116 = vmatpush.msrb.mxu0 %v4416_v39  ;;  %2151 = vmatpush.msrb.mxu3 %v5103_v10  ;;  %v5142_v39 = vld [vmem:[%s6515_s13 + $0x278] sm:$0xff] }
 0x233   :  { %6602 = vst [vmem:[#allocation22_spill] sm:$0xff] %v5142_v39  ;;  %1681 = vmatpush.msra.mxu1 %v5142_v39  ;;  %1638 = vmatpush.msra.mxu2 %v5121_v21  ;;  %v5175_v39 = vld [vmem:[%s6515_s13 + $0x238] sm:$0xff] }
 0x234   :  { %2117 = vmatpush.msrb.mxu0 %v4438_v28  ;;  %2152 = vmatpush.msrb.mxu3 %v5121_v21  ;;  %v5156_v28 = vld [vmem:[%s6515_s13 + $0x240] sm:$0xff] }
 0x235   :  { %6603 = vst [vmem:[#allocation23_spill] sm:$0xff] %v5156_v28  ;;  %1682 = vmatpush.msra.mxu1 %v5156_v28  ;;  %1639 = vmatpush.msra.mxu2 %v5134_v34  ;;  %v5189_v28 = vld [vmem:[%s6515_s13 + $0x200] sm:$0xff] }
 0x236   :  { %2118 = vmatpush.msrb.mxu0 %v4453_v49  ;;  %2153 = vmatpush.msrb.mxu3 %v5134_v34  ;;  %v5170_v49 = vld [vmem:[%s6515_s13 + $0x208] sm:$0xff] }
 0x237   :  { %6604 = vst [vmem:[#allocation24_spill] sm:$0xff] %v5170_v49  ;;  %1683 = vmatpush.msra.mxu1 %v5170_v49  ;;  %1640 = vmatpush.msra.mxu2 %v5147_v37  ;;  %v5203_v49 = vld [vmem:[%s6515_s13 + $0x1c8] sm:$0xff] }
 0x238   :  { %2119 = vmatpush.msrb.mxu0 %v4470_v7  ;;  %2154 = vmatpush.msrb.mxu3 %v5147_v37  ;;  %v5184_v7 = vld [vmem:[%s6515_s13 + $0x1d0] sm:$0xff] }
 0x239   :  { %6605 = vst [vmem:[#allocation25_spill] sm:$0xff] %v5184_v7  ;;  %1684 = vmatpush.msra.mxu1 %v5184_v7  ;;  %1641 = vmatpush.msra.mxu2 %v5161_v19  ;;  %v5217_v7 = vld [vmem:[%s6515_s13 + $0x190] sm:$0xff] }
 0x23a   :  { %2120 = vmatpush.msrb.mxu0 %v4484_v6  ;;  %2155 = vmatpush.msrb.mxu3 %v5161_v19  ;;  %v5198_v6 = vld [vmem:[%s6515_s13 + $0x198] sm:$0xff] }
 0x23b   :  { %6606 = vst [vmem:[#allocation26_spill] sm:$0xff] %v5198_v6  ;;  %1685 = vmatpush.msra.mxu1 %v5198_v6  ;;  %1642 = vmatpush.msra.mxu2 %v5175_v39  ;;  %v5231_v6 = vld [vmem:[%s6515_s13 + $0x158] sm:$0xff] }
 0x23c   :  { %2121 = vmatpush.msrb.mxu0 %v4509_v20  ;;  %2156 = vmatpush.msrb.mxu3 %v5175_v39  ;;  %v5212_v20 = vld [vmem:[%s6515_s13 + $0x160] sm:$0xff]  ;;  %6609 = vst [vmem:[#allocation29_spill] sm:$0xff] %v5231_v6 }
 0x23d   :  { %6607 = vst [vmem:[#allocation27_spill] sm:$0xff] %v5212_v20  ;;  %1686 = vmatpush.msra.mxu1 %v5212_v20  ;;  %1643 = vmatpush.msra.mxu2 %v5189_v28  ;;  %v5245_v20 = vld [vmem:[%s6515_s13 + $0x120] sm:$0xff] }
 0x23e   :  { %2122 = vmatpush.msrb.mxu0 %v4530_v4  ;;  %2157 = vmatpush.msrb.mxu3 %v5189_v28  ;;  %v5226_v4 = vld [vmem:[%s6515_s13 + $0x128] sm:$0xff] }
 0x23f   :  { %6608 = vst [vmem:[#allocation28_spill] sm:$0xff] %v5226_v4  ;;  %1687 = vmatpush.msra.mxu1 %v5226_v4  ;;  %1644 = vmatpush.msra.mxu2 %v5203_v49  ;;  %v5259_v4 = vld [vmem:[%s6515_s13 + $0xe8] sm:$0xff] }
 0x240   :  { %2123 = vmatpush.msrb.mxu0 %v4544_v25  ;;  %2158 = vmatpush.msrb.mxu3 %v5203_v49  ;;  %v5240_v25 = vld [vmem:[%s6515_s13 + $0xf0] sm:$0xff] }
 0x241   :  { %6610 = vst [vmem:[#allocation30_spill] sm:$0xff] %v5240_v25  ;;  %1688 = vmatpush.msra.mxu1 %v5240_v25  ;;  %1645 = vmatpush.msra.mxu2 %v5217_v7  ;;  %v5274_v25 = vld [vmem:[%s6515_s13 + $0xb0] sm:$0xff] }
 0x242   :  { %2124 = vmatpush.msrb.mxu0 %v4567_v31  ;;  %2159 = vmatpush.msrb.mxu3 %v5217_v7  ;;  %v5254_v31 = vld [vmem:[%s6515_s13 + $0xb8] sm:$0xff] }
 0x243   :  { %6611 = vst [vmem:[#allocation31_spill] sm:$0xff] %v5254_v31  ;;  %1689 = vmatpush.msra.mxu1 %v5254_v31  ;;  %1646 = vmatpush.msra.mxu2 %v5231_v6  ;;  %v5287_v31 = vld [vmem:[%s6515_s13 + $0x78] sm:$0xff] }
 0x244   :  { %2125 = vmatpush.msrb.mxu0 %v4582_v36  ;;  %2160 = vmatpush.msrb.mxu3 %v5231_v6  ;;  %v5268_v36 = vld [vmem:[%s6515_s13 + $0x80] sm:$0xff] }
 0x245   :  { %1647 = vmatpush.msra.mxu2 %v5245_v20  ;;  %1690 = vmatpush.msra.mxu1 %v5268_v36  ;;  %v5301_v6 = vld [vmem:[%s6515_s13 + $0x40] sm:$0xff] }
 0x246   :  { %2126 = vmatpush.msrb.mxu0 %v4597_v45  ;;  %2161 = vmatpush.msrb.mxu3 %v5245_v20  ;;  %v5282_v45 = vld [vmem:[%s6515_s13 + $0x48] sm:$0xff] }
 0x247   :  { %2127 = vmatmul.f32.vlgmr.msrb.gmra.mxu0 %v4634_v12  ;;  %1648 = vmatpush.msra.mxu2 %v5259_v4 }
 0x248   :  { %2216 = vmatpush.msra.mxu0 %v4664_v29  ;;  %2162 = vmatpush.msrb.mxu3 %v5259_v4  ;;  %v5296_v29 = vld [vmem:[%s6515_s13 + $0x10] sm:$0xff] }
 0x249   :  { %1691 = vmatpush.msra.mxu1 %v5282_v45  ;;  %1649 = vmatpush.msra.mxu2 %v5274_v25 }
 0x24a   :  { %2217 = vmatpush.msra.mxu0 %v4674_v57  ;;  %2163 = vmatpush.msrb.mxu3 %v5274_v25  ;;  %v5310_v57 = vld [vmem:[%s6515_s13 + $0x8] sm:$0xff] }
 0x24b   :  { %1692 = vmatpush.msra.mxu1 %v5296_v29  ;;  %1650 = vmatpush.msra.mxu2 %v5287_v31 }
 0x24c   :  { %2218 = vmatpush.msra.mxu0 %v4683_v9  ;;  %2164 = vmatpush.msrb.mxu3 %v5287_v31  ;;  %v1227_v9 = vld [vmem:[%s6512_s10] sm:$0x3]  ;;  %s2939_s10 = sshll.u32 %s6518_s16, 4  ;;  %s2940_s10 = int_to_ptr.hbm [resolvable:$true] %s2939_s10 }
 0x24d   :  { %1651 = vmatpush.msra.mxu2 %v5301_v6  ;;  %2945 = dma.vmem_to_hbm [thread:$0]  %s2938_s19, 192, %s2940_s10, [#allocation6], %s3125_s6, %s3125_s6, %s3126_s20  }
 0x24e   :  { %2219 = vmatpush.msra.mxu0 %v4692_v43  ;;  %2165 = vmatpush.msrb.mxu3 %v5301_v6  ;;  %v1229_v43 = vperm.slane %v1227_v9, 0 }
 0x24f   :  { %1652 = vmatpush.msra.mxu2 %v5310_v57 }
 0x250   :  { %2220 = vmatpush.msra.mxu0 %v4701_v30  ;;  %2166 = vmatpush.msrb.mxu3 %v5310_v57 }
 0x251   :  { %2167 = vmatmul.f32.vlgmr.msrb.gmra.mxu3 %v4634_v12 }
 0x252   :  { %2221 = vmatpush.msra.mxu0 %v4713_v32  ;;  %2256 = vmatpush.msra.mxu3 %v4764_v42  ;;  %v5364_v42 = vld [vmem:[%s6515_s13 + $0x338] sm:$0xff] }
 0x254   :  { %2222 = vmatpush.msra.mxu0 %v4722_v35  ;;  %2257 = vmatpush.msra.mxu3 %v4779_v63  ;;  %v5371_v63 = vld [vmem:[%s6515_s13 + $0x598] sm:$0xff] }
 0x256   :  { %2223 = vmatpush.msra.mxu0 %v4731_v46  ;;  %2258 = vmatpush.msra.mxu3 %v4791_v1 }
 0x258   :  { %2224 = vmatpush.msra.mxu0 %v4740_v51  ;;  %2259 = vmatpush.msra.mxu3 %v4803_v40  ;;  %v5350_v51 = vld [vmem:[%s6515_s13 + $0x370] sm:$0xff]  ;;  %v5384_v40 = vld [vmem:[%s6515_s13 + $0x560] sm:$0xff] }
 0x25a   :  { %2225 = vmatpush.msra.mxu0 %v4749_v55  ;;  %2260 = vmatpush.msra.mxu3 %v4815_v53  ;;  %v1230_v55 = vperm.slane %v1227_v9, 1  ;;  %v5389_v53 = vld [vmem:[%s6515_s13 + $0x2c8] sm:$0xff] }
 0x25b   :  { %v5486_v9 = vld [vmem:[%s6515_s13 + $0x448] sm:$0xff] }
 0x25c   :  { %2226 = vmatpush.msra.mxu0 %v4758_v47  ;;  %2261 = vmatpush.msra.mxu3 %v4827_v3  ;;  %v5357_v47 = vld [vmem:[%s6515_s13 + $0x5d0] sm:$0xff]  ;;  %v5402_v3 = vld [vmem:[%s6515_s13 + $0x528] sm:$0xff]  ;;  %6614 = vst [vmem:[#allocation34_spill] sm:$0xff] %v5486_v9 }
 0x25d   :  { %2993 = vmatmul.msk.f32.vlgmr.msra.gmra.mxu0 %vm1233_vm3, %v4636_v59 }
 0x25e   :  { %2271 = vmatpush.msrb.mxu0 %v4769_v58  ;;  %2262 = vmatpush.msra.mxu3 %v4839_v56  ;;  %v5415_v56 = vld [vmem:[%s6515_s13 + $0x328] sm:$0xff] }
 0x260   :  { %2272 = vmatpush.msrb.mxu0 %v4784_v0  ;;  %2263 = vmatpush.msra.mxu3 %v4851_v17  ;;  %v5376_v0 = vld [vmem:[%s6515_s13 + $0x300] sm:$0xff]  ;;  %v5429_v17 = vld [vmem:[%s6515_s13 + $0x4f0] sm:$0xff] }
 0x261   :  { %v1254_v30 = vpop.f32.mrf.mxu0  ;;  %v1274_v35 = vpop.f32.mrf.mxu1 }
 0x262   :  { %2273 = vmatpush.msrb.mxu0 %v4796_v8  ;;  %2264 = vmatpush.msra.mxu3 %v4863_v60  ;;  %v1255_v32 = vadd.f32 %v1254_v30, %v1229_v43  ;;  %v5439_v60 = vld [vmem:[%s6515_s13 + $0x220] sm:$0xff]  ;;  %v5492_v43 = vld [vmem:[%s6515_s13 + $0x178] sm:$0xff]  ;;  %v5505_v30 = vld [vmem:[%s6515_s13 + $0x410] sm:$0xff] }
 0x263   :  { %6615 = vst [vmem:[#allocation35_spill] sm:$0xff] %v5505_v30 }
 0x264   :  { %2274 = vmatpush.msrb.mxu0 %v4808_v13  ;;  %2265 = vmatpush.msra.mxu3 %v4875_v5  ;;  %v1275_v46 = vadd.f32 %v1274_v35, %v1255_v32  ;;  %v5453_v5 = vld [vmem:[%s6515_s13 + $0x2b8] sm:$0xff]  ;;  %v5519_v35 = vld [vmem:[%s6515_s13 + $0x210] sm:$0xff] }
 0x265   :  { %v6616_v32 = vld [vmem:[#allocation13_spill] sm:$0xff] }
 0x266   :  { %2275 = vmatpush.msrb.mxu0 %v4820_v48  ;;  %2266 = vmatpush.msra.mxu3 %v4890_v44  ;;  %v5397_v48 = vld [vmem:[%s6515_s13 + $0x360] sm:$0xff] }
 0x267   :  { %2994 = vmatmul.msk.f32.vlgmr.msra.gmra.mxu3 %vm1233_vm3, %v4636_v59  ;;  %1364 = vmatmul.f32.vlgmr.msrb.gmra.mxu1 %v1275_v46  ;;  %v5467_v44 = vld [vmem:[%s6515_s13 + $0x480] sm:$0xff]  ;;  %v5526_v46 = vld [vmem:[%s6515_s13 + $0x108] sm:$0xff] }
 0x268   :  { %2276 = vmatpush.msrb.mxu0 %v4832_v2  ;;  %2311 = vmatpush.msrb.mxu3 %v5350_v51  ;;  %v1294_v58 = vpop.f32.mrf.mxu2  ;;  %v1314_v8 = vpop.f32.mrf.mxu3  ;;  %v5407_v2 = vld [vmem:[%s6515_s13 + $0x290] sm:$0xff]  ;;  %6613 = vst [vmem:[#allocation33_spill] sm:$0xff] %v5467_v44 }
 0x269   :  { %1782 = vmatpush.msrb.mxu1 %v5357_v47  ;;  %v1295_v1 = vadd.f32 %v1294_v58, %v1230_v55  ;;  %v6617_v55 = vld [vmem:[#allocation14_spill] sm:$0xff] }
 0x26a   :  { %2277 = vmatpush.msrb.mxu0 %v4844_v16  ;;  %2312 = vmatpush.msrb.mxu3 %v5364_v42  ;;  %v5420_v16 = vld [vmem:[%s6515_s13 + $0x258] sm:$0xff] }
 0x26b   :  { %v1315_v13 = vadd.f32 %v1314_v8, %v1295_v1  ;;  %1783 = vmatpush.msrb.mxu1 %v5371_v63  ;;  %v5533_v58 = vld [vmem:[%s6515_s13 + $0x3d8] sm:$0xff]  ;;  %v5545_v8 = vld [vmem:[%s6515_s13 + $0xd0] sm:$0xff] }
 0x26c   :  { %2278 = vmatpush.msrb.mxu0 %v4856_v23  ;;  %2313 = vmatpush.msrb.mxu3 %v5376_v0  ;;  %v5434_v23 = vld [vmem:[%s6515_s13 + $0x2f0] sm:$0xff]  ;;  %6618 = vst [vmem:[#allocation13_spill] sm:$0xff] %v5533_v58  ;;  %v5538_v1 = vld [vmem:[%s6515_s13 + $0x1d8] sm:$0xff] }
 0x26d   :  { %1784 = vmatpush.msrb.mxu1 %v5384_v40  ;;  %2983 = vmatmul.msk.f32.vlgmr.msrb.gmra.mxu2 %vm1340_vm5, %v1315_v13  ;;  %v6619_v13 = vld [vmem:[#allocation15_spill] sm:$0xff] }
 0x26e   :  { %2279 = vmatpush.msrb.mxu0 %v4868_v61  ;;  %2314 = vmatpush.msrb.mxu3 %v5389_v53  ;;  %v5448_v61 = vld [vmem:[%s6515_s13 + $0x4b8] sm:$0xff] }
 0x26f   :  { %1717 = vmatpush.msrb.mxu2 %v5397_v48  ;;  %1785 = vmatpush.msrb.mxu1 %v5402_v3  ;;  %6612 = vst [vmem:[#allocation32_spill] sm:$0xff] %v5448_v61 }
 0x270   :  { %2280 = vmatpush.msrb.mxu0 %v4880_v62  ;;  %2315 = vmatpush.msrb.mxu3 %v5407_v2  ;;  %v5459_v62 = vld [vmem:[%s6515_s13 + $0x1e8] sm:$0xff] }
 0x271   :  { %1693 = vmatmul.f32.vlgmr.msra.gmra.mxu1 %v4622_v18  ;;  %1718 = vmatpush.msrb.mxu2 %v5415_v56 }
 0x272   :  { %2281 = vmatpush.msrb.mxu0 %v4895_v15  ;;  %2316 = vmatpush.msrb.mxu3 %v5420_v16  ;;  %v5473_v15 = vld [vmem:[%s6515_s13 + $0x1b0] sm:$0xff] }
 0x273   :  { %1786 = vmatpush.msrb.mxu1 %v5429_v17  ;;  %1719 = vmatpush.msrb.mxu2 %v5434_v23 }
 0x274   :  { %2282 = vmatpush.msrb.mxu0 %v4908_v22  ;;  %2317 = vmatpush.msrb.mxu3 %v5439_v60  ;;  %v5481_v22 = vld [vmem:[%s6515_s13 + $0x280] sm:$0xff] }
 0x275   :  { %1787 = vmatpush.msrb.mxu1 %v5448_v61  ;;  %1720 = vmatpush.msrb.mxu2 %v5453_v5  ;;  %v5700_v61 = vld [vmem:[%s6515_s13 + $0x1f0] sm:$0xff] }
 0x276   :  { %2283 = vmatpush.msrb.mxu0 %v4923_v54  ;;  %2318 = vmatpush.msrb.mxu3 %v5459_v62  ;;  %v5500_v54 = vld [vmem:[%s6515_s13 + $0x248] sm:$0xff] }
 0x277   :  { %1788 = vmatpush.msrb.mxu1 %v5467_v44  ;;  %1653 = vmatmul.f32.vlgmr.msra.gmra.mxu2 %v4622_v18  ;;  %v5586_v44 = vld [vmem:[%s6515_s13 + $0x340] sm:$0xff] }
 0x278   :  { %2284 = vmatpush.msrb.mxu0 %v4935_v24  ;;  %2319 = vmatpush.msrb.mxu3 %v5473_v15  ;;  %v5512_v24 = vld [vmem:[%s6515_s13 + $0x140] sm:$0xff] }
 0x279   :  { %1721 = vmatpush.msrb.mxu2 %v5481_v22  ;;  %1789 = vmatpush.msrb.mxu1 %v5486_v9  ;;  %v5571_v9 = vld [vmem:[%s6515_s13 + $0x98] sm:$0xff] }
 0x27a   :  { %2285 = vmatpush.msrb.mxu0 %v6616_v32  ;;  %2320 = vmatpush.msrb.mxu3 %v5492_v43  ;;  %v5552_v32 = vld [vmem:[%s6515_s13 + $0x3a0] sm:$0xff] }
 0x27b   :  { %1722 = vmatpush.msrb.mxu2 %v5500_v54  ;;  %1790 = vmatpush.msrb.mxu1 %v5505_v30  ;;  %6620 = vst [vmem:[#allocation14_spill] sm:$0xff] %v5552_v32  ;;  %v6622_v30 = vld [vmem:[#allocation16_spill] sm:$0xff] }
 0x27c   :  { %2286 = vmatpush.msrb.mxu0 %v6617_v55  ;;  %2321 = vmatpush.msrb.mxu3 %v5512_v24  ;;  %v5557_v55 = vld [vmem:[%s6515_s13 + $0x1a0] sm:$0xff] }
 0x27d   :  { %2287 = vmatmul.f32.vlgmr.msrb.gmra.mxu0 %v4634_v12  ;;  %1723 = vmatpush.msrb.mxu2 %v5519_v35  ;;  %6621 = vst [vmem:[#allocation15_spill] sm:$0xff] %v5557_v55 }
 0x27e   :  { %2376 = vmatpush.msra.mxu0 %v6619_v13  ;;  %2322 = vmatpush.msrb.mxu3 %v5526_v46  ;;  %v5566_v13 = vld [vmem:[%s6515_s13 + $0x378] sm:$0xff] }
 0x27f   :  { %1791 = vmatpush.msrb.mxu1 %v5533_v58  ;;  %1724 = vmatpush.msrb.mxu2 %v5538_v1  ;;  %6623 = vst [vmem:[#allocation16_spill] sm:$0xff] %v5566_v13  ;;  %v6625_v58 = vld [vmem:[#allocation17_spill] sm:$0xff] }
 0x280   :  { %2377 = vmatpush.msra.mxu0 %v6622_v30  ;;  %2323 = vmatpush.msrb.mxu3 %v5545_v8  ;;  %v5578_v30 = vld [vmem:[%s6515_s13 + $0x168] sm:$0xff]  ;;  %6626 = vst [vmem:[#allocation17_spill] sm:$0xff] %v5586_v44 }
 0x281   :  { %1792 = vmatpush.msrb.mxu1 %v5552_v32  ;;  %1725 = vmatpush.msrb.mxu2 %v5557_v55  ;;  %6624 = vst [vmem:[#allocation36_spill] sm:$0xff] %v5578_v30  ;;  %v5591_v32 = vld [vmem:[%s6515_s13 + $0x60] sm:$0xff]  ;;  %v5681_v55 = vld [vmem:[%s6515_s13 + $0x228] sm:$0xff] }
 0x282   :  { %2378 = vmatpush.msra.mxu0 %v6625_v58  ;;  %2988 = vmatmul.msk.f32.vlgmr.msrb.gmra.mxu1 %vm1233_vm3, %v4620_v14  ;;  %v5598_v58 = vld [vmem:[%s6515_s13 + $0x130] sm:$0xff]  ;;  %v5605_v14 = vld [vmem:[%s6515_s13 + $0x308] sm:$0xff] }
 0x283   :  { %1837 = vmatpush.msra.mxu1 %v5566_v13  ;;  %2324 = vmatpush.msrb.mxu3 %v5571_v9  ;;  %6627 = vst [vmem:[#allocation37_spill] sm:$0xff] %v5598_v58  ;;  %v5610_v13 = vld [vmem:[%s6515_s13 + $0x28] sm:$0xff] }
 0x284   :  { %2379 = vmatpush.msra.mxu0 %v5008_v11  ;;  %1726 = vmatpush.msrb.mxu2 %v5578_v30  ;;  %6628 = vst [vmem:[#allocation38_spill] sm:$0xff] %v5605_v14  ;;  %v5619_v11 = vld [vmem:[%s6515_s13 + $0x5b0] sm:$0xff] }
 0x285   :  { %1838 = vmatpush.msra.mxu1 %v5586_v44  ;;  %2325 = vmatpush.msrb.mxu3 %v5591_v32  ;;  %v5624_v30 = vld [vmem:[%s6515_s13 + $0x2d0] sm:$0xff]  ;;  %v5638_v44 = vld [vmem:[%s6515_s13 + $0x578] sm:$0xff] }
 0x286   :  { %2380 = vmatpush.msra.mxu0 %v5020_v33  ;;  %1727 = vmatpush.msrb.mxu2 %v5598_v58  ;;  %6629 = vst [vmem:[#allocation39_spill] sm:$0xff] %v5624_v30  ;;  %v5631_v33 = vld [vmem:[%s6515_s13 + $0xf8] sm:$0xff]  ;;  %v5662_v58 = vld [vmem:[%s6515_s13 + $0x260] sm:$0xff] }
 0x287   :  { %1839 = vmatpush.msra.mxu1 %v5605_v14  ;;  %2326 = vmatpush.msrb.mxu3 %v5610_v13  ;;  %6630 = vst [vmem:[#allocation40_spill] sm:$0xff] %v5631_v33  ;;  %v5643_v14 = vld [vmem:[%s6515_s13 + $0x298] sm:$0xff] }
 0x288   :  { %2327 = vmatmul.f32.vlgmr.msrb.gmra.mxu3 %v4634_v12  ;;  %2381 = vmatpush.msra.mxu0 %v5032_v27  ;;  %6631 = vst [vmem:[#allocation41_spill] sm:$0xff] %v5643_v14  ;;  %v5650_v12 = vld [vmem:[%s6515_s13 + $0xc0] sm:$0xff] }
 0x289   :  { %2645 = vmatpush.msra.mxu3 %v5619_v11  ;;  %1840 = vmatpush.msra.mxu1 %v5624_v30  ;;  %6632 = vst [vmem:[#allocation42_spill] sm:$0xff] %v5650_v12  ;;  %v5657_v27 = vld [vmem:[%s6515_s13 + $0x540] sm:$0xff]  ;;  %v5669_v30 = vld [vmem:[%s6515_s13 + $0x88] sm:$0xff] }
 0x28a   :  { %1728 = vmatpush.msrb.mxu2 %v5631_v33  ;;  %2382 = vmatpush.msra.mxu0 %v5041_v26  ;;  %6633 = vst [vmem:[#allocation43_spill] sm:$0xff] %v5662_v58  ;;  %v6634_v26 = vld [vmem:[#allocation18_spill] sm:$0xff]  ;;  %v5676_v33 = vld [vmem:[%s6515_s13 + $0x508] sm:$0xff] }
 0x28b   :  { %2646 = vmatpush.msra.mxu3 %v5638_v44  ;;  %1841 = vmatpush.msra.mxu1 %v5643_v14  ;;  %6635 = vst [vmem:[#allocation18_spill] sm:$0xff] %v5681_v55  ;;  %v5688_v14 = vld [vmem:[%s6515_s13 + $0x50] sm:$0xff] }
 0x28c   :  { %1729 = vmatpush.msrb.mxu2 %v5650_v12  ;;  %2383 = vmatpush.msra.mxu0 %v6634_v26  ;;  %6636 = vst [vmem:[#allocation44_spill] sm:$0xff] %v5688_v14  ;;  %v6637_v26 = vld [vmem:[#allocation19_spill] sm:$0xff]  ;;  %v5695_v12 = vld [vmem:[%s6515_s13 + $0x4d0] sm:$0xff] }
 0x28d   :  { %2647 = vmatpush.msra.mxu3 %v5657_v27  ;;  %1842 = vmatpush.msra.mxu1 %v5662_v58  ;;  %6638 = vst [vmem:[#allocation19_spill] sm:$0xff] %v5700_v61  ;;  %v5707_v58 = vld [vmem:[%s6515_s13 + $0x18] sm:$0xff] }
 0x28e   :  { %1730 = vmatpush.msrb.mxu2 %v5669_v30  ;;  %2384 = vmatpush.msra.mxu0 %v6637_v26  ;;  %6639 = vst [vmem:[#allocation45_spill] sm:$0xff] %v5707_v58  ;;  %v5714_v26 = vld [vmem:[%s6515_s13 + $0x498] sm:$0xff] }
 0x28f   :  { %2648 = vmatpush.msra.mxu3 %v5676_v33  ;;  %1843 = vmatpush.msra.mxu1 %v5681_v55  ;;  %v5721_v55 = vld [vmem:[%s6515_s13 + $0x1b8] sm:$0xff] }
 0x290   :  { %1731 = vmatpush.msrb.mxu2 %v5688_v14  ;;  %2385 = vmatpush.msra.mxu0 %v5072_v38  ;;  %6640 = vst [vmem:[#allocation46_spill] sm:$0xff] %v5721_v55  ;;  %v5728_v38 = vld [vmem:[%s6515_s13 + $0x460] sm:$0xff]  ;;  %v5771_v14 = vld [vmem:[%s6515_s13 + $0x3b8] sm:$0xff] }
 0x291   :  { %2649 = vmatpush.msra.mxu3 %v5695_v12  ;;  %1844 = vmatpush.msra.mxu1 %v5700_v61  ;;  %v5737_v61 = vld [vmem:[%s6515_s13 + $0x180] sm:$0xff] }
 0x292   :  { %1732 = vmatpush.msrb.mxu2 %v5707_v58  ;;  %2386 = vmatpush.msra.mxu0 %v5087_v52  ;;  %6641 = vst [vmem:[#allocation47_spill] sm:$0xff] %v5737_v61  ;;  %v5742_v52 = vld [vmem:[%s6515_s13 + $0x428] sm:$0xff]  ;;  %v5757_v58 = vld [vmem:[%s6515_s13 + $0x3f0] sm:$0xff] }
 0x293   :  { %2650 = vmatpush.msra.mxu3 %v5714_v26  ;;  %1733 = vmatmul.f32.vlgmr.msrb.gmra.mxu2 %v4622_v18 }
 0x294   :  { %1797 = vmatpush.msra.mxu2 %v5350_v51  ;;  %1845 = vmatpush.msra.mxu1 %v5721_v55  ;;  %v5752_v55 = vld [vmem:[%s6515_s13 + $0x148] sm:$0xff] }
 0x295   :  { %2997 = vmatmul.msk.f32.vlgmr.msra.gmra.mxu0 %vm1233_vm3, %v4636_v59  ;;  %2651 = vmatpush.msra.mxu3 %v5728_v38 }
 0x296   :  { %2660 = vmatpush.msrb.mxu0 %v5103_v10  ;;  %1798 = vmatpush.msra.mxu2 %v5364_v42  ;;  %v5766_v10 = vld [vmem:[%s6515_s13 + $0x110] sm:$0xff] }
 0x297   :  { %1846 = vmatpush.msra.mxu1 %v5737_v61  ;;  %2652 = vmatpush.msra.mxu3 %v5742_v52  ;;  %6642 = vst [vmem:[#allocation48_spill] sm:$0xff] %v5766_v10  ;;  %v5785_v61 = vld [vmem:[%s6515_s13 + $0x380] sm:$0xff] }
 0x298   :  { %2661 = vmatpush.msrb.mxu0 %v5121_v21  ;;  %1799 = vmatpush.msra.mxu2 %v5376_v0  ;;  %v5780_v21 = vld [vmem:[%s6515_s13 + $0xd8] sm:$0xff] }
 0x299   :  { %1847 = vmatpush.msra.mxu1 %v5752_v55  ;;  %2653 = vmatpush.msra.mxu3 %v5757_v58  ;;  %6643 = vst [vmem:[#allocation49_spill] sm:$0xff] %v5780_v21 }
 0x29a   :  { %2662 = vmatpush.msrb.mxu0 %v5134_v34  ;;  %1800 = vmatpush.msra.mxu2 %v5389_v53  ;;  %v5794_v34 = vld [vmem:[%s6515_s13 + $0xa0] sm:$0xff] }
 0x29b   :  { %1848 = vmatpush.msra.mxu1 %v5766_v10  ;;  %2654 = vmatpush.msra.mxu3 %v5771_v14  ;;  %v5803_v10 = vld [vmem:[%s6515_s13 + $0x68] sm:$0xff] }
 0x29c   :  { %2663 = vmatpush.msrb.mxu0 %v5147_v37  ;;  %1801 = vmatpush.msra.mxu2 %v5407_v2  ;;  %v6644_v37 = vld [vmem:[#allocation12_spill] sm:$0xff] }
 0x29d   :  { %1849 = vmatpush.msra.mxu1 %v5780_v21  ;;  %2655 = vmatpush.msra.mxu3 %v5785_v61  ;;  %v6645_v21 = vld [vmem:[#allocation20_spill] sm:$0xff] }
 0x29e   :  { %2664 = vmatpush.msrb.mxu0 %v5161_v19  ;;  %1802 = vmatpush.msra.mxu2 %v5420_v16  ;;  %v5813_v19 = vld [vmem:[%s6515_s13 + $0x30] sm:$0xff] }
 0x29f   :  { %1850 = vmatpush.msra.mxu1 %v5794_v34  ;;  %2998 = vmatmul.msk.f32.vlgmr.msra.gmra.mxu3 %vm1233_vm3, %v6644_v37 }
 0x2a0   :  { %2665 = vmatpush.msrb.mxu0 %v5175_v39  ;;  %2700 = vmatpush.msrb.mxu3 %v5079_v41  ;;  %v5824_v41 = vld [vmem:[%s6515_s13 + $0x5b8] sm:$0xff] }
 0x2a1   :  { %1803 = vmatpush.msra.mxu2 %v5439_v60  ;;  %1851 = vmatpush.msra.mxu1 %v5803_v10  ;;  %v6646_v39 = vld [vmem:[#allocation21_spill] sm:$0xff] }
 0x2a2   :  { %2666 = vmatpush.msrb.mxu0 %v5189_v28  ;;  %2701 = vmatpush.msrb.mxu3 %v6645_v21  ;;  %v5833_v28 = vld [vmem:[%s6515_s13 + $0x580] sm:$0xff]  ;;  %v6647_v21 = vld [vmem:[#allocation29_spill] sm:$0xff] }
 0x2a3   :  { %1804 = vmatpush.msra.mxu2 %v5459_v62  ;;  %1852 = vmatpush.msra.mxu1 %v5813_v19 }
 0x2a4   :  { %2667 = vmatpush.msrb.mxu0 %v5203_v49  ;;  %2702 = vmatpush.msrb.mxu3 %v6646_v39  ;;  %v5842_v49 = vld [vmem:[%s6515_s13 + $0x548] sm:$0xff]  ;;  %v6648_v39 = vld [vmem:[#allocation22_spill] sm:$0xff] }
 0x2a5   :  { %1853 = vmatmul.f32.vlgmr.msra.gmra.mxu1 %v4622_v18  ;;  %1805 = vmatpush.msra.mxu2 %v5473_v15 }
 0x2a6   :  { %2176 = vmatpush.msrb.mxu1 %v5824_v41  ;;  %2668 = vmatpush.msrb.mxu0 %v5217_v7  ;;  %v5851_v7 = vld [vmem:[%s6515_s13 + $0x510] sm:$0xff] }
 0x2a7   :  { %2703 = vmatpush.msrb.mxu3 %v5129_v50  ;;  %1806 = vmatpush.msra.mxu2 %v5492_v43  ;;  %v6649_v50 = vld [vmem:[#allocation23_spill] sm:$0xff] }
 0x2a8   :  { %2177 = vmatpush.msrb.mxu1 %v5833_v28  ;;  %2669 = vmatpush.msrb.mxu0 %v6647_v21  ;;  %v5860_v21 = vld [vmem:[%s6515_s13 + $0x4d8] sm:$0xff] }
 0x2a9   :  { %2704 = vmatpush.msrb.mxu3 %v6648_v39  ;;  %1807 = vmatpush.msra.mxu2 %v5512_v24  ;;  %v6650_v39 = vld [vmem:[#allocation24_spill] sm:$0xff] }
 0x2aa   :  { %2178 = vmatpush.msrb.mxu1 %v5842_v49  ;;  %2670 = vmatpush.msrb.mxu0 %v5245_v20  ;;  %v5869_v20 = vld [vmem:[%s6515_s13 + $0x4a0] sm:$0xff] }
 0x2ab   :  { %2705 = vmatpush.msrb.mxu3 %v6649_v50  ;;  %1808 = vmatpush.msra.mxu2 %v5526_v46  ;;  %v6651_v50 = vld [vmem:[#allocation25_spill] sm:$0xff] }
 0x2ac   :  { %2179 = vmatpush.msrb.mxu1 %v5851_v7  ;;  %2671 = vmatpush.msrb.mxu0 %v5259_v4  ;;  %v5878_v4 = vld [vmem:[%s6515_s13 + $0x468] sm:$0xff] }
 0x2ad   :  { %2706 = vmatpush.msrb.mxu3 %v6650_v39  ;;  %1809 = vmatpush.msra.mxu2 %v5545_v8  ;;  %v6652_v39 = vld [vmem:[#allocation26_spill] sm:$0xff] }
 0x2ae   :  { %2180 = vmatpush.msrb.mxu1 %v5860_v21  ;;  %2672 = vmatpush.msrb.mxu0 %v5274_v25  ;;  %v5887_v25 = vld [vmem:[%s6515_s13 + $0x430] sm:$0xff] }
 0x2af   :  { %2707 = vmatpush.msrb.mxu3 %v6651_v50  ;;  %1810 = vmatpush.msra.mxu2 %v5571_v9  ;;  %6653 = vst [vmem:[#allocation12_spill] sm:$0xff] %v5887_v25  ;;  %v6654_v50 = vld [vmem:[#allocation27_spill] sm:$0xff] }
 0x2b0   :  { %2181 = vmatpush.msrb.mxu1 %v5869_v20  ;;  %2673 = vmatpush.msrb.mxu0 %v5287_v31  ;;  %v5896_v31 = vld [vmem:[%s6515_s13 + $0x3f8] sm:$0xff] }
 0x2b1   :  { %2708 = vmatpush.msrb.mxu3 %v6652_v39  ;;  %1811 = vmatpush.msra.mxu2 %v5591_v32  ;;  %v6655_v39 = vld [vmem:[#allocation28_spill] sm:$0xff] }
 0x2b2   :  { %2182 = vmatpush.msrb.mxu1 %v5878_v4  ;;  %2674 = vmatpush.msrb.mxu0 %v5301_v6  ;;  %v2598_v6 = vld [vmem:[%s6515_s13 + $0x5c8] sm:$0xff] }
 0x2b3   :  { %2709 = vmatpush.msrb.mxu3 %v6654_v50  ;;  %1812 = vmatpush.msra.mxu2 %v5610_v13  ;;  %v5910_v50 = vld [vmem:[%s6515_s13 + $0x3c0] sm:$0xff] }
 0x2b4   :  { %2183 = vmatpush.msrb.mxu1 %v5887_v25  ;;  %2675 = vmatpush.msrb.mxu0 %v5310_v57  ;;  %v6656_v25 = vld [vmem:[#allocation11_spill] sm:$0xff]  ;;  %v6657_v57 = vld [vmem:[#allocation30_spill] sm:$0xff] }
 0x2b5   :  { %2710 = vmatpush.msrb.mxu3 %v6655_v39  ;;  %1813 = vmatmul.f32.vlgmr.msra.gmra.mxu2 %v4622_v18  ;;  %v2591_v18 = vld [vmem:[%s6515_s13 + $0x590] sm:$0xff]  ;;  %v6658_v39 = vld [vmem:[#allocation31_spill] sm:$0xff] }
 0x2b6   :  { %2136 = vmatpush.msrb.mxu2 %v5619_v11  ;;  %2184 = vmatpush.msrb.mxu1 %v5896_v31  ;;  %v5921_v11 = vld [vmem:[%s6515_s13 + $0x388] sm:$0xff] }
 0x2b7   :  { %2676 = vmatmul.f32.vlgmr.msrb.gmra.mxu0 %v6656_v25  ;;  %2711 = vmatpush.msrb.mxu3 %v6657_v57  ;;  %v2584_v57 = vld [vmem:[%s6515_s13 + $0x558] sm:$0xff] }
 0x2b8   :  { %2765 = vmatpush.msra.mxu0 %v2598_v6  ;;  %2137 = vmatpush.msrb.mxu2 %v5638_v44  ;;  %v2577_v44 = vld [vmem:[%s6515_s13 + $0x520] sm:$0xff] }
 0x2b9   :  { %2185 = vmatpush.msrb.mxu1 %v5910_v50  ;;  %2712 = vmatpush.msrb.mxu3 %v6658_v39  ;;  %v6674_v6 = vld [vmem:[#allocation38_spill] sm:$0xff] }
 0x2ba   :  { %2766 = vmatpush.msra.mxu0 %v2591_v18  ;;  %2138 = vmatpush.msrb.mxu2 %v5657_v27  ;;  %v2570_v27 = vld [vmem:[%s6515_s13 + $0x4e8] sm:$0xff]  ;;  %v6675_v18 = vld [vmem:[#allocation10_spill] sm:$0xff] }
 0x2bb   :  { %2186 = vmatpush.msrb.mxu1 %v5921_v11  ;;  %2713 = vmatpush.msrb.mxu3 %v5268_v36  ;;  %v2563_v36 = vld [vmem:[%s6515_s13 + $0x4b0] sm:$0xff]  ;;  %v6051_v39 = vld [vmem:[%s6515_s13 + $0x5a0] sm:$0xff] }
 0x2bc   :  { %2767 = vmatpush.msra.mxu0 %v2584_v57  ;;  %2992 = vmatmul.msk.f32.vlgmr.msrb.gmra.mxu1 %vm1233_vm3, %v4636_v59  ;;  %v6676_v57 = vld [vmem:[#allocation39_spill] sm:$0xff] }
 0x2bd   :  { %2231 = vmatpush.msra.mxu1 %v5397_v48  ;;  %2139 = vmatpush.msrb.mxu2 %v5676_v33  ;;  %v2556_v48 = vld [vmem:[%s6515_s13 + $0x478] sm:$0xff] }
 0x2be   :  { %2768 = vmatpush.msra.mxu0 %v2577_v44  ;;  %2714 = vmatpush.msrb.mxu3 %v5282_v45  ;;  %v2542_v45 = vld [vmem:[%s6515_s13 + $0x408] sm:$0xff]  ;;  %v6669_v33 = vld [vmem:[#allocation14_spill] sm:$0xff] }
 0x2bf   :  { %2232 = vmatpush.msra.mxu1 %v5415_v56  ;;  %2140 = vmatpush.msrb.mxu2 %v5695_v12  ;;  %v2549_v12 = vld [vmem:[%s6515_s13 + $0x440] sm:$0xff]  ;;  %v6062_v44 = vld [vmem:[%s6515_s13 + $0x568] sm:$0xff] }
 0x2c0   :  { %2769 = vmatpush.msra.mxu0 %v2570_v27  ;;  %2715 = vmatpush.msrb.mxu3 %v5296_v29  ;;  %v2535_v29 = vld [vmem:[%s6515_s13 + $0x3d0] sm:$0xff]  ;;  %v6660_v56 = vld [vmem:[#allocation15_spill] sm:$0xff] }
 0x2c1   :  { %2233 = vmatpush.msra.mxu1 %v5434_v23  ;;  %2141 = vmatpush.msrb.mxu2 %v5714_v26  ;;  %v1997_v23 = vld [vmem:[%s6515_s13 + $0x2e8] sm:$0xff]  ;;  %v1962_v26 = vld [vmem:[%s6515_s13 + $0x1d0] sm:$0xff] }
 0x2c2   :  { %2716 = vmatmul.f32.vlgmr.msrb.gmra.mxu3 %v6656_v25  ;;  %2770 = vmatpush.msra.mxu0 %v2563_v36  ;;  %v6677_v27 = vld [vmem:[#allocation41_spill] sm:$0xff] }
 0x2c3   :  { %2805 = vmatpush.msra.mxu3 %v5357_v47  ;;  %2234 = vmatpush.msra.mxu1 %v5453_v5  ;;  %v2528_v47 = vld [vmem:[%s6515_s13 + $0x398] sm:$0xff]  ;;  %v6073_v36 = vld [vmem:[%s6515_s13 + $0x530] sm:$0xff] }
 0x2c4   :  { %2142 = vmatpush.msrb.mxu2 %v5728_v38  ;;  %2771 = vmatpush.msra.mxu0 %v2556_v48  ;;  %v6663_v5 = vld [vmem:[#allocation34_spill] sm:$0xff]  ;;  %v6672_v38 = vld [vmem:[#allocation17_spill] sm:$0xff]  ;;  %v6678_v48 = vld [vmem:[#allocation43_spill] sm:$0xff] }
 0x2c5   :  { %2806 = vmatpush.msra.mxu3 %v5371_v63  ;;  %2235 = vmatpush.msra.mxu1 %v5481_v22  ;;  %v2011_v63 = vld [vmem:[%s6515_s13 + $0x358] sm:$0xff]  ;;  %v1990_v22 = vld [vmem:[%s6515_s13 + $0x2b0] sm:$0xff] }
 0x2c6   :  { %2143 = vmatpush.msrb.mxu2 %v5742_v52  ;;  %2772 = vmatpush.msra.mxu0 %v2549_v12  ;;  %v6673_v52 = vld [vmem:[#allocation45_spill] sm:$0xff] }
 0x2c7   :  { %2807 = vmatpush.msra.mxu3 %v5384_v40  ;;  %2236 = vmatpush.msra.mxu1 %v5500_v54  ;;  %v6659_v40 = vld [vmem:[#allocation32_spill] sm:$0xff]  ;;  %v6664_v54 = vld [vmem:[#allocation37_spill] sm:$0xff] }
 0x2c8   :  { %2144 = vmatpush.msrb.mxu2 %v5757_v58  ;;  %2773 = vmatpush.msra.mxu0 %v2542_v45  ;;  %v6667_v58 = vld [vmem:[#allocation13_spill] sm:$0xff]  ;;  %v6679_v45 = vld [vmem:[#allocation18_spill] sm:$0xff] }
 0x2c9   :  { %2808 = vmatpush.msra.mxu3 %v5402_v3  ;;  %2237 = vmatpush.msra.mxu1 %v5519_v35  ;;  %v2004_v3 = vld [vmem:[%s6515_s13 + $0x320] sm:$0xff]  ;;  %v6084_v12 = vld [vmem:[%s6515_s13 + $0x4f8] sm:$0xff] }
 0x2ca   :  { %2145 = vmatpush.msrb.mxu2 %v5771_v14  ;;  %2774 = vmatpush.msra.mxu0 %v2535_v29  ;;  %v6665_v35 = vld [vmem:[#allocation35_spill] sm:$0xff]  ;;  %v6668_v14 = vld [vmem:[#allocation42_spill] sm:$0xff] }
 0x2cb   :  { %2809 = vmatpush.msra.mxu3 %v5429_v17  ;;  %2238 = vmatpush.msra.mxu1 %v5538_v1  ;;  %v6661_v17 = vld [vmem:[#allocation33_spill] sm:$0xff]  ;;  %v6666_v1 = vld [vmem:[#allocation40_spill] sm:$0xff]  ;;  %v6095_v29 = vld [vmem:[%s6515_s13 + $0x4c0] sm:$0xff] }
 0x2cc   :  { %2146 = vmatpush.msrb.mxu2 %v5785_v61  ;;  %2775 = vmatpush.msra.mxu0 %v2528_v47  ;;  %v6662_v61 = vld [vmem:[#allocation36_spill] sm:$0xff]  ;;  %v6680_v47 = vld [vmem:[#allocation19_spill] sm:$0xff] }
 0x2cd   :  { %2810 = vmatpush.msra.mxu3 %v6659_v40  ;;  %2991 = vmatmul.msk.f32.vlgmr.msrb.gmra.mxu2 %vm1233_vm3, %v4636_v59  ;;  %v6681_v40 = vld [vmem:[#allocation46_spill] sm:$0xff] }
 0x2ce   :  { %2191 = vmatpush.msra.mxu2 %v2011_v63  ;;  %2239 = vmatpush.msra.mxu1 %v6660_v56  ;;  %v6106_v63 = vld [vmem:[%s6515_s13 + $0x488] sm:$0xff]  ;;  %v3043_v56 = vld [vmem:[%s6514_s12] ss:$0 sm:$0xff]  ;;  %s3130_s12 = smov 14  }
 0x2cf   :  { %3001 = vmatmul.msk.f32.vlgmr.msra.gmra.mxu0 %vm1233_vm3, %v6644_v37  ;;  %2811 = vmatpush.msra.mxu3 %v6661_v17  ;;  %v6682_v17 = vld [vmem:[#allocation47_spill] sm:$0xff] }
 0x2d0   :  { %2820 = vmatpush.msrb.mxu0 %v5350_v51  ;;  %2192 = vmatpush.msra.mxu2 %v2004_v3  ;;  %v1983_v51 = vld [vmem:[%s6515_s13 + $0x278] sm:$0xff]  ;;  %v6117_v3 = vld [vmem:[%s6515_s13 + $0x450] sm:$0xff] }
 0x2d1   :  { %2240 = vmatpush.msra.mxu1 %v6662_v61  ;;  %2812 = vmatpush.msra.mxu3 %v6663_v5  ;;  %v6131_v61 = vld [vmem:[%s6515_s13 + $0x418] sm:$0xff]  ;;  %v6143_v5 = vld [vmem:[%s6515_s13 + $0x3e0] sm:$0xff] }
 0x2d2   :  { %2821 = vmatpush.msrb.mxu0 %v5364_v42  ;;  %2193 = vmatpush.msra.mxu2 %v1997_v23  ;;  %v1976_v42 = vld [vmem:[%s6515_s13 + $0x240] sm:$0xff]  ;;  %v2090_v23 = vld [vmem:[%s6515_s13 + $0x5d0] sm:$0xff] }
 0x2d3   :  { %2241 = vmatpush.msra.mxu1 %v6664_v54  ;;  %2813 = vmatpush.msra.mxu3 %v6665_v35  ;;  %v2076_v35 = vld [vmem:[%s6515_s13 + $0x560] sm:$0xff] }
 0x2d4   :  { %2822 = vmatpush.msrb.mxu0 %v5376_v0  ;;  %2194 = vmatpush.msra.mxu2 %v1990_v22  ;;  %v1969_v0 = vld [vmem:[%s6515_s13 + $0x208] sm:$0xff] }
 0x2d5   :  { %2242 = vmatpush.msra.mxu1 %v6666_v1  ;;  %2814 = vmatpush.msra.mxu3 %v6667_v58  ;;  %v6684_v58 = vld [vmem:[#allocation49_spill] sm:$0xff] }
 0x2d6   :  { %2823 = vmatpush.msrb.mxu0 %v5389_v53  ;;  %2195 = vmatpush.msra.mxu2 %v1983_v51  ;;  %v6670_v53 = vld [vmem:[#allocation16_spill] sm:$0xff] }
 0x2d7   :  { %2243 = vmatpush.msra.mxu1 %v6668_v14  ;;  %2815 = vmatpush.msra.mxu3 %v6669_v33  ;;  %v6154_v51 = vld [vmem:[%s6515_s13 + $0x3a8] sm:$0xff] }
 0x2d8   :  { %2824 = vmatpush.msrb.mxu0 %v5407_v2  ;;  %2196 = vmatpush.msra.mxu2 %v1976_v42  ;;  %v6671_v2 = vld [vmem:[#allocation44_spill] sm:$0xff] }
 0x2d9   :  { %2244 = vmatpush.msra.mxu1 %v5669_v30  ;;  %3002 = vmatmul.msk.f32.vlgmr.msra.gmra.mxu3 %vm1233_vm3, %v6644_v37  ;;  %v1955_v30 = vld [vmem:[%s6515_s13 + $0x198] sm:$0xff]  ;;  %v2518_v42 = vld [vmem:[%s6515_s13 + $0x348] sm:$0xff] }
 0x2da   :  { %2825 = vmatpush.msrb.mxu0 %v5420_v16  ;;  %2860 = vmatpush.msrb.mxu3 %v6670_v53  ;;  %v6040_v16 = vld [vmem:[%s6515_s13 + $0x5d8] sm:$0xff]  ;;  %v2069_v14 = vld [vmem:[%s6515_s13 + $0x528] sm:$0xff] }
 0x2db   :  { %2197 = vmatpush.msra.mxu2 %v1969_v0  ;;  %2245 = vmatpush.msra.mxu1 %v6671_v2  ;;  %v2511_v0 = vld [vmem:[%s6515_s13 + $0x310] sm:$0xff]  ;;  %v2504_v2 = vld [vmem:[%s6515_s13 + $0x2d8] sm:$0xff] }
 0x2dc   :  { %2826 = vmatpush.msrb.mxu0 %v5439_v60  ;;  %2861 = vmatpush.msrb.mxu3 %v6672_v38  ;;  %v1948_v60 = vld [vmem:[%s6515_s13 + $0x160] sm:$0xff] }
 0x2dd   :  { %2198 = vmatpush.msra.mxu2 %v1962_v26  ;;  %2246 = vmatpush.msra.mxu1 %v6673_v52  ;;  %v2062_v26 = vld [vmem:[%s6515_s13 + $0x4f0] sm:$0xff]  ;;  %v2497_v52 = vld [vmem:[%s6515_s13 + $0x2a0] sm:$0xff] }
 0x2de   :  { %2827 = vmatpush.msrb.mxu0 %v5459_v62  ;;  %2862 = vmatpush.msrb.mxu3 %v6674_v6  ;;  %v1941_v62 = vld [vmem:[%s6515_s13 + $0x128] sm:$0xff] }
 0x2df   :  { %2247 = vmatmul.f32.vlgmr.msra.gmra.mxu1 %v6675_v18  ;;  %2199 = vmatpush.msra.mxu2 %v1955_v30  ;;  %v2055_v30 = vld [vmem:[%s6515_s13 + $0x4b8] sm:$0xff] }
 0x2e0   :  { %2336 = vmatpush.msrb.mxu1 %v6040_v16  ;;  %2828 = vmatpush.msrb.mxu0 %v5473_v15  ;;  %v1934_v15 = vld [vmem:[%s6515_s13 + $0xf0] sm:$0xff] }
 0x2e1   :  { %2863 = vmatpush.msrb.mxu3 %v6676_v57  ;;  %2200 = vmatpush.msra.mxu2 %v1948_v60  ;;  %v2048_v60 = vld [vmem:[%s6515_s13 + $0x480] sm:$0xff] }
 0x2e2   :  { %2337 = vmatpush.msrb.mxu1 %v6051_v39  ;;  %2829 = vmatpush.msrb.mxu0 %v5492_v43  ;;  %v1927_v43 = vld [vmem:[%s6515_s13 + $0xb8] sm:$0xff] }
 0x2e3   :  { %2864 = vmatpush.msrb.mxu3 %v6677_v27  ;;  %2201 = vmatpush.msra.mxu2 %v1941_v62  ;;  %v2490_v62 = vld [vmem:[%s6515_s13 + $0x268] sm:$0xff] }
 0x2e4   :  { %2338 = vmatpush.msrb.mxu1 %v6062_v44  ;;  %2830 = vmatpush.msrb.mxu0 %v5512_v24  ;;  %v1920_v24 = vld [vmem:[%s6515_s13 + $0x80] sm:$0xff] }
 0x2e5   :  { %2865 = vmatpush.msrb.mxu3 %v6678_v48  ;;  %2202 = vmatpush.msra.mxu2 %v1934_v15  ;;  %v2041_v15 = vld [vmem:[%s6515_s13 + $0x448] sm:$0xff] }
 0x2e6   :  { %2339 = vmatpush.msrb.mxu1 %v6073_v36  ;;  %2831 = vmatpush.msrb.mxu0 %v5526_v46  ;;  %v1913_v46 = vld [vmem:[%s6515_s13 + $0x48] sm:$0xff] }
 0x2e7   :  { %2866 = vmatpush.msrb.mxu3 %v6679_v45  ;;  %2203 = vmatpush.msra.mxu2 %v1927_v43  ;;  %v2483_v43 = vld [vmem:[%s6515_s13 + $0x230] sm:$0xff] }
 0x2e8   :  { %2340 = vmatpush.msrb.mxu1 %v6084_v12  ;;  %2832 = vmatpush.msrb.mxu0 %v5545_v8  ;;  %v1906_v8 = vld [vmem:[%s6515_s13 + $0x10] sm:$0xff] }
 0x2e9   :  { %2867 = vmatpush.msrb.mxu3 %v6680_v47  ;;  %2204 = vmatpush.msra.mxu2 %v1920_v24  ;;  %v2034_v24 = vld [vmem:[%s6515_s13 + $0x410] sm:$0xff] }
 0x2ea   :  { %2341 = vmatpush.msrb.mxu1 %v6095_v29  ;;  %2833 = vmatpush.msrb.mxu0 %v5571_v9  ;;  %v1365_v9 = vpop.f32.mrf.mxu1 }
 0x2eb   :  { %2868 = vmatpush.msrb.mxu3 %v6681_v40  ;;  %2205 = vmatpush.msra.mxu2 %v1913_v46  ;;  %v1366_v22 = vadd.f32 %v3043_v56, %v1365_v9  ;;  %v2476_v46 = vld [vmem:[%s6515_s13 + $0x1f8] sm:$0xff]  ;;  %v2469_v56 = vld [vmem:[%s6515_s13 + $0x1c0] sm:$0xff]  ;;  %v2462_v9 = vld [vmem:[%s6515_s13 + $0x188] sm:$0xff] }
 0x2ec   :  { %2342 = vmatpush.msrb.mxu1 %v6106_v63  ;;  %2834 = vmatpush.msrb.mxu0 %v5591_v32  ;;  %v2083_v32 = vld [vmem:[%s6515_s13 + $0x598] sm:$0xff] }
 0x2ed   :  { %2869 = vmatpush.msrb.mxu3 %v6682_v17  ;;  %2206 = vmatpush.msra.mxu2 %v1906_v8  ;;  %v2027_v8 = vld [vmem:[%s6515_s13 + $0x3d8] sm:$0xff] }
 0x2ee   :  { %2343 = vmatpush.msrb.mxu1 %v6117_v3  ;;  %2835 = vmatpush.msrb.mxu0 %v5610_v13  ;;  %v6683_v13 = vld [vmem:[#allocation48_spill] sm:$0xff] }
 0x2ef   :  { %2870 = vmatpush.msrb.mxu3 %v5752_v55  ;;  %2207 = vmatmul.f32.vlgmr.msra.gmra.mxu2 %v6675_v18 }
 0x2f0   :  { %2296 = vmatpush.msrb.mxu2 %v2090_v23  ;;  %2344 = vmatpush.msrb.mxu1 %v6131_v61  ;;  %v1385_v54 = vpop.f32.mrf.mxu2  ;;  %v2455_v23 = vld [vmem:[%s6515_s13 + $0x150] sm:$0xff] }
 0x2f1   :  { %2836 = vmatmul.f32.vlgmr.msrb.gmra.mxu0 %v6656_v25  ;;  %2871 = vmatpush.msrb.mxu3 %v6683_v13  ;;  %v1386_v1 = vadd.f32 %v1385_v54, %v1366_v22  ;;  %v1634_v22 = vpop.f32.mrf.mxu0  ;;  %v2427_v54 = vld [vmem:[%s6515_s13 + $0x70] sm:$0xff] }
 0x2f2   :  { %2297 = vmatpush.msrb.mxu2 %v2083_v32  ;;  %2345 = vmatpush.msrb.mxu1 %v6143_v5  ;;  %v2448_v32 = vld [vmem:[%s6515_s13 + $0x118] sm:$0xff] }
 0x2f3   :  { %2872 = vmatpush.msrb.mxu3 %v6684_v58  ;;  %1389 = vst.msk [vmem:[#allocation3] sm:$0x3] %vm1388_vm6, %v1386_v1 }
 0x2f4   :  { %2298 = vmatpush.msrb.mxu2 %v2076_v35  ;;  %2346 = vmatpush.msrb.mxu1 %v6154_v51  ;;  %2932 = dma.vmem_to_hbm [thread:$0]  %s2928_s24, 32, %s2930_s22, [#allocation4]  }
 0x2f5   :  { %2996 = vmatmul.msk.f32.vlgmr.msrb.gmra.mxu1 %vm1233_vm3, %v4636_v59  ;;  %2873 = vmatpush.msrb.mxu3 %v5794_v34 }
 0x2f6   :  { %2620 = vmatpush.msra.mxu1 %v2518_v42  ;;  %2299 = vmatpush.msrb.mxu2 %v2069_v14  ;;  %v2420_v42 = vld [vmem:[%s6515_s13 + $0x38] sm:$0xff] }
 0x2f7   :  { %2874 = vmatpush.msrb.mxu3 %v5803_v10 }
 0x2f8   :  { %2621 = vmatpush.msra.mxu1 %v2511_v0  ;;  %2300 = vmatpush.msrb.mxu2 %v2062_v26  ;;  %v2413_v26 = vld [vmem:[%s6515_s13] sm:$0xff] }
 0x2f9   :  { %2875 = vmatpush.msrb.mxu3 %v5813_v19  ;;  %v1674_v14 = vpop.f32.mrf.mxu0 }
 0x2fa   :  { %2622 = vmatpush.msra.mxu1 %v2504_v2  ;;  %2301 = vmatpush.msrb.mxu2 %v2055_v30  ;;  %v1654_v35 = vpop.f32.mrf.mxu2  ;;  %v2597_v30 = vld [vmem:[%s6515_s13 + $0x5c0] sm:$0xff] }
 0x2fb   :  { %2876 = vmatmul.f32.vlgmr.msrb.gmra.mxu3 %v6656_v25 }
 0x2fc   :  { %2623 = vmatpush.msra.mxu1 %v2497_v52  ;;  %2302 = vmatpush.msrb.mxu2 %v2048_v60 }
 0x2fe   :  { %2624 = vmatpush.msra.mxu1 %v2490_v62  ;;  %2303 = vmatpush.msrb.mxu2 %v2041_v15 }
 0x300   :  { %2625 = vmatpush.msra.mxu1 %v2483_v43  ;;  %2304 = vmatpush.msrb.mxu2 %v2034_v24  ;;  %v2583_v24 = vld [vmem:[%s6515_s13 + $0x550] sm:$0xff] }
 0x302   :  { %2626 = vmatpush.msra.mxu1 %v2476_v46  ;;  %2305 = vmatpush.msrb.mxu2 %v2027_v8  ;;  %v1754_v46 = vpop.f32.mrf.mxu0 }
 0x304   :  { %2627 = vmatpush.msra.mxu1 %v2469_v56  ;;  %2306 = vmatpush.msrb.mxu2 %v6669_v33  ;;  %v2441_v33 = vld [vmem:[%s6515_s13 + $0xe0] sm:$0xff]  ;;  %v2576_v56 = vld [vmem:[%s6515_s13 + $0x518] sm:$0xff] }
 0x305   :  { %2995 = vmatmul.msk.f32.vlgmr.msrb.gmra.mxu2 %vm1233_vm3, %v4636_v59  ;;  %v2434_v59 = vld [vmem:[%s6515_s13 + $0xa8] sm:$0xff] }
 0x306   :  { %2351 = vmatpush.msra.mxu2 %v6670_v53  ;;  %2628 = vmatpush.msra.mxu1 %v2462_v9  ;;  %v6234_v53 = vld [vmem:[%s6516_s14] sm:$0x7f] }
 0x307   :  { %v1583_v1 = vperm.slane %v6234_v53, 2  ;;  %v1584_v52 = vperm.slane %v6234_v53, 3 }
 0x308   :  { %2352 = vmatpush.msra.mxu2 %v6672_v38  ;;  %2629 = vmatpush.msra.mxu1 %v2455_v23  ;;  %v1582_v38 = vperm.slane %v6234_v53, 1 }
 0x30a   :  { %2353 = vmatpush.msra.mxu2 %v6674_v6  ;;  %2630 = vmatpush.msra.mxu1 %v2448_v32  ;;  %v1614_v6 = vpop.f32.mrf.mxu3  ;;  %v1655_v0 = vadd.f32 %v1654_v35, %v1582_v38  ;;  %v2569_v32 = vld [vmem:[%s6515_s13 + $0x4e0] sm:$0xff]  ;;  %v2555_v38 = vld [vmem:[%s6515_s13 + $0x470] sm:$0xff] }
 0x30c   :  { %2354 = vmatpush.msra.mxu2 %v6676_v57  ;;  %2631 = vmatpush.msra.mxu1 %v2441_v33  ;;  %v1694_v57 = vpop.f32.mrf.mxu1 }
 0x30d   :  { %v1695_v2 = vadd.f32 %v1694_v57, %v1583_v1  ;;  %v6685_v1 = vld [vmem:[#allocation12_spill] sm:$0xff]  ;;  %v2473_v57 = vld [vmem:[%s6515_s13 + $0x1e0] sm:$0xff] }
 0x30e   :  { %2355 = vmatpush.msra.mxu2 %v6677_v27  ;;  %2632 = vmatpush.msra.mxu1 %v2434_v59  ;;  %v1581_v27 = vperm.slane %v6234_v53, 0  ;;  %v2562_v59 = vld [vmem:[%s6515_s13 + $0x4a8] sm:$0xff] }
 0x310   :  { %2356 = vmatpush.msra.mxu2 %v6678_v48  ;;  %2633 = vmatpush.msra.mxu1 %v2427_v54  ;;  %v1675_v48 = vadd.f32 %v1674_v14, %v1655_v0  ;;  %v1615_v15 = vadd.f32 %v1614_v6, %v1581_v27  ;;  %v2494_v6 = vld [vmem:[%s6515_s13 + $0x288] sm:$0xff]  ;;  %v2521_v27 = vld [vmem:[%s6515_s13 + $0x360] sm:$0xff] }
 0x312   :  { %2357 = vmatpush.msra.mxu2 %v6679_v45  ;;  %2634 = vmatpush.msra.mxu1 %v2420_v42  ;;  %v2590_v45 = vld [vmem:[%s6515_s13 + $0x588] sm:$0xff]  ;;  %v1714_v60 = vpop.f32.mrf.mxu3  ;;  %v1884_v8 = vrot.slane %v1675_v48, 6  ;;  %v1586_v42 = vperm.slane %v6234_v53, 5  ;;  %v2459_v48 = vld [vmem:[%s6515_s13 + $0x170] sm:$0xff] }
 0x313   :  { %v1715_v43 = vadd.f32 %v1714_v60, %v1695_v2 }
 0x314   :  { %2358 = vmatpush.msra.mxu2 %v6680_v47  ;;  %2635 = vmatpush.msra.mxu1 %v2413_v26 }
 0x315   :  { %2636 = vmatmul.f32.vlgmr.msra.gmra.mxu1 %v6656_v25  ;;  %v1885_v23 = vrot.slane %v1715_v43, 4 }
 0x316   :  { %2725 = vmatpush.msrb.mxu1 %v2597_v30  ;;  %2359 = vmatpush.msra.mxu2 %v6681_v40  ;;  %v1734_v62 = vpop.f32.mrf.mxu2  ;;  %v1635_v40 = vadd.f32 %v1634_v22, %v1615_v15 }
 0x317   :  { %v1735_v47 = vadd.f32 %v1734_v62, %v1584_v52  ;;  %v2452_v62 = vld [vmem:[%s6515_s13 + $0x138] sm:$0xff] }
 0x318   :  { %2726 = vmatpush.msrb.mxu1 %v2590_v45  ;;  %2360 = vmatpush.msra.mxu2 %v6682_v17  ;;  %v1889_v17 = vsel %vm1029_vm0, %v1635_v40, %v1884_v8  ;;  %v2445_v8 = vld [vmem:[%s6515_s13 + $0x100] sm:$0xff]  ;;  %v2438_v40 = vld [vmem:[%s6515_s13 + $0xc8] sm:$0xff] }
 0x319   :  { %v1755_v9 = vadd.f32 %v1754_v46, %v1735_v47  ;;  %v2500_v46 = vld [vmem:[%s6515_s13 + $0x2b8] sm:$0xff] }
 0x31a   :  { %2727 = vmatpush.msrb.mxu1 %v2583_v24  ;;  %2361 = vmatpush.msra.mxu2 %v5752_v55  ;;  %v1774_v54 = vpop.f32.mrf.mxu3 }
 0x31b   :  { %v1886_v33 = vrot.slane %v1755_v9, 2  ;;  %v2493_v9 = vld [vmem:[%s6515_s13 + $0x280] sm:$0xff] }
 0x31c   :  { %2728 = vmatpush.msrb.mxu1 %v2576_v56  ;;  %2362 = vmatpush.msra.mxu2 %v6683_v13  ;;  %v2548_v13 = vld [vmem:[%s6515_s13 + $0x438] sm:$0xff] }
 0x31d   :  { %v1891_v55 = vsel %vm1890_vm7, %v1885_v23, %v1886_v33  ;;  %v2486_v23 = vld [vmem:[%s6515_s13 + $0x248] sm:$0xff]  ;;  %v2479_v33 = vld [vmem:[%s6515_s13 + $0x210] sm:$0xff] }
 0x31e   :  { %2729 = vmatpush.msrb.mxu1 %v2569_v32  ;;  %2363 = vmatpush.msra.mxu2 %v6684_v58  ;;  %v1893_v22 = vsel %vm1892_vm8, %v1889_v17, %v1891_v55  ;;  %v2541_v58 = vld [vmem:[%s6515_s13 + $0x400] sm:$0xff]  ;;  %v2431_v32 = vld [vmem:[%s6515_s13 + $0x90] sm:$0xff]  ;;  %v2424_v17 = vld [vmem:[%s6515_s13 + $0x58] sm:$0xff] }
 0x31f   :  { %1898 = vst [vmem:[#allocation7] sm:$0xff] %v1893_v22  ;;  %v2417_v55 = vld [vmem:[%s6515_s13 + $0x20] sm:$0xff] }
 0x320   :  { %2730 = vmatpush.msrb.mxu1 %v2562_v59  ;;  %2364 = vmatpush.msra.mxu2 %v5794_v34  ;;  %v2534_v34 = vld [vmem:[%s6515_s13 + $0x3c8] sm:$0xff]  ;;  %v2472_v59 = vld [vmem:[%s6515_s13 + $0x1d8] sm:$0xff]  ;;  %v2601_v22 = vld [vmem:[%s6515_s13 + $0x5e0] sm:$0xff] }
 0x322   :  { %2731 = vmatpush.msrb.mxu1 %v2555_v38  ;;  %2365 = vmatpush.msra.mxu2 %v5803_v10  ;;  %v2527_v10 = vld [vmem:[%s6515_s13 + $0x390] sm:$0xff]  ;;  %v1874_v26 = vpop.f32.mrf.mxu3  ;;  %v2465_v38 = vld [vmem:[%s6515_s13 + $0x1a0] sm:$0xff] }
 0x324   :  { %2732 = vmatpush.msrb.mxu1 %v2548_v13  ;;  %2366 = vmatpush.msra.mxu2 %v5813_v19  ;;  %v2522_v19 = vld [vmem:[%s6515_s13 + $0x368] sm:$0xff] }
 0x325   :  { %2367 = vmatmul.f32.vlgmr.msra.gmra.mxu2 %v6675_v18  ;;  %v1794_v18 = vpop.f32.mrf.mxu1  ;;  %v2594_v13 = vld [vmem:[%s6515_s13 + $0x5a8] sm:$0xff] }
 0x326   :  { %2685 = vmatpush.msrb.mxu2 %v5824_v41  ;;  %2733 = vmatpush.msrb.mxu1 %v2541_v58  ;;  %v2515_v41 = vld [vmem:[%s6515_s13 + $0x330] sm:$0xff]  ;;  %v2458_v58 = vld [vmem:[%s6515_s13 + $0x168] sm:$0xff] }
 0x328   :  { %2686 = vmatpush.msrb.mxu2 %v5833_v28  ;;  %2734 = vmatpush.msrb.mxu1 %v2534_v34  ;;  %v2508_v28 = vld [vmem:[%s6515_s13 + $0x2f8] sm:$0xff]  ;;  %v2587_v34 = vld [vmem:[%s6515_s13 + $0x570] sm:$0xff] }
 0x32a   :  { %2687 = vmatpush.msrb.mxu2 %v5842_v49  ;;  %2735 = vmatpush.msrb.mxu1 %v2527_v10  ;;  %v2501_v49 = vld [vmem:[%s6515_s13 + $0x2c0] sm:$0xff]  ;;  %v2451_v10 = vld [vmem:[%s6515_s13 + $0x130] sm:$0xff] }
 0x32b   :  { %3000 = vmatmul.msk.f32.vlgmr.msrb.gmra.mxu1 %vm1233_vm3, %v6644_v37 }
 0x32c   :  { %2780 = vmatpush.msra.mxu1 %v2522_v19  ;;  %2688 = vmatpush.msrb.mxu2 %v5851_v7  ;;  %v1587_v7 = vperm.slane %v6234_v53, 6  ;;  %v2580_v19 = vld [vmem:[%s6515_s13 + $0x538] sm:$0xff] }
 0x32d   :  { %v1854_v35 = vpop.f32.mrf.mxu1 }
 0x32e   :  { %2781 = vmatpush.msra.mxu1 %v2515_v41  ;;  %2689 = vmatpush.msrb.mxu2 %v5860_v21  ;;  %v2487_v21 = vld [vmem:[%s6515_s13 + $0x250] sm:$0xff]  ;;  %v1855_v14 = vadd.f32 %v1854_v35, %v1587_v7  ;;  %v2573_v41 = vld [vmem:[%s6515_s13 + $0x500] sm:$0xff]  ;;  %v2552_v35 = vld [vmem:[%s6515_s13 + $0x458] sm:$0xff] }
 0x32f   :  { %v2423_v7 = vld [vmem:[%s6515_s13 + $0x50] sm:$0xff] }
 0x330   :  { %2782 = vmatpush.msra.mxu1 %v2508_v28  ;;  %2690 = vmatpush.msrb.mxu2 %v5869_v20  ;;  %v2480_v20 = vld [vmem:[%s6515_s13 + $0x218] sm:$0xff]  ;;  %v1875_v30 = vadd.f32 %v1874_v26, %v1855_v14  ;;  %v2437_v28 = vld [vmem:[%s6515_s13 + $0xc0] sm:$0xff] }
 0x332   :  { %2783 = vmatpush.msra.mxu1 %v2501_v49  ;;  %2691 = vmatpush.msrb.mxu2 %v5878_v4  ;;  %v1585_v4 = vperm.slane %v6234_v53, 4  ;;  %v1834_v53 = vpop.f32.mrf.mxu0  ;;  %v1888_v43 = vrot.slane %v1875_v30, 4  ;;  %v2566_v49 = vld [vmem:[%s6515_s13 + $0x4c8] sm:$0xff] }
 0x334   :  { %2784 = vmatpush.msra.mxu1 %v2494_v6  ;;  %2692 = vmatpush.msrb.mxu2 %v6685_v1  ;;  %v1775_v52 = vadd.f32 %v1774_v54, %v1585_v4  ;;  %v2430_v54 = vld [vmem:[%s6515_s13 + $0x88] sm:$0xff]  ;;  %v2559_v6 = vld [vmem:[%s6515_s13 + $0x490] sm:$0xff]  ;;  %v2545_v1 = vld [vmem:[%s6515_s13 + $0x420] sm:$0xff] }
 0x336   :  { %2785 = vmatpush.msra.mxu1 %v2487_v21  ;;  %2693 = vmatpush.msrb.mxu2 %v5896_v31  ;;  %v2466_v31 = vld [vmem:[%s6515_s13 + $0x1a8] sm:$0xff]  ;;  %v1795_v60 = vadd.f32 %v1794_v18, %v1775_v52  ;;  %v2444_v18 = vld [vmem:[%s6515_s13 + $0xf8] sm:$0xff] }
 0x337   :  { %v2416_v21 = vld [vmem:[%s6515_s13 + $0x18] sm:$0xff] }
 0x338   :  { %2786 = vmatpush.msra.mxu1 %v2480_v20  ;;  %2694 = vmatpush.msrb.mxu2 %v5910_v50  ;;  %v1814_v0 = vpop.f32.mrf.mxu2  ;;  %v2514_v50 = vld [vmem:[%s6515_s13 + $0x328] sm:$0xff] }
 0x339   :  { %v1815_v2 = vadd.f32 %v1814_v0, %v1586_v42  ;;  %v2538_v20 = vld [vmem:[%s6515_s13 + $0x3e8] sm:$0xff]  ;;  %v2531_v42 = vld [vmem:[%s6515_s13 + $0x3b0] sm:$0xff] }
 0x33a   :  { %2787 = vmatpush.msra.mxu1 %v2473_v57  ;;  %2695 = vmatpush.msrb.mxu2 %v5921_v11  ;;  %v2507_v11 = vld [vmem:[%s6515_s13 + $0x2f0] sm:$0xff]  ;;  %v2128_v4 = vpop.f32.mrf.mxu0 }
 0x33b   :  { %2999 = vmatmul.msk.f32.vlgmr.msrb.gmra.mxu2 %vm1233_vm3, %v6644_v37  ;;  %v1835_v45 = vadd.f32 %v1834_v53, %v1815_v2 }
 0x33c   :  { %2740 = vmatpush.msra.mxu2 %v2521_v27  ;;  %2788 = vmatpush.msra.mxu1 %v2466_v31 }
 0x33d   :  { %v1887_v15 = vrot.slane %v1835_v45, 6 }
 0x33e   :  { %2741 = vmatpush.msra.mxu2 %v2514_v50  ;;  %2789 = vmatpush.msra.mxu1 %v2459_v48 }
 0x33f   :  { %v1894_v47 = vsel %vm1029_vm0, %v1795_v60, %v1887_v15 }
 0x340   :  { %2742 = vmatpush.msra.mxu2 %v2507_v11  ;;  %2790 = vmatpush.msra.mxu1 %v2452_v62  ;;  %v1895_v56 = vsel %vm1892_vm8, %v1894_v47, %v1888_v43 }
 0x341   :  { %1903 = vst.msk [vmem:[#allocation7 + $0x8] sm:$0x3f] %vm6361_vm12, %v1895_v56 }
 0x342   :  { %2743 = vmatpush.msra.mxu2 %v2500_v46  ;;  %2791 = vmatpush.msra.mxu1 %v2445_v8  ;;  %v2228_v30 = vpop.f32.mrf.mxu0 }
 0x344   :  { %2744 = vmatpush.msra.mxu2 %v2493_v9  ;;  %2792 = vmatpush.msra.mxu1 %v2438_v40 }
 0x346   :  { %2745 = vmatpush.msra.mxu2 %v2486_v23  ;;  %2793 = vmatpush.msra.mxu1 %v2431_v32 }
 0x348   :  { %2746 = vmatpush.msra.mxu2 %v2479_v33  ;;  %2794 = vmatpush.msra.mxu1 %v2424_v17 }
 0x34a   :  { %2747 = vmatpush.msra.mxu2 %v2472_v59  ;;  %2795 = vmatpush.msra.mxu1 %v2417_v55  ;;  %v2288_v11 = vpop.f32.mrf.mxu0 }
 0x34b   :  { %2796 = vmatmul.f32.vlgmr.msra.gmra.mxu1 %v6656_v25 }
 0x34c   :  { %2885 = vmatpush.msrb.mxu1 %v2601_v22  ;;  %2748 = vmatpush.msra.mxu2 %v2465_v38 }
 0x34e   :  { %2886 = vmatpush.msrb.mxu1 %v2594_v13  ;;  %2749 = vmatpush.msra.mxu2 %v2458_v58  ;;  %v2602_v58 = vld [vmem:[%s6516_s14] sm:$0x7f] }
 0x350   :  { %2887 = vmatpush.msrb.mxu1 %v2587_v34  ;;  %2750 = vmatpush.msra.mxu2 %v2451_v10  ;;  %v2148_v14 = vpop.f32.mrf.mxu2 }
 0x352   :  { %2888 = vmatpush.msrb.mxu1 %v2580_v19  ;;  %2751 = vmatpush.msra.mxu2 %v2444_v18  ;;  %v2388_v32 = vpop.f32.mrf.mxu0  ;;  %v2605_v19 = vperm.slane %v2602_v58, 1 }
 0x354   :  { %2889 = vmatpush.msrb.mxu1 %v2573_v41  ;;  %2752 = vmatpush.msra.mxu2 %v2437_v28  ;;  %v2606_v41 = vperm.slane %v2602_v58, 2 }
 0x356   :  { %2890 = vmatpush.msrb.mxu1 %v2566_v49  ;;  %2753 = vmatpush.msra.mxu2 %v2430_v54  ;;  %v2604_v54 = vperm.slane %v2602_v58, 0 }
 0x358   :  { %2891 = vmatpush.msrb.mxu1 %v2559_v6  ;;  %2754 = vmatpush.msra.mxu2 %v2423_v7  ;;  %v2607_v6 = vperm.slane %v2602_v58, 3 }
 0x35a   :  { %2892 = vmatpush.msrb.mxu1 %v2552_v35  ;;  %2755 = vmatpush.msra.mxu2 %v2416_v21  ;;  %v2677_v18 = vpop.f32.mrf.mxu0 }
 0x35b   :  { %2756 = vmatmul.f32.vlgmr.msra.gmra.mxu2 %v6656_v25  ;;  %v2188_v25 = vpop.f32.mrf.mxu1  ;;  %v2678_v49 = vadd.f32 %v2677_v18, %v2605_v19 }
 0x35c   :  { %2845 = vmatpush.msrb.mxu2 %v6040_v16  ;;  %2893 = vmatpush.msrb.mxu1 %v2545_v1  ;;  %v2093_v16 = vld [vmem:[%s6516_s14] sm:$0x7f]  ;;  %s3128_s14 = smov [#allocation7]  }
 0x35d   :  { %v2097_v0 = vperm.slane %v2093_v16, 2  ;;  %v2100_v62 = vperm.slane %v2093_v16, 5  ;;  %v2099_v43 = vperm.slane %v2093_v16, 4  ;;  %v2101_v46 = vperm.slane %v2093_v16, 6  ;;  %s2950_s9 = sshll.u32 %s3128_s14, 4  ;;  %s2951_s9 = int_to_ptr.vmem [resolvable:$true] %s2950_s9 }
 0x35e   :  { %2846 = vmatpush.msrb.mxu2 %v6051_v39  ;;  %2894 = vmatpush.msrb.mxu1 %v2538_v20  ;;  %v2168_v39 = vpop.f32.mrf.mxu3 }
 0x35f   :  { %v2289_v56 = vadd.f32 %v2288_v11, %v2099_v43 }
 0x360   :  { %2847 = vmatpush.msrb.mxu2 %v6062_v44  ;;  %2895 = vmatpush.msrb.mxu1 %v2531_v42  ;;  %v2098_v44 = vperm.slane %v2093_v16, 3 }
 0x361   :  { %3004 = vmatmul.msk.f32.vlgmr.msrb.gmra.mxu1 %vm1233_vm3, %v6644_v37 }
 0x362   :  { %2848 = vmatpush.msrb.mxu2 %v6073_v36  ;;  %v2096_v36 = vperm.slane %v2093_v16, 1 }
 0x363   :  { %v2248_v57 = vpop.f32.mrf.mxu1 }
 0x364   :  { %2849 = vmatpush.msrb.mxu2 %v6084_v12  ;;  %v2095_v12 = vperm.slane %v2093_v16, 0  ;;  %v2777_v16 = vpop.f32.mrf.mxu0 }
 0x366   :  { %2850 = vmatpush.msrb.mxu2 %v6095_v29  ;;  %v2249_v29 = vadd.f32 %v2248_v57, %v2098_v44  ;;  %v2268_v26 = vpop.f32.mrf.mxu3 }
 0x368   :  { %2851 = vmatpush.msrb.mxu2 %v6106_v63  ;;  %v2169_v63 = vadd.f32 %v2168_v39, %v2096_v36  ;;  %v2269_v2 = vadd.f32 %v2268_v26, %v2249_v29  ;;  %v2610_v26 = vperm.slane %v2602_v58, 6 }
 0x36a   :  { %2852 = vmatpush.msrb.mxu2 %v6117_v3  ;;  %v2129_v3 = vadd.f32 %v2128_v4, %v2095_v12  ;;  %v2189_v31 = vadd.f32 %v2188_v25, %v2169_v63 }
 0x36c   :  { %2853 = vmatpush.msrb.mxu2 %v6131_v61  ;;  %v2149_v61 = vadd.f32 %v2148_v14, %v2129_v3  ;;  %v2398_v50 = vrot.slane %v2189_v31, 6  ;;  %v2608_v31 = vperm.slane %v2602_v58, 4 }
 0x36e   :  { %2854 = vmatpush.msrb.mxu2 %v6143_v5  ;;  %v2400_v5 = vrot.slane %v2269_v2, 2  ;;  %v2403_v45 = vsel %vm1029_vm0, %v2149_v61, %v2398_v50  ;;  %v2328_v15 = vpop.f32.mrf.mxu3  ;;  %v2837_v2 = vpop.f32.mrf.mxu0 }
 0x36f   :  { %v2329_v8 = vadd.f32 %v2328_v15, %v2100_v62 }
 0x370   :  { %2855 = vmatpush.msrb.mxu2 %v6154_v51 }
 0x371   :  { %3003 = vmatmul.msk.f32.vlgmr.msrb.gmra.mxu2 %vm1233_vm3, %v6644_v37 }
 0x372   :  { %v2208_v27 = vpop.f32.mrf.mxu2  ;;  %v2348_v47 = vpop.f32.mrf.mxu1 }
 0x373   :  { %v2209_v53 = vadd.f32 %v2208_v27, %v2097_v0  ;;  %v2349_v9 = vadd.f32 %v2348_v47, %v2329_v8  ;;  %v2609_v27 = vperm.slane %v2602_v58, 5 }
 0x375   :  { %v2229_v52 = vadd.f32 %v2228_v30, %v2209_v53  ;;  %v2401_v59 = vrot.slane %v2349_v9, 6  ;;  %v2838_v61 = vadd.f32 %v2837_v2, %v2609_v27 }
 0x376   :  { %v2657_v13 = vpop.f32.mrf.mxu3 }
 0x377   :  { %v2399_v48 = vrot.slane %v2229_v52, 4 }
 0x379   :  { %v2404_v51 = vsel %vm1890_vm7, %v2399_v48, %v2400_v5 }
 0x37a   :  { %v2405_v60 = vsel %vm1892_vm8, %v2403_v45, %v2404_v51 }
 0x37b   :  { %2411 = vst [vmem:[#allocation7 + $0xe] sm:$0xff] %v2405_v60 }
 0x37e   :  { %v2717_v28 = vpop.f32.mrf.mxu3 }
 0x37f   :  { %v2718_v35 = vadd.f32 %v2717_v28, %v2606_v41 }
 0x386   :  { %v2817_v0 = vpop.f32.mrf.mxu3 }
 0x388   :  { %v2308_v37 = vpop.f32.mrf.mxu2 }
 0x389   :  { %v2309_v33 = vadd.f32 %v2308_v37, %v2289_v56 }
 0x38b   :  { %v2406_v22 = vsel %vm1029_vm0, %v2309_v33, %v2401_v59 }
 0x38e   :  { %v2877_v3 = vpop.f32.mrf.mxu3 }
 0x38f   :  { %v2878_v30 = vadd.f32 %v2877_v3, %v2610_v26 }
 0x392   :  { %v2637_v34 = vpop.f32.mrf.mxu1 }
 0x393   :  { %v2638_v20 = vadd.f32 %v2637_v34, %v2604_v54 }
 0x395   :  { %v2658_v44 = vadd.f32 %v2657_v13, %v2638_v20 }
 0x3a8   :  { %v2368_v40 = vpop.f32.mrf.mxu2  ;;  %v2737_v7 = vpop.f32.mrf.mxu1 }
 0x3a9   :  { %v2369_v23 = vadd.f32 %v2368_v40, %v2101_v46  ;;  %v2738_v42 = vadd.f32 %v2737_v7, %v2718_v35 }
 0x3ab   :  { %v2389_v17 = vadd.f32 %v2388_v32, %v2369_v23  ;;  %v2908_v4 = vrot.slane %v2738_v42, 4 }
 0x3ad   :  { %v2402_v55 = vrot.slane %v2389_v17, 4 }
 0x3af   :  { %v2407_v38 = vsel %vm1892_vm8, %v2406_v22, %v2402_v55 }
 0x3b0   :  { %2412 = vst.msk [vmem:[#allocation7 + $0x16] sm:$0x3f] %vm6361_vm12, %v2407_v38 }
 0x3be   :  { %v2697_v10 = vpop.f32.mrf.mxu2 }
 0x3bf   :  { %v2698_v21 = vadd.f32 %v2697_v10, %v2678_v49 }
 0x3c1   :  { %v2907_v39 = vrot.slane %v2698_v21, 6 }
 0x3c3   :  { %v2912_v36 = vsel %vm1029_vm0, %v2658_v44, %v2907_v39 }
 0x3c8   :  { %v2797_v63 = vpop.f32.mrf.mxu1 }
 0x3c9   :  { %v2798_v52 = vadd.f32 %v2797_v63, %v2608_v31 }
 0x3cb   :  { %v2818_v45 = vadd.f32 %v2817_v0, %v2798_v52 }
 0x3de   :  { %v2757_v1 = vpop.f32.mrf.mxu2  ;;  %v2897_v53 = vpop.f32.mrf.mxu1 }
 0x3df   :  { %v2758_v25 = vadd.f32 %v2757_v1, %v2607_v6  ;;  %v2898_v50 = vadd.f32 %v2897_v53, %v2878_v30 }
 0x3e1   :  { %v2778_v14 = vadd.f32 %v2777_v16, %v2758_v25  ;;  %v2911_v60 = vrot.slane %v2898_v50, 4 }
 0x3e3   :  { %v2909_v57 = vrot.slane %v2778_v14, 2 }
 0x3e5   :  { %v2913_v12 = vsel %vm1890_vm7, %v2908_v4, %v2909_v57 }
 0x3e6   :  { %v2914_v29 = vsel %vm1892_vm8, %v2912_v36, %v2913_v12 }
 0x3e7   :  { %2920 = vst [vmem:[#allocation7 + $0x1c] sm:$0xff] %v2914_v29 }
 0x3f4   :  { %v2857_v5 = vpop.f32.mrf.mxu2 }
 0x3f5   :  { %v2858_v48 = vadd.f32 %v2857_v5, %v2838_v61 }
 0x3f7   :  { %v2910_v51 = vrot.slane %v2858_v48, 6 }
 0x3f9   :  { %v2915_v37 = vsel %vm1029_vm0, %v2818_v45, %v2910_v51 }
 0x3fa   :  { %v2916_v11 = vsel %vm1892_vm8, %v2915_v37, %v2911_v60 }
 0x3fb   :  { %2921 = vst.msk [vmem:[#allocation7 + $0x24] sm:$0x3f] %vm6361_vm12, %v2916_v11 }
 0x3fc   :  { %2958 = dma.vmem_to_hbm [thread:$0]  %s2951_s9, 672, %s2953_s26, [#allocation6], %s3129_s4, %s3129_s4, %s3130_s12  }
 0x3fd   :  { %3116 = dma.done.wait [#allocation4], 32  }
 0x3fe   :  { %3117 = vsyncadd [#allocation4], 4294967264 }
 0x3ff   :  { %3118 = dma.done.wait [#allocation6], 864  }
 0x400   :  { %3119 = vsyncadd [#allocation6], 4294966432 }
 0x401   :  { %2971 = vsyncpa [#allocation4], 1 }
 0x402   :  { %2972 = vsyncpa [#allocation6], 1 }

</bundles_post_ra>
